<compile_context>
chip_gen: v6e
topology: v6e:2x2x1
jax: 0.10.0
libtpu: 0.0.40
codegen_flags: <defaults>
</compile_context>

<pallas_src>
import functools

import jax
import jax.numpy as jnp
from jax.experimental import pallas as pl
from jax.experimental.pallas import tpu as pltpu


def _round_up(x, m):
    return (x + m - 1) // m * m


# ---------------------------------------------------------------------------
# Pallas kernel: single-shot matmul with fused bias (+residual) (+relu)
# ---------------------------------------------------------------------------
def _mm_kernel(a_ref, b_ref, bias_ref, *rest, relu, has_res):
    if has_res:
        r_ref, o_ref = rest
    else:
        (o_ref,) = rest
    # bf16 x bf16 -> f32 accumulation on the MXU; epilogue in f32 on the VPU.
    y = jnp.dot(a_ref[...], b_ref[...], preferred_element_type=jnp.float32)
    y = y + bias_ref[...]
    if has_res:
        y = y + r_ref[...]
    if relu:
        y = jnp.maximum(y, 0.0)
    o_ref[...] = y.astype(o_ref.dtype)


@functools.lru_cache(maxsize=None)
def _get_mm_fn(Mp, K, Np, TM, relu, has_res):
    in_specs = [
        pl.BlockSpec((TM, K), lambda i: (i, 0)),    # A tile (bf16)
        pl.BlockSpec((K, Np), lambda i: (0, 0)),    # full B, resident in VMEM
        pl.BlockSpec((1, Np), lambda i: (0, 0)),    # bias row
    ]
    if has_res:
        in_specs.append(pl.BlockSpec((TM, Np), lambda i: (i, 0)))  # residual
    return pl.pallas_call(
        functools.partial(_mm_kernel, relu=relu, has_res=has_res),
        out_shape=jax.ShapeDtypeStruct((Mp, Np), jnp.float32),
        grid_spec=pltpu.PrefetchScalarGridSpec(
            num_scalar_prefetch=0,
            grid=(Mp // TM,),
            in_specs=in_specs,
            out_specs=pl.BlockSpec((TM, Np), lambda i: (i, 0)),
        ),
        compiler_params=pltpu.CompilerParams(
            dimension_semantics=("parallel",)),
    )


def matmul_fused(a, b, bias, relu, residual=None):
    """maybe_relu(a @ b + bias [+ residual]); a:(M,K) b:(K,N) bias:(N,)."""
    M, K = a.shape
    K2, N = b.shape
    assert K == K2
    Np = _round_up(N, 128)
    # Pick an M tile: big tiles amortise the per-grid-step overhead; the whole
    # K axis lives in one block so there is no accumulator / revisit.
    if M > 1024:
        TM = 512
    elif M > 512:
        TM = 256
    else:
        TM = _round_up(M, 16)
    Mp = _round_up(M, TM)

    a_p = a.astype(jnp.bfloat16)
    if Mp != M:
        a_p = jnp.pad(a_p, ((0, Mp - M), (0, 0)))
    b_p = jnp.pad(b.astype(jnp.bfloat16), ((0, 0), (0, Np - N)))
    bias_p = jnp.pad(bias.astype(jnp.float32)[None, :], ((0, 0), (0, Np - N)))
    args = [a_p, b_p, bias_p]
    if residual is not None:
        r_p = jnp.pad(residual.astype(jnp.float32),
                      ((0, Mp - M), (0, Np - N)))
        args.append(r_p)
    out = _get_mm_fn(Mp, K, Np, TM, bool(relu), residual is not None)(*args)
    return out[:M, :N]


# ---------------------------------------------------------------------------
# Convolution via NHWC im2col + Pallas matmul (BN scale folded into weights)
# ---------------------------------------------------------------------------
def _im2col_nhwc(x, kh, kw, stride, padding, dilation):
    # x: (N, H, W, C) -> patches (N*Ho*Wo, kh*kw*C); channels stay innermost,
    # so this is slice+concat only (no big permutes).
    n, h, w, c = x.shape
    sh, sw = stride
    ph, pw = padding
    dh, dw = dilation
    xp = jnp.pad(x, ((0, 0), (ph, ph), (pw, pw), (0, 0)))
    hp, wp = h + 2 * ph, w + 2 * pw
    ho = (hp - dh * (kh - 1) - 1) // sh + 1
    wo = (wp - dw * (kw - 1) - 1) // sw + 1
    cols = []
    for i in range(kh):
        for j in range(kw):
            sl = xp[:, i * dh: i * dh + sh * (ho - 1) + 1: sh,
                       j * dw: j * dw + sw * (wo - 1) + 1: sw, :]
            cols.append(sl)  # (n, ho, wo, c)
    patches = jnp.concatenate(cols, axis=-1) if len(cols) > 1 else cols[0]
    return patches.reshape(n * ho * wo, kh * kw * c), (n, ho, wo)


def _wmat(w, scale):
    """(Cout,Cin,kh,kw) PyTorch weight -> (kh*kw*Cin, Cout) with BN scale
    folded into the columns."""
    cout, cin, kh, kw = w.shape
    m = w.transpose(2, 3, 1, 0).reshape(kh * kw * cin, cout)
    return m * scale[None, :]


def conv2d_fused(p, x, relu, stride=(1, 1), padding=(0, 0), dilation=(1, 1),
                 residual=None):
    # TODO(synk): kx1 / 1xk convs still materialize a k-wide patch copy; an
    # in-kernel shifted-tap accumulation (overlapping-window DMA) would
    # remove that blowup entirely.
    w = p["w"]
    cout, cin, kh, kw = w.shape
    patches, (n, ho, wo) = _im2col_nhwc(x, kh, kw, stride, padding, dilation)
    res2d = None if residual is None else residual.reshape(n * ho * wo, -1)
    y = matmul_fused(patches, _wmat(w, p["scale"]), p["bias"], relu, res2d)
    return y.reshape(n, ho, wo, cout)


def conv_transpose2d_fused(p, x):
    # ConvTranspose2d(k=3, stride=2, padding=1, output_padding=1) + BN + ReLU.
    # TODO(synk): sub-pixel (4 stride-1 convs) decomposition would avoid the
    # 75%-zero rows of the dilated input.
    w_t = p["w"]  # (Cin, Cout, 3, 3)
    cin, cout, kh, kw = w_t.shape
    n, h, w, c = x.shape
    s, pad, opad = 2, 1, 1
    xd = jnp.zeros((n, (h - 1) * s + 1, (w - 1) * s + 1, c), x.dtype)
    xd = xd.at[:, ::s, ::s, :].set(x)
    lo = kh - 1 - pad
    hi = kh - 1 - pad + opad
    xd = jnp.pad(xd, ((0, 0), (lo, hi), (lo, hi), (0, 0)))
    w_conv = jnp.flip(w_t, axis=(2, 3)).transpose(1, 0, 2, 3)  # (Cout,Cin,3,3)
    return conv2d_fused({"w": w_conv, "scale": p["scale"], "bias": p["bias"]},
                        xd, relu=True)


# ---------------------------------------------------------------------------
# Plain-JAX glue: max-pool (ceil mode), bilinear resize (align_corners=True)
# ---------------------------------------------------------------------------
def maxpool2x2_ceil(x):
    # TODO(synk): implemented with lax.reduce_window (glue), not a Pallas kernel.
    _, h, w, _ = x.shape
    return jax.lax.reduce_window(
        x, -jnp.inf, jax.lax.max,
        window_dimensions=(1, 2, 2, 1),
        window_strides=(1, 2, 2, 1),
        padding=((0, 0), (0, h % 2), (0, w % 2), (0, 0)))


def bilinear_resize_ac(x, out_h, out_w):
    n, h, w, c = x.shape

    def coords(out, inn):
        denom = max(out - 1, 1)
        src = jnp.arange(out, dtype=jnp.float32) * (inn - 1) / denom
        i0 = jnp.clip(jnp.floor(src).astype(jnp.int32), 0, inn - 1)
        i1 = jnp.clip(i0 + 1, 0, inn - 1)
        return src - i0.astype(jnp.float32), i0, i1

    wh, h0, h1 = coords(out_h, h)
    ww, w0, w1 = coords(out_w, w)
    xh = (x[:, h0, :, :] * (1.0 - wh)[None, :, None, None]
          + x[:, h1, :, :] * wh[None, :, None, None])
    xw = (xh[:, :, w0, :] * (1.0 - ww)[None, None, :, None]
          + xh[:, :, w1, :] * ww[None, None, :, None])
    return xw


# ---------------------------------------------------------------------------
# ESNet blocks (NHWC)
# ---------------------------------------------------------------------------
def downsampling(p, x):
    # relu(cat(conv, pool)) == cat(relu(conv), relu(pool)); relu(conv) fused.
    conv = conv2d_fused(p["conv"], x, relu=True, stride=(2, 2), padding=(1, 1))
    pool = jnp.maximum(maxpool2x2_ceil(x), 0.0)
    return jnp.concatenate([conv, pool], axis=-1)


def fcu(p, x, k):
    pad = k // 2
    n, h, w, c = x.shape
    y = conv2d_fused(p["c1a"], x, True, padding=(pad, 0))
    y = conv2d_fused(p["c1b"], y, True, padding=(0, pad))
    y = conv2d_fused(p["c2a"], y, True, padding=(pad, 0))
    # Last conv: residual add + ReLU fused into the matmul epilogue.
    y = conv2d_fused(p["c2b"], y, True, padding=(0, pad), residual=x)
    return y  # dropout == identity (inference)


def pfcu(p, x, dilations=(2, 5, 9)):
    n, h, w, c = x.shape
    y = conv2d_fused(p["c1a"], x, True, padding=(1, 0))
    y = conv2d_fused(p["c1b"], y, True, padding=(0, 1))
    # Per-branch 'a' convs (dilations differ -> separate patch matrices).
    # All branch 'b' convs + branch-sum + residual + ReLU fused into ONE
    # matmul by concatenating patches/weights along K.
    patch_list, wmat_list = [], []
    bias_sum = jnp.zeros((c,), jnp.float32)
    for d, pb in zip(dilations, p["branches"]):
        a = conv2d_fused(pb["a"], y, True, padding=(d, 0), dilation=(d, 1))
        patches, _ = _im2col_nhwc(a, 1, 3, (1, 1), (0, d), (1, d))
        patch_list.append(patches)
        wmat_list.append(_wmat(pb["b"]["w"], pb["b"]["scale"]))
        bias_sum = bias_sum + pb["b"]["bias"]
    A = jnp.concatenate(patch_list, axis=1)
    B = jnp.concatenate(wmat_list, axis=0)
    out = matmul_fused(A, B, bias_sum, relu=True,
                       residual=x.reshape(n * h * w, c))
    return out.reshape(n, h, w, c)  # dropout == identity (inference)


def esnet_forward(params, x_nchw):
    in_h, in_w = x_nchw.shape[2], x_nchw.shape[3]
    x = x_nchw.transpose(0, 2, 3, 1)  # -> NHWC, once
    # ----- encoder -----
    x = downsampling(params["enc1_down"], x)
    for p in params["enc1_fcu"]:
        x = fcu(p, x, 3)
    x = downsampling(params["enc2_down"], x)
    for p in params["enc2_fcu"]:
        x = fcu(p, x, 5)
    x = downsampling(params["enc3_down"], x)
    for p in params["enc3_pfcu"]:
        x = pfcu(p, x)
    # ----- decoder -----
    x = conv_transpose2d_fused(params["dec1_up"], x)
    for p in params["dec1_fcu"]:
        x = fcu(p, x, 5)
    x = conv_transpose2d_fused(params["dec2_up"], x)
    for p in params["dec2_fcu"]:
        x = fcu(p, x, 3)
    # ----- classifier (1x1) + bilinear upsample to input resolution -----
    x = conv2d_fused(params["classifier"], x, relu=False)
    x = bilinear_resize_ac(x, in_h, in_w)
    return x.transpose(0, 3, 1, 2)  # back to NCHW, once


# ---------------------------------------------------------------------------
# Deterministic parameter initialization (Conv + folded BatchNorm)
# ---------------------------------------------------------------------------
def _init_convbn(key, cout, cin, kh, kw):
    kc, kg, kb, km, kv = jax.random.split(key, 5)
    fan_in = float(cin * kh * kw)
    w = jax.random.normal(kc, (cout, cin, kh, kw), jnp.float32) / jnp.sqrt(fan_in)
    gamma = 1.0 + 0.1 * jax.random.normal(kg, (cout,), jnp.float32)
    beta = 0.1 * jax.random.normal(kb, (cout,), jnp.float32)
    mean = 0.1 * jax.random.normal(km, (cout,), jnp.float32)
    var = 1.0 + 0.1 * jax.random.uniform(kv, (cout,), jnp.float32)
    scale = gamma * jax.lax.rsqrt(var + 1e-5)
    bias = beta - mean * scale
    return {"w": w, "scale": scale, "bias": bias}


def _init_upsampling(key, cin, cout):
    k1, k2 = jax.random.split(key)
    bn = _init_convbn(k2, cout, 1, 1, 1)
    w = jax.random.normal(k1, (cin, cout, 3, 3), jnp.float32) / jnp.sqrt(float(cin * 9))
    return {"w": w, "scale": bn["scale"], "bias": bn["bias"]}


def init_esnet_params(key, in_ch, out_ch):
    it = iter(jax.random.split(key, 128))
    nk = lambda: next(it)

    def cb(cout, cin, kh, kw):
        return _init_convbn(nk(), cout, cin, kh, kw)

    def fcu_p(ch, k):
        return {"c1a": cb(ch, ch, k, 1), "c1b": cb(ch, ch, 1, k),
                "c2a": cb(ch, ch, k, 1), "c2b": cb(ch, ch, 1, k)}

    def pfcu_p(ch):
        return {"c1a": cb(ch, ch, 3, 1), "c1b": cb(ch, ch, 1, 3),
                "branches": [{"a": cb(ch, ch, 3, 1), "b": cb(ch, ch, 1, 3)}
                             for _ in range(3)]}

    params = {
        "enc1_down": {"conv": cb(16 - in_ch, in_ch, 3, 3)},
        "enc1_fcu": [fcu_p(16, 3) for _ in range(3)],
        "enc2_down": {"conv": cb(64 - 16, 16, 3, 3)},
        "enc2_fcu": [fcu_p(64, 5) for _ in range(2)],
        "enc3_down": {"conv": cb(128 - 64, 64, 3, 3)},
        "enc3_pfcu": [pfcu_p(128) for _ in range(5)],
        "dec1_up": _init_upsampling(nk(), 128, 64),
        "dec1_fcu": [fcu_p(64, 5) for _ in range(2)],
        "dec2_up": _init_upsampling(nk(), 64, 16),
        "dec2_fcu": [fcu_p(16, 3) for _ in range(2)],
    }
    k1, k2 = jax.random.split(nk())
    params["classifier"] = {
        "w": jax.random.normal(k1, (out_ch, 16, 1, 1), jnp.float32) / 4.0,
        "scale": jnp.ones((out_ch,), jnp.float32),
        "bias": 0.1 * jax.random.normal(k2, (out_ch,), jnp.float32),
    }
    return params


# ---------------------------------------------------------------------------
if __name__ == "__main__":
    key = jax.random.PRNGKey(0)
    k_params, k_x = jax.random.split(key)

    in_channels, out_channels = 4, 8
    x = jax.random.normal(k_x, (2, in_channels, 16, 16), jnp.float32)

    params = init_esnet_params(k_params, in_channels, out_channels)

    # One jit over the whole forward: XLA fuses the im2col / pad / reshape glue
    # around the Pallas matmuls and removes per-op dispatch.
    fwd = jax.jit(esnet_forward)
    out = jax.block_until_ready(fwd(params, x))

    assert out.shape == (2, out_channels, 16, 16), out.shape
    assert bool(jnp.all(jnp.isfinite(out)))
    print("KERNEL_OK")
</pallas_src>

<mosaic_0001>
module attributes {stable_mosaic.version = 11 : i64} {
  func.func @_mm_kernel(%arg0: i32, %arg1: memref<128x36xbf16, #tpu.memory_space<vmem>>, %arg2: memref<36x128xbf16, #tpu.memory_space<vmem>>, %arg3: memref<1x128xf32, #tpu.memory_space<vmem>>, %arg4: memref<128x128xf32, #tpu.memory_space<vmem>>) attributes {dimension_semantics = [#tpu.dimension_semantics<parallel>], iteration_bounds = array<i64: 1>, scalar_prefetch = 0 : i64, scratch_operands = 0 : i64, tpu.core_type = #tpu.core_type<tc>, window_params = [{transform_indices = @transform_0, window_bounds = array<i64: 128, 36>}, {pipeline_mode = #tpu.pipeline_mode<synchronous>, transform_indices = @transform_1, window_bounds = array<i64: 36, 128>}, {pipeline_mode = #tpu.pipeline_mode<synchronous>, transform_indices = @transform_2, window_bounds = array<i64: 1, 128>}, {transform_indices = @transform_3, window_bounds = array<i64: 128, 128>}]} {
    %c0 = arith.constant 0 : index
    %c0_0 = arith.constant 0 : index
    %0 = vector.load %arg1[%c0, %c0_0] : memref<128x36xbf16, #tpu.memory_space<vmem>>, vector<128x36xbf16>
    %c0_1 = arith.constant 0 : index
    %c0_2 = arith.constant 0 : index
    %1 = vector.load %arg2[%c0_1, %c0_2] : memref<36x128xbf16, #tpu.memory_space<vmem>>, vector<36x128xbf16>
    %cst = arith.constant dense<0.000000e+00> : vector<128x128xf32>
    %2 = tpu.matmul %0, %1, %cst {dimension_numbers = #tpu.dot_dimension_numbers<[1], [0], [0], [1], [0, 0, 1, 1], [], []>} : vector<128x36xbf16>, vector<36x128xbf16>, vector<128x128xf32> -> vector<128x128xf32>
    %c0_3 = arith.constant 0 : index
    %c0_4 = arith.constant 0 : index
    %3 = vector.load %arg3[%c0_3, %c0_4] : memref<1x128xf32, #tpu.memory_space<vmem>>, vector<1x128xf32>
    %4 = vector.broadcast %3 : vector<1x128xf32> to vector<128x128xf32>
    %5 = arith.addf %2, %4 : vector<128x128xf32>
    %cst_5 = arith.constant 0.000000e+00 : f32
    %6 = vector.broadcast %cst_5 : f32 to vector<128x128xf32>
    %7 = arith.maximumf %5, %6 : vector<128x128xf32>
    %c0_6 = arith.constant 0 : index
    %c0_7 = arith.constant 0 : index
    %8 = vector.load %arg4[%c0_6, %c0_7] : memref<128x128xf32, #tpu.memory_space<vmem>>, vector<128x128xf32>
    tpu.vector_store %arg4[%c0_6, %c0_7], %7 {strides = array<i32>} : memref<128x128xf32, #tpu.memory_space<vmem>>, vector<128x128xf32>,
    return
  }
  func.func @transform_0(%arg0: i32) -> (i32, i32) {
    %c0_i32 = arith.constant 0 : i32
    %c0_i32_0 = arith.constant 0 : i32
    return %arg0, %c0_i32 : i32, i32
  }
  func.func @transform_1(%arg0: i32) -> (i32, i32) {
    %c0_i32 = arith.constant 0 : i32
    %c0_i32_0 = arith.constant 0 : i32
    %c0_i32_1 = arith.constant 0 : i32
    return %c0_i32, %c0_i32_0 : i32, i32
  }
  func.func @transform_2(%arg0: i32) -> (i32, i32) {
    %c0_i32 = arith.constant 0 : i32
    %c0_i32_0 = arith.constant 0 : i32
    %c0_i32_1 = arith.constant 0 : i32
    return %c0_i32, %c0_i32_0 : i32, i32
  }
  func.func @transform_3(%arg0: i32) -> (i32, i32) {
    %c0_i32 = arith.constant 0 : i32
    %c0_i32_0 = arith.constant 0 : i32
    return %arg0, %c0_i32 : i32, i32
  }
}

module attributes {stable_mosaic.version = 11 : i64} {
  func.func @_mm_kernel(%arg0: i32, %arg1: memref<128x48xbf16, #tpu.memory_space<vmem>>, %arg2: memref<48x128xbf16, #tpu.memory_space<vmem>>, %arg3: memref<1x128xf32, #tpu.memory_space<vmem>>, %arg4: memref<128x128xf32, #tpu.memory_space<vmem>>) attributes {dimension_semantics = [#tpu.dimension_semantics<parallel>], iteration_bounds = array<i64: 1>, scalar_prefetch = 0 : i64, scratch_operands = 0 : i64, tpu.core_type = #tpu.core_type<tc>, window_params = [{transform_indices = @transform_0, window_bounds = array<i64: 128, 48>}, {pipeline_mode = #tpu.pipeline_mode<synchronous>, transform_indices = @transform_1, window_bounds = array<i64: 48, 128>}, {pipeline_mode = #tpu.pipeline_mode<synchronous>, transform_indices = @transform_2, window_bounds = array<i64: 1, 128>}, {transform_indices = @transform_3, window_bounds = array<i64: 128, 128>}]} {
    %c0 = arith.constant 0 : index
    %c0_0 = arith.constant 0 : index
    %0 = vector.load %arg1[%c0, %c0_0] : memref<128x48xbf16, #tpu.memory_space<vmem>>, vector<128x48xbf16>
    %c0_1 = arith.constant 0 : index
    %c0_2 = arith.constant 0 : index
    %1 = vector.load %arg2[%c0_1, %c0_2] : memref<48x128xbf16, #tpu.memory_space<vmem>>, vector<48x128xbf16>
    %cst = arith.constant dense<0.000000e+00> : vector<128x128xf32>
    %2 = tpu.matmul %0, %1, %cst {dimension_numbers = #tpu.dot_dimension_numbers<[1], [0], [0], [1], [0, 0, 1, 1], [], []>} : vector<128x48xbf16>, vector<48x128xbf16>, vector<128x128xf32> -> vector<128x128xf32>
    %c0_3 = arith.constant 0 : index
    %c0_4 = arith.constant 0 : index
    %3 = vector.load %arg3[%c0_3, %c0_4] : memref<1x128xf32, #tpu.memory_space<vmem>>, vector<1x128xf32>
    %4 = vector.broadcast %3 : vector<1x128xf32> to vector<128x128xf32>
    %5 = arith.addf %2, %4 : vector<128x128xf32>
    %cst_5 = arith.constant 0.000000e+00 : f32
    %6 = vector.broadcast %cst_5 : f32 to vector<128x128xf32>
    %7 = arith.maximumf %5, %6 : vector<128x128xf32>
    %c0_6 = arith.constant 0 : index
    %c0_7 = arith.constant 0 : index
    %8 = vector.load %arg4[%c0_6, %c0_7] : memref<128x128xf32, #tpu.memory_space<vmem>>, vector<128x128xf32>
    tpu.vector_store %arg4[%c0_6, %c0_7], %7 {strides = array<i32>} : memref<128x128xf32, #tpu.memory_space<vmem>>, vector<128x128xf32>,
    return
  }
  func.func @transform_0(%arg0: i32) -> (i32, i32) {
    %c0_i32 = arith.constant 0 : i32
    %c0_i32_0 = arith.constant 0 : i32
    return %arg0, %c0_i32 : i32, i32
  }
  func.func @transform_1(%arg0: i32) -> (i32, i32) {
    %c0_i32 = arith.constant 0 : i32
    %c0_i32_0 = arith.constant 0 : i32
    %c0_i32_1 = arith.constant 0 : i32
    return %c0_i32, %c0_i32_0 : i32, i32
  }
  func.func @transform_2(%arg0: i32) -> (i32, i32) {
    %c0_i32 = arith.constant 0 : i32
    %c0_i32_0 = arith.constant 0 : i32
    %c0_i32_1 = arith.constant 0 : i32
    return %c0_i32, %c0_i32_0 : i32, i32
  }
  func.func @transform_3(%arg0: i32) -> (i32, i32) {
    %c0_i32 = arith.constant 0 : i32
    %c0_i32_0 = arith.constant 0 : i32
    return %arg0, %c0_i32 : i32, i32
  }
}

module attributes {stable_mosaic.version = 11 : i64} {
  func.func @_mm_kernel(%arg0: i32, %arg1: memref<128x48xbf16, #tpu.memory_space<vmem>>, %arg2: memref<48x128xbf16, #tpu.memory_space<vmem>>, %arg3: memref<1x128xf32, #tpu.memory_space<vmem>>, %arg4: memref<128x128xf32, #tpu.memory_space<vmem>>, %arg5: memref<128x128xf32, #tpu.memory_space<vmem>>) attributes {dimension_semantics = [#tpu.dimension_semantics<parallel>], iteration_bounds = array<i64: 1>, scalar_prefetch = 0 : i64, scratch_operands = 0 : i64, tpu.core_type = #tpu.core_type<tc>, window_params = [{transform_indices = @transform_0, window_bounds = array<i64: 128, 48>}, {pipeline_mode = #tpu.pipeline_mode<synchronous>, transform_indices = @transform_1, window_bounds = array<i64: 48, 128>}, {pipeline_mode = #tpu.pipeline_mode<synchronous>, transform_indices = @transform_2, window_bounds = array<i64: 1, 128>}, {transform_indices = @transform_3, window_bounds = array<i64: 128, 128>}, {transform_indices = @transform_4, window_bounds = array<i64: 128, 128>}]} {
    %c0 = arith.constant 0 : index
    %c0_0 = arith.constant 0 : index
    %0 = vector.load %arg1[%c0, %c0_0] : memref<128x48xbf16, #tpu.memory_space<vmem>>, vector<128x48xbf16>
    %c0_1 = arith.constant 0 : index
    %c0_2 = arith.constant 0 : index
    %1 = vector.load %arg2[%c0_1, %c0_2] : memref<48x128xbf16, #tpu.memory_space<vmem>>, vector<48x128xbf16>
    %cst = arith.constant dense<0.000000e+00> : vector<128x128xf32>
    %2 = tpu.matmul %0, %1, %cst {dimension_numbers = #tpu.dot_dimension_numbers<[1], [0], [0], [1], [0, 0, 1, 1], [], []>} : vector<128x48xbf16>, vector<48x128xbf16>, vector<128x128xf32> -> vector<128x128xf32>
    %c0_3 = arith.constant 0 : index
    %c0_4 = arith.constant 0 : index
    %3 = vector.load %arg3[%c0_3, %c0_4] : memref<1x128xf32, #tpu.memory_space<vmem>>, vector<1x128xf32>
    %4 = vector.broadcast %3 : vector<1x128xf32> to vector<128x128xf32>
    %5 = arith.addf %2, %4 : vector<128x128xf32>
    %c0_5 = arith.constant 0 : index
    %c0_6 = arith.constant 0 : index
    %6 = vector.load %arg4[%c0_5, %c0_6] : memref<128x128xf32, #tpu.memory_space<vmem>>, vector<128x128xf32>
    %7 = arith.addf %5, %6 : vector<128x128xf32>
    %cst_7 = arith.constant 0.000000e+00 : f32
    %8 = vector.broadcast %cst_7 : f32 to vector<128x128xf32>
    %9 = arith.maximumf %7, %8 : vector<128x128xf32>
    %c0_8 = arith.constant 0 : index
    %c0_9 = arith.constant 0 : index
    %10 = vector.load %arg5[%c0_8, %c0_9] : memref<128x128xf32, #tpu.memory_space<vmem>>, vector<128x128xf32>
    tpu.vector_store %arg5[%c0_8, %c0_9], %9 {strides = array<i32>} : memref<128x128xf32, #tpu.memory_space<vmem>>, vector<128x128xf32>,
    return
  }
  func.func @transform_0(%arg0: i32) -> (i32, i32) {
    %c0_i32 = arith.constant 0 : i32
    %c0_i32_0 = arith.constant 0 : i32
    return %arg0, %c0_i32 : i32, i32
  }
  func.func @transform_1(%arg0: i32) -> (i32, i32) {
    %c0_i32 = arith.constant 0 : i32
    %c0_i32_0 = arith.constant 0 : i32
    %c0_i32_1 = arith.constant 0 : i32
    return %c0_i32, %c0_i32_0 : i32, i32
  }
  func.func @transform_2(%arg0: i32) -> (i32, i32) {
    %c0_i32 = arith.constant 0 : i32
    %c0_i32_0 = arith.constant 0 : i32
    %c0_i32_1 = arith.constant 0 : i32
    return %c0_i32, %c0_i32_0 : i32, i32
  }
  func.func @transform_3(%arg0: i32) -> (i32, i32) {
    %c0_i32 = arith.constant 0 : i32
    %c0_i32_0 = arith.constant 0 : i32
    return %arg0, %c0_i32 : i32, i32
  }
  func.func @transform_4(%arg0: i32) -> (i32, i32) {
    %c0_i32 = arith.constant 0 : i32
    %c0_i32_0 = arith.constant 0 : i32
    return %arg0, %c0_i32 : i32, i32
  }
}

module attributes {stable_mosaic.version = 11 : i64} {
  func.func @_mm_kernel(%arg0: i32, %arg1: memref<32x144xbf16, #tpu.memory_space<vmem>>, %arg2: memref<144x128xbf16, #tpu.memory_space<vmem>>, %arg3: memref<1x128xf32, #tpu.memory_space<vmem>>, %arg4: memref<32x128xf32, #tpu.memory_space<vmem>>) attributes {dimension_semantics = [#tpu.dimension_semantics<parallel>], iteration_bounds = array<i64: 1>, scalar_prefetch = 0 : i64, scratch_operands = 0 : i64, tpu.core_type = #tpu.core_type<tc>, window_params = [{transform_indices = @transform_0, window_bounds = array<i64: 32, 144>}, {pipeline_mode = #tpu.pipeline_mode<synchronous>, transform_indices = @transform_1, window_bounds = array<i64: 144, 128>}, {pipeline_mode = #tpu.pipeline_mode<synchronous>, transform_indices = @transform_2, window_bounds = array<i64: 1, 128>}, {transform_indices = @transform_3, window_bounds = array<i64: 32, 128>}]} {
    %c0 = arith.constant 0 : index
    %c0_0 = arith.constant 0 : index
    %0 = vector.load %arg1[%c0, %c0_0] : memref<32x144xbf16, #tpu.memory_space<vmem>>, vector<32x144xbf16>
    %c0_1 = arith.constant 0 : index
    %c0_2 = arith.constant 0 : index
    %1 = vector.load %arg2[%c0_1, %c0_2] : memref<144x128xbf16, #tpu.memory_space<vmem>>, vector<144x128xbf16>
    %cst = arith.constant dense<0.000000e+00> : vector<32x128xf32>
    %2 = tpu.matmul %0, %1, %cst {dimension_numbers = #tpu.dot_dimension_numbers<[1], [0], [0], [1], [0, 0, 1, 1], [], []>} : vector<32x144xbf16>, vector<144x128xbf16>, vector<32x128xf32> -> vector<32x128xf32>
    %c0_3 = arith.constant 0 : index
    %c0_4 = arith.constant 0 : index
    %3 = vector.load %arg3[%c0_3, %c0_4] : memref<1x128xf32, #tpu.memory_space<vmem>>, vector<1x128xf32>
    %4 = vector.broadcast %3 : vector<1x128xf32> to vector<32x128xf32>
    %5 = arith.addf %2, %4 : vector<32x128xf32>
    %cst_5 = arith.constant 0.000000e+00 : f32
    %6 = vector.broadcast %cst_5 : f32 to vector<32x128xf32>
    %7 = arith.maximumf %5, %6 : vector<32x128xf32>
    %c0_6 = arith.constant 0 : index
    %c0_7 = arith.constant 0 : index
    %8 = vector.load %arg4[%c0_6, %c0_7] : memref<32x128xf32, #tpu.memory_space<vmem>>, vector<32x128xf32>
    tpu.vector_store %arg4[%c0_6, %c0_7], %7 {strides = array<i32>} : memref<32x128xf32, #tpu.memory_space<vmem>>, vector<32x128xf32>,
    return
  }
  func.func @transform_0(%arg0: i32) -> (i32, i32) {
    %c0_i32 = arith.constant 0 : i32
    %c0_i32_0 = arith.constant 0 : i32
    return %arg0, %c0_i32 : i32, i32
  }
  func.func @transform_1(%arg0: i32) -> (i32, i32) {
    %c0_i32 = arith.constant 0 : i32
    %c0_i32_0 = arith.constant 0 : i32
    %c0_i32_1 = arith.constant 0 : i32
    return %c0_i32, %c0_i32_0 : i32, i32
  }
  func.func @transform_2(%arg0: i32) -> (i32, i32) {
    %c0_i32 = arith.constant 0 : i32
    %c0_i32_0 = arith.constant 0 : i32
    %c0_i32_1 = arith.constant 0 : i32
    return %c0_i32, %c0_i32_0 : i32, i32
  }
  func.func @transform_3(%arg0: i32) -> (i32, i32) {
    %c0_i32 = arith.constant 0 : i32
    %c0_i32_0 = arith.constant 0 : i32
    return %arg0, %c0_i32 : i32, i32
  }
}

module attributes {stable_mosaic.version = 11 : i64} {
  func.func @_mm_kernel(%arg0: i32, %arg1: memref<32x320xbf16, #tpu.memory_space<vmem>>, %arg2: memref<320x128xbf16, #tpu.memory_space<vmem>>, %arg3: memref<1x128xf32, #tpu.memory_space<vmem>>, %arg4: memref<32x128xf32, #tpu.memory_space<vmem>>) attributes {dimension_semantics = [#tpu.dimension_semantics<parallel>], iteration_bounds = array<i64: 1>, scalar_prefetch = 0 : i64, scratch_operands = 0 : i64, tpu.core_type = #tpu.core_type<tc>, window_params = [{transform_indices = @transform_0, window_bounds = array<i64: 32, 320>}, {pipeline_mode = #tpu.pipeline_mode<synchronous>, transform_indices = @transform_1, window_bounds = array<i64: 320, 128>}, {pipeline_mode = #tpu.pipeline_mode<synchronous>, transform_indices = @transform_2, window_bounds = array<i64: 1, 128>}, {transform_indices = @transform_3, window_bounds = array<i64: 32, 128>}]} {
    %c0 = arith.constant 0 : index
    %c0_0 = arith.constant 0 : index
    %0 = vector.load %arg1[%c0, %c0_0] : memref<32x320xbf16, #tpu.memory_space<vmem>>, vector<32x320xbf16>
    %c0_1 = arith.constant 0 : index
    %c0_2 = arith.constant 0 : index
    %1 = vector.load %arg2[%c0_1, %c0_2] : memref<320x128xbf16, #tpu.memory_space<vmem>>, vector<320x128xbf16>
    %cst = arith.constant dense<0.000000e+00> : vector<32x128xf32>
    %2 = tpu.matmul %0, %1, %cst {dimension_numbers = #tpu.dot_dimension_numbers<[1], [0], [0], [1], [0, 0, 1, 1], [], []>} : vector<32x320xbf16>, vector<320x128xbf16>, vector<32x128xf32> -> vector<32x128xf32>
    %c0_3 = arith.constant 0 : index
    %c0_4 = arith.constant 0 : index
    %3 = vector.load %arg3[%c0_3, %c0_4] : memref<1x128xf32, #tpu.memory_space<vmem>>, vector<1x128xf32>
    %4 = vector.broadcast %3 : vector<1x128xf32> to vector<32x128xf32>
    %5 = arith.addf %2, %4 : vector<32x128xf32>
    %cst_5 = arith.constant 0.000000e+00 : f32
    %6 = vector.broadcast %cst_5 : f32 to vector<32x128xf32>
    %7 = arith.maximumf %5, %6 : vector<32x128xf32>
    %c0_6 = arith.constant 0 : index
    %c0_7 = arith.constant 0 : index
    %8 = vector.load %arg4[%c0_6, %c0_7] : memref<32x128xf32, #tpu.memory_space<vmem>>, vector<32x128xf32>
    tpu.vector_store %arg4[%c0_6, %c0_7], %7 {strides = array<i32>} : memref<32x128xf32, #tpu.memory_space<vmem>>, vector<32x128xf32>,
    return
  }
  func.func @transform_0(%arg0: i32) -> (i32, i32) {
    %c0_i32 = arith.constant 0 : i32
    %c0_i32_0 = arith.constant 0 : i32
    return %arg0, %c0_i32 : i32, i32
  }
  func.func @transform_1(%arg0: i32) -> (i32, i32) {
    %c0_i32 = arith.constant 0 : i32
    %c0_i32_0 = arith.constant 0 : i32
    %c0_i32_1 = arith.constant 0 : i32
    return %c0_i32, %c0_i32_0 : i32, i32
  }
  func.func @transform_2(%arg0: i32) -> (i32, i32) {
    %c0_i32 = arith.constant 0 : i32
    %c0_i32_0 = arith.constant 0 : i32
    %c0_i32_1 = arith.constant 0 : i32
    return %c0_i32, %c0_i32_0 : i32, i32
  }
  func.func @transform_3(%arg0: i32) -> (i32, i32) {
    %c0_i32 = arith.constant 0 : i32
    %c0_i32_0 = arith.constant 0 : i32
    return %arg0, %c0_i32 : i32, i32
  }
}

module attributes {stable_mosaic.version = 11 : i64} {
  func.func @_mm_kernel(%arg0: i32, %arg1: memref<32x320xbf16, #tpu.memory_space<vmem>>, %arg2: memref<320x128xbf16, #tpu.memory_space<vmem>>, %arg3: memref<1x128xf32, #tpu.memory_space<vmem>>, %arg4: memref<32x128xf32, #tpu.memory_space<vmem>>, %arg5: memref<32x128xf32, #tpu.memory_space<vmem>>) attributes {dimension_semantics = [#tpu.dimension_semantics<parallel>], iteration_bounds = array<i64: 1>, scalar_prefetch = 0 : i64, scratch_operands = 0 : i64, tpu.core_type = #tpu.core_type<tc>, window_params = [{transform_indices = @transform_0, window_bounds = array<i64: 32, 320>}, {pipeline_mode = #tpu.pipeline_mode<synchronous>, transform_indices = @transform_1, window_bounds = array<i64: 320, 128>}, {pipeline_mode = #tpu.pipeline_mode<synchronous>, transform_indices = @transform_2, window_bounds = array<i64: 1, 128>}, {transform_indices = @transform_3, window_bounds = array<i64: 32, 128>}, {transform_indices = @transform_4, window_bounds = array<i64: 32, 128>}]} {
    %c0 = arith.constant 0 : index
    %c0_0 = arith.constant 0 : index
    %0 = vector.load %arg1[%c0, %c0_0] : memref<32x320xbf16, #tpu.memory_space<vmem>>, vector<32x320xbf16>
    %c0_1 = arith.constant 0 : index
    %c0_2 = arith.constant 0 : index
    %1 = vector.load %arg2[%c0_1, %c0_2] : memref<320x128xbf16, #tpu.memory_space<vmem>>, vector<320x128xbf16>
    %cst = arith.constant dense<0.000000e+00> : vector<32x128xf32>
    %2 = tpu.matmul %0, %1, %cst {dimension_numbers = #tpu.dot_dimension_numbers<[1], [0], [0], [1], [0, 0, 1, 1], [], []>} : vector<32x320xbf16>, vector<320x128xbf16>, vector<32x128xf32> -> vector<32x128xf32>
    %c0_3 = arith.constant 0 : index
    %c0_4 = arith.constant 0 : index
    %3 = vector.load %arg3[%c0_3, %c0_4] : memref<1x128xf32, #tpu.memory_space<vmem>>, vector<1x128xf32>
    %4 = vector.broadcast %3 : vector<1x128xf32> to vector<32x128xf32>
    %5 = arith.addf %2, %4 : vector<32x128xf32>
    %c0_5 = arith.constant 0 : index
    %c0_6 = arith.constant 0 : index
    %6 = vector.load %arg4[%c0_5, %c0_6] : memref<32x128xf32, #tpu.memory_space<vmem>>, vector<32x128xf32>
    %7 = arith.addf %5, %6 : vector<32x128xf32>
    %cst_7 = arith.constant 0.000000e+00 : f32
    %8 = vector.broadcast %cst_7 : f32 to vector<32x128xf32>
    %9 = arith.maximumf %7, %8 : vector<32x128xf32>
    %c0_8 = arith.constant 0 : index
    %c0_9 = arith.constant 0 : index
    %10 = vector.load %arg5[%c0_8, %c0_9] : memref<32x128xf32, #tpu.memory_space<vmem>>, vector<32x128xf32>
    tpu.vector_store %arg5[%c0_8, %c0_9], %9 {strides = array<i32>} : memref<32x128xf32, #tpu.memory_space<vmem>>, vector<32x128xf32>,
    return
  }
  func.func @transform_0(%arg0: i32) -> (i32, i32) {
    %c0_i32 = arith.constant 0 : i32
    %c0_i32_0 = arith.constant 0 : i32
    return %arg0, %c0_i32 : i32, i32
  }
  func.func @transform_1(%arg0: i32) -> (i32, i32) {
    %c0_i32 = arith.constant 0 : i32
    %c0_i32_0 = arith.constant 0 : i32
    %c0_i32_1 = arith.constant 0 : i32
    return %c0_i32, %c0_i32_0 : i32, i32
  }
  func.func @transform_2(%arg0: i32) -> (i32, i32) {
    %c0_i32 = arith.constant 0 : i32
    %c0_i32_0 = arith.constant 0 : i32
    %c0_i32_1 = arith.constant 0 : i32
    return %c0_i32, %c0_i32_0 : i32, i32
  }
  func.func @transform_3(%arg0: i32) -> (i32, i32) {
    %c0_i32 = arith.constant 0 : i32
    %c0_i32_0 = arith.constant 0 : i32
    return %arg0, %c0_i32 : i32, i32
  }
  func.func @transform_4(%arg0: i32) -> (i32, i32) {
    %c0_i32 = arith.constant 0 : i32
    %c0_i32_0 = arith.constant 0 : i32
    return %arg0, %c0_i32 : i32, i32
  }
}

module attributes {stable_mosaic.version = 11 : i64} {
  func.func @_mm_kernel(%arg0: i32, %arg1: memref<16x576xbf16, #tpu.memory_space<vmem>>, %arg2: memref<576x128xbf16, #tpu.memory_space<vmem>>, %arg3: memref<1x128xf32, #tpu.memory_space<vmem>>, %arg4: memref<16x128xf32, #tpu.memory_space<vmem>>) attributes {dimension_semantics = [#tpu.dimension_semantics<parallel>], iteration_bounds = array<i64: 1>, scalar_prefetch = 0 : i64, scratch_operands = 0 : i64, tpu.core_type = #tpu.core_type<tc>, window_params = [{transform_indices = @transform_0, window_bounds = array<i64: 16, 576>}, {pipeline_mode = #tpu.pipeline_mode<synchronous>, transform_indices = @transform_1, window_bounds = array<i64: 576, 128>}, {pipeline_mode = #tpu.pipeline_mode<synchronous>, transform_indices = @transform_2, window_bounds = array<i64: 1, 128>}, {transform_indices = @transform_3, window_bounds = array<i64: 16, 128>}]} {
    %c0 = arith.constant 0 : index
    %c0_0 = arith.constant 0 : index
    %0 = vector.load %arg1[%c0, %c0_0] : memref<16x576xbf16, #tpu.memory_space<vmem>>, vector<16x576xbf16>
    %c0_1 = arith.constant 0 : index
    %c0_2 = arith.constant 0 : index
    %1 = vector.load %arg2[%c0_1, %c0_2] : memref<576x128xbf16, #tpu.memory_space<vmem>>, vector<576x128xbf16>
    %cst = arith.constant dense<0.000000e+00> : vector<16x128xf32>
    %2 = tpu.matmul %0, %1, %cst {dimension_numbers = #tpu.dot_dimension_numbers<[1], [0], [0], [1], [0, 0, 1, 1], [], []>} : vector<16x576xbf16>, vector<576x128xbf16>, vector<16x128xf32> -> vector<16x128xf32>
    %c0_3 = arith.constant 0 : index
    %c0_4 = arith.constant 0 : index
    %3 = vector.load %arg3[%c0_3, %c0_4] : memref<1x128xf32, #tpu.memory_space<vmem>>, vector<1x128xf32>
    %4 = vector.broadcast %3 : vector<1x128xf32> to vector<16x128xf32>
    %5 = arith.addf %2, %4 : vector<16x128xf32>
    %cst_5 = arith.constant 0.000000e+00 : f32
    %6 = vector.broadcast %cst_5 : f32 to vector<16x128xf32>
    %7 = arith.maximumf %5, %6 : vector<16x128xf32>
    %c0_6 = arith.constant 0 : index
    %c0_7 = arith.constant 0 : index
    %8 = vector.load %arg4[%c0_6, %c0_7] : memref<16x128xf32, #tpu.memory_space<vmem>>, vector<16x128xf32>
    tpu.vector_store %arg4[%c0_6, %c0_7], %7 {strides = array<i32>} : memref<16x128xf32, #tpu.memory_space<vmem>>, vector<16x128xf32>,
    return
  }
  func.func @transform_0(%arg0: i32) -> (i32, i32) {
    %c0_i32 = arith.constant 0 : i32
    %c0_i32_0 = arith.constant 0 : i32
    return %arg0, %c0_i32 : i32, i32
  }
  func.func @transform_1(%arg0: i32) -> (i32, i32) {
    %c0_i32 = arith.constant 0 : i32
    %c0_i32_0 = arith.constant 0 : i32
    %c0_i32_1 = arith.constant 0 : i32
    return %c0_i32, %c0_i32_0 : i32, i32
  }
  func.func @transform_2(%arg0: i32) -> (i32, i32) {
    %c0_i32 = arith.constant 0 : i32
    %c0_i32_0 = arith.constant 0 : i32
    %c0_i32_1 = arith.constant 0 : i32
    return %c0_i32, %c0_i32_0 : i32, i32
  }
  func.func @transform_3(%arg0: i32) -> (i32, i32) {
    %c0_i32 = arith.constant 0 : i32
    %c0_i32_0 = arith.constant 0 : i32
    return %arg0, %c0_i32 : i32, i32
  }
}

module attributes {stable_mosaic.version = 11 : i64} {
  func.func @_mm_kernel(%arg0: i32, %arg1: memref<16x384xbf16, #tpu.memory_space<vmem>>, %arg2: memref<384x128xbf16, #tpu.memory_space<vmem>>, %arg3: memref<1x128xf32, #tpu.memory_space<vmem>>, %arg4: memref<16x128xf32, #tpu.memory_space<vmem>>) attributes {dimension_semantics = [#tpu.dimension_semantics<parallel>], iteration_bounds = array<i64: 1>, scalar_prefetch = 0 : i64, scratch_operands = 0 : i64, tpu.core_type = #tpu.core_type<tc>, window_params = [{transform_indices = @transform_0, window_bounds = array<i64: 16, 384>}, {pipeline_mode = #tpu.pipeline_mode<synchronous>, transform_indices = @transform_1, window_bounds = array<i64: 384, 128>}, {pipeline_mode = #tpu.pipeline_mode<synchronous>, transform_indices = @transform_2, window_bounds = array<i64: 1, 128>}, {transform_indices = @transform_3, window_bounds = array<i64: 16, 128>}]} {
    %c0 = arith.constant 0 : index
    %c0_0 = arith.constant 0 : index
    %0 = vector.load %arg1[%c0, %c0_0] : memref<16x384xbf16, #tpu.memory_space<vmem>>, vector<16x384xbf16>
    %c0_1 = arith.constant 0 : index
    %c0_2 = arith.constant 0 : index
    %1 = vector.load %arg2[%c0_1, %c0_2] : memref<384x128xbf16, #tpu.memory_space<vmem>>, vector<384x128xbf16>
    %cst = arith.constant dense<0.000000e+00> : vector<16x128xf32>
    %2 = tpu.matmul %0, %1, %cst {dimension_numbers = #tpu.dot_dimension_numbers<[1], [0], [0], [1], [0, 0, 1, 1], [], []>} : vector<16x384xbf16>, vector<384x128xbf16>, vector<16x128xf32> -> vector<16x128xf32>
    %c0_3 = arith.constant 0 : index
    %c0_4 = arith.constant 0 : index
    %3 = vector.load %arg3[%c0_3, %c0_4] : memref<1x128xf32, #tpu.memory_space<vmem>>, vector<1x128xf32>
    %4 = vector.broadcast %3 : vector<1x128xf32> to vector<16x128xf32>
    %5 = arith.addf %2, %4 : vector<16x128xf32>
    %cst_5 = arith.constant 0.000000e+00 : f32
    %6 = vector.broadcast %cst_5 : f32 to vector<16x128xf32>
    %7 = arith.maximumf %5, %6 : vector<16x128xf32>
    %c0_6 = arith.constant 0 : index
    %c0_7 = arith.constant 0 : index
    %8 = vector.load %arg4[%c0_6, %c0_7] : memref<16x128xf32, #tpu.memory_space<vmem>>, vector<16x128xf32>
    tpu.vector_store %arg4[%c0_6, %c0_7], %7 {strides = array<i32>} : memref<16x128xf32, #tpu.memory_space<vmem>>, vector<16x128xf32>,
    return
  }
  func.func @transform_0(%arg0: i32) -> (i32, i32) {
    %c0_i32 = arith.constant 0 : i32
    %c0_i32_0 = arith.constant 0 : i32
    return %arg0, %c0_i32 : i32, i32
  }
  func.func @transform_1(%arg0: i32) -> (i32, i32) {
    %c0_i32 = arith.constant 0 : i32
    %c0_i32_0 = arith.constant 0 : i32
    %c0_i32_1 = arith.constant 0 : i32
    return %c0_i32, %c0_i32_0 : i32, i32
  }
  func.func @transform_2(%arg0: i32) -> (i32, i32) {
    %c0_i32 = arith.constant 0 : i32
    %c0_i32_0 = arith.constant 0 : i32
    %c0_i32_1 = arith.constant 0 : i32
    return %c0_i32, %c0_i32_0 : i32, i32
  }
  func.func @transform_3(%arg0: i32) -> (i32, i32) {
    %c0_i32 = arith.constant 0 : i32
    %c0_i32_0 = arith.constant 0 : i32
    return %arg0, %c0_i32 : i32, i32
  }
}

module attributes {stable_mosaic.version = 11 : i64} {
  func.func @_mm_kernel(%arg0: i32, %arg1: memref<16x1152xbf16, #tpu.memory_space<vmem>>, %arg2: memref<1152x128xbf16, #tpu.memory_space<vmem>>, %arg3: memref<1x128xf32, #tpu.memory_space<vmem>>, %arg4: memref<16x128xf32, #tpu.memory_space<vmem>>, %arg5: memref<16x128xf32, #tpu.memory_space<vmem>>) attributes {dimension_semantics = [#tpu.dimension_semantics<parallel>], iteration_bounds = array<i64: 1>, scalar_prefetch = 0 : i64, scratch_operands = 0 : i64, tpu.core_type = #tpu.core_type<tc>, window_params = [{transform_indices = @transform_0, window_bounds = array<i64: 16, 1152>}, {pipeline_mode = #tpu.pipeline_mode<synchronous>, transform_indices = @transform_1, window_bounds = array<i64: 1152, 128>}, {pipeline_mode = #tpu.pipeline_mode<synchronous>, transform_indices = @transform_2, window_bounds = array<i64: 1, 128>}, {transform_indices = @transform_3, window_bounds = array<i64: 16, 128>}, {transform_indices = @transform_4, window_bounds = array<i64: 16, 128>}]} {
    %c0 = arith.constant 0 : index
    %c0_0 = arith.constant 0 : index
    %0 = vector.load %arg1[%c0, %c0_0] : memref<16x1152xbf16, #tpu.memory_space<vmem>>, vector<16x1152xbf16>
    %c0_1 = arith.constant 0 : index
    %c0_2 = arith.constant 0 : index
    %1 = vector.load %arg2[%c0_1, %c0_2] : memref<1152x128xbf16, #tpu.memory_space<vmem>>, vector<1152x128xbf16>
    %cst = arith.constant dense<0.000000e+00> : vector<16x128xf32>
    %2 = tpu.matmul %0, %1, %cst {dimension_numbers = #tpu.dot_dimension_numbers<[1], [0], [0], [1], [0, 0, 1, 1], [], []>} : vector<16x1152xbf16>, vector<1152x128xbf16>, vector<16x128xf32> -> vector<16x128xf32>
    %c0_3 = arith.constant 0 : index
    %c0_4 = arith.constant 0 : index
    %3 = vector.load %arg3[%c0_3, %c0_4] : memref<1x128xf32, #tpu.memory_space<vmem>>, vector<1x128xf32>
    %4 = vector.broadcast %3 : vector<1x128xf32> to vector<16x128xf32>
    %5 = arith.addf %2, %4 : vector<16x128xf32>
    %c0_5 = arith.constant 0 : index
    %c0_6 = arith.constant 0 : index
    %6 = vector.load %arg4[%c0_5, %c0_6] : memref<16x128xf32, #tpu.memory_space<vmem>>, vector<16x128xf32>
    %7 = arith.addf %5, %6 : vector<16x128xf32>
    %cst_7 = arith.constant 0.000000e+00 : f32
    %8 = vector.broadcast %cst_7 : f32 to vector<16x128xf32>
    %9 = arith.maximumf %7, %8 : vector<16x128xf32>
    %c0_8 = arith.constant 0 : index
    %c0_9 = arith.constant 0 : index
    %10 = vector.load %arg5[%c0_8, %c0_9] : memref<16x128xf32, #tpu.memory_space<vmem>>, vector<16x128xf32>
    tpu.vector_store %arg5[%c0_8, %c0_9], %9 {strides = array<i32>} : memref<16x128xf32, #tpu.memory_space<vmem>>, vector<16x128xf32>,
    return
  }
  func.func @transform_0(%arg0: i32) -> (i32, i32) {
    %c0_i32 = arith.constant 0 : i32
    %c0_i32_0 = arith.constant 0 : i32
    return %arg0, %c0_i32 : i32, i32
  }
  func.func @transform_1(%arg0: i32) -> (i32, i32) {
    %c0_i32 = arith.constant 0 : i32
    %c0_i32_0 = arith.constant 0 : i32
    %c0_i32_1 = arith.constant 0 : i32
    return %c0_i32, %c0_i32_0 : i32, i32
  }
  func.func @transform_2(%arg0: i32) -> (i32, i32) {
    %c0_i32 = arith.constant 0 : i32
    %c0_i32_0 = arith.constant 0 : i32
    %c0_i32_1 = arith.constant 0 : i32
    return %c0_i32, %c0_i32_0 : i32, i32
  }
  func.func @transform_3(%arg0: i32) -> (i32, i32) {
    %c0_i32 = arith.constant 0 : i32
    %c0_i32_0 = arith.constant 0 : i32
    return %arg0, %c0_i32 : i32, i32
  }
  func.func @transform_4(%arg0: i32) -> (i32, i32) {
    %c0_i32 = arith.constant 0 : i32
    %c0_i32_0 = arith.constant 0 : i32
    return %arg0, %c0_i32 : i32, i32
  }
}

module attributes {stable_mosaic.version = 11 : i64} {
  func.func @_mm_kernel(%arg0: i32, %arg1: memref<32x1152xbf16, #tpu.memory_space<vmem>>, %arg2: memref<1152x128xbf16, #tpu.memory_space<vmem>>, %arg3: memref<1x128xf32, #tpu.memory_space<vmem>>, %arg4: memref<32x128xf32, #tpu.memory_space<vmem>>) attributes {dimension_semantics = [#tpu.dimension_semantics<parallel>], iteration_bounds = array<i64: 1>, scalar_prefetch = 0 : i64, scratch_operands = 0 : i64, tpu.core_type = #tpu.core_type<tc>, window_params = [{transform_indices = @transform_0, window_bounds = array<i64: 32, 1152>}, {pipeline_mode = #tpu.pipeline_mode<synchronous>, transform_indices = @transform_1, window_bounds = array<i64: 1152, 128>}, {pipeline_mode = #tpu.pipeline_mode<synchronous>, transform_indices = @transform_2, window_bounds = array<i64: 1, 128>}, {transform_indices = @transform_3, window_bounds = array<i64: 32, 128>}]} {
    %c0 = arith.constant 0 : index
    %c0_0 = arith.constant 0 : index
    %0 = vector.load %arg1[%c0, %c0_0] : memref<32x1152xbf16, #tpu.memory_space<vmem>>, vector<32x1152xbf16>
    %c0_1 = arith.constant 0 : index
    %c0_2 = arith.constant 0 : index
    %1 = vector.load %arg2[%c0_1, %c0_2] : memref<1152x128xbf16, #tpu.memory_space<vmem>>, vector<1152x128xbf16>
    %cst = arith.constant dense<0.000000e+00> : vector<32x128xf32>
    %2 = tpu.matmul %0, %1, %cst {dimension_numbers = #tpu.dot_dimension_numbers<[1], [0], [0], [1], [0, 0, 1, 1], [], []>} : vector<32x1152xbf16>, vector<1152x128xbf16>, vector<32x128xf32> -> vector<32x128xf32>
    %c0_3 = arith.constant 0 : index
    %c0_4 = arith.constant 0 : index
    %3 = vector.load %arg3[%c0_3, %c0_4] : memref<1x128xf32, #tpu.memory_space<vmem>>, vector<1x128xf32>
    %4 = vector.broadcast %3 : vector<1x128xf32> to vector<32x128xf32>
    %5 = arith.addf %2, %4 : vector<32x128xf32>
    %cst_5 = arith.constant 0.000000e+00 : f32
    %6 = vector.broadcast %cst_5 : f32 to vector<32x128xf32>
    %7 = arith.maximumf %5, %6 : vector<32x128xf32>
    %c0_6 = arith.constant 0 : index
    %c0_7 = arith.constant 0 : index
    %8 = vector.load %arg4[%c0_6, %c0_7] : memref<32x128xf32, #tpu.memory_space<vmem>>, vector<32x128xf32>
    tpu.vector_store %arg4[%c0_6, %c0_7], %7 {strides = array<i32>} : memref<32x128xf32, #tpu.memory_space<vmem>>, vector<32x128xf32>,
    return
  }
  func.func @transform_0(%arg0: i32) -> (i32, i32) {
    %c0_i32 = arith.constant 0 : i32
    %c0_i32_0 = arith.constant 0 : i32
    return %arg0, %c0_i32 : i32, i32
  }
  func.func @transform_1(%arg0: i32) -> (i32, i32) {
    %c0_i32 = arith.constant 0 : i32
    %c0_i32_0 = arith.constant 0 : i32
    %c0_i32_1 = arith.constant 0 : i32
    return %c0_i32, %c0_i32_0 : i32, i32
  }
  func.func @transform_2(%arg0: i32) -> (i32, i32) {
    %c0_i32 = arith.constant 0 : i32
    %c0_i32_0 = arith.constant 0 : i32
    %c0_i32_1 = arith.constant 0 : i32
    return %c0_i32, %c0_i32_0 : i32, i32
  }
  func.func @transform_3(%arg0: i32) -> (i32, i32) {
    %c0_i32 = arith.constant 0 : i32
    %c0_i32_0 = arith.constant 0 : i32
    return %arg0, %c0_i32 : i32, i32
  }
}

module attributes {stable_mosaic.version = 11 : i64} {
  func.func @_mm_kernel(%arg0: i32, %arg1: memref<128x576xbf16, #tpu.memory_space<vmem>>, %arg2: memref<576x128xbf16, #tpu.memory_space<vmem>>, %arg3: memref<1x128xf32, #tpu.memory_space<vmem>>, %arg4: memref<128x128xf32, #tpu.memory_space<vmem>>) attributes {dimension_semantics = [#tpu.dimension_semantics<parallel>], iteration_bounds = array<i64: 1>, scalar_prefetch = 0 : i64, scratch_operands = 0 : i64, tpu.core_type = #tpu.core_type<tc>, window_params = [{transform_indices = @transform_0, window_bounds = array<i64: 128, 576>}, {pipeline_mode = #tpu.pipeline_mode<synchronous>, transform_indices = @transform_1, window_bounds = array<i64: 576, 128>}, {pipeline_mode = #tpu.pipeline_mode<synchronous>, transform_indices = @transform_2, window_bounds = array<i64: 1, 128>}, {transform_indices = @transform_3, window_bounds = array<i64: 128, 128>}]} {
    %c0 = arith.constant 0 : index
    %c0_0 = arith.constant 0 : index
    %0 = vector.load %arg1[%c0, %c0_0] : memref<128x576xbf16, #tpu.memory_space<vmem>>, vector<128x576xbf16>
    %c0_1 = arith.constant 0 : index
    %c0_2 = arith.constant 0 : index
    %1 = vector.load %arg2[%c0_1, %c0_2] : memref<576x128xbf16, #tpu.memory_space<vmem>>, vector<576x128xbf16>
    %cst = arith.constant dense<0.000000e+00> : vector<128x128xf32>
    %2 = tpu.matmul %0, %1, %cst {dimension_numbers = #tpu.dot_dimension_numbers<[1], [0], [0], [1], [0, 0, 1, 1], [], []>} : vector<128x576xbf16>, vector<576x128xbf16>, vector<128x128xf32> -> vector<128x128xf32>
    %c0_3 = arith.constant 0 : index
    %c0_4 = arith.constant 0 : index
    %3 = vector.load %arg3[%c0_3, %c0_4] : memref<1x128xf32, #tpu.memory_space<vmem>>, vector<1x128xf32>
    %4 = vector.broadcast %3 : vector<1x128xf32> to vector<128x128xf32>
    %5 = arith.addf %2, %4 : vector<128x128xf32>
    %cst_5 = arith.constant 0.000000e+00 : f32
    %6 = vector.broadcast %cst_5 : f32 to vector<128x128xf32>
    %7 = arith.maximumf %5, %6 : vector<128x128xf32>
    %c0_6 = arith.constant 0 : index
    %c0_7 = arith.constant 0 : index
    %8 = vector.load %arg4[%c0_6, %c0_7] : memref<128x128xf32, #tpu.memory_space<vmem>>, vector<128x128xf32>
    tpu.vector_store %arg4[%c0_6, %c0_7], %7 {strides = array<i32>} : memref<128x128xf32, #tpu.memory_space<vmem>>, vector<128x128xf32>,
    return
  }
  func.func @transform_0(%arg0: i32) -> (i32, i32) {
    %c0_i32 = arith.constant 0 : i32
    %c0_i32_0 = arith.constant 0 : i32
    return %arg0, %c0_i32 : i32, i32
  }
  func.func @transform_1(%arg0: i32) -> (i32, i32) {
    %c0_i32 = arith.constant 0 : i32
    %c0_i32_0 = arith.constant 0 : i32
    %c0_i32_1 = arith.constant 0 : i32
    return %c0_i32, %c0_i32_0 : i32, i32
  }
  func.func @transform_2(%arg0: i32) -> (i32, i32) {
    %c0_i32 = arith.constant 0 : i32
    %c0_i32_0 = arith.constant 0 : i32
    %c0_i32_1 = arith.constant 0 : i32
    return %c0_i32, %c0_i32_0 : i32, i32
  }
  func.func @transform_3(%arg0: i32) -> (i32, i32) {
    %c0_i32 = arith.constant 0 : i32
    %c0_i32_0 = arith.constant 0 : i32
    return %arg0, %c0_i32 : i32, i32
  }
}

module attributes {stable_mosaic.version = 11 : i64} {
  func.func @_mm_kernel(%arg0: i32, %arg1: memref<128x16xbf16, #tpu.memory_space<vmem>>, %arg2: memref<16x128xbf16, #tpu.memory_space<vmem>>, %arg3: memref<1x128xf32, #tpu.memory_space<vmem>>, %arg4: memref<128x128xf32, #tpu.memory_space<vmem>>) attributes {dimension_semantics = [#tpu.dimension_semantics<parallel>], iteration_bounds = array<i64: 1>, scalar_prefetch = 0 : i64, scratch_operands = 0 : i64, tpu.core_type = #tpu.core_type<tc>, window_params = [{transform_indices = @transform_0, window_bounds = array<i64: 128, 16>}, {pipeline_mode = #tpu.pipeline_mode<synchronous>, transform_indices = @transform_1, window_bounds = array<i64: 16, 128>}, {pipeline_mode = #tpu.pipeline_mode<synchronous>, transform_indices = @transform_2, window_bounds = array<i64: 1, 128>}, {transform_indices = @transform_3, window_bounds = array<i64: 128, 128>}]} {
    %c0 = arith.constant 0 : index
    %c0_0 = arith.constant 0 : index
    %0 = vector.load %arg1[%c0, %c0_0] : memref<128x16xbf16, #tpu.memory_space<vmem>>, vector<128x16xbf16>
    %c0_1 = arith.constant 0 : index
    %c0_2 = arith.constant 0 : index
    %1 = vector.load %arg2[%c0_1, %c0_2] : memref<16x128xbf16, #tpu.memory_space<vmem>>, vector<16x128xbf16>
    %cst = arith.constant dense<0.000000e+00> : vector<128x128xf32>
    %2 = tpu.matmul %0, %1, %cst {dimension_numbers = #tpu.dot_dimension_numbers<[1], [0], [0], [1], [0, 0, 1, 1], [], []>} : vector<128x16xbf16>, vector<16x128xbf16>, vector<128x128xf32> -> vector<128x128xf32>
    %c0_3 = arith.constant 0 : index
    %c0_4 = arith.constant 0 : index
    %3 = vector.load %arg3[%c0_3, %c0_4] : memref<1x128xf32, #tpu.memory_space<vmem>>, vector<1x128xf32>
    %4 = vector.broadcast %3 : vector<1x128xf32> to vector<128x128xf32>
    %5 = arith.addf %2, %4 : vector<128x128xf32>
    %c0_5 = arith.constant 0 : index
    %c0_6 = arith.constant 0 : index
    %6 = vector.load %arg4[%c0_5, %c0_6] : memref<128x128xf32, #tpu.memory_space<vmem>>, vector<128x128xf32>
    tpu.vector_store %arg4[%c0_5, %c0_6], %5 {strides = array<i32>} : memref<128x128xf32, #tpu.memory_space<vmem>>, vector<128x128xf32>,
    return
  }
  func.func @transform_0(%arg0: i32) -> (i32, i32) {
    %c0_i32 = arith.constant 0 : i32
    %c0_i32_0 = arith.constant 0 : i32
    return %arg0, %c0_i32 : i32, i32
  }
  func.func @transform_1(%arg0: i32) -> (i32, i32) {
    %c0_i32 = arith.constant 0 : i32
    %c0_i32_0 = arith.constant 0 : i32
    %c0_i32_1 = arith.constant 0 : i32
    return %c0_i32, %c0_i32_0 : i32, i32
  }
  func.func @transform_2(%arg0: i32) -> (i32, i32) {
    %c0_i32 = arith.constant 0 : i32
    %c0_i32_0 = arith.constant 0 : i32
    %c0_i32_1 = arith.constant 0 : i32
    return %c0_i32, %c0_i32_0 : i32, i32
  }
  func.func @transform_3(%arg0: i32) -> (i32, i32) {
    %c0_i32 = arith.constant 0 : i32
    %c0_i32_0 = arith.constant 0 : i32
    return %arg0, %c0_i32 : i32, i32
  }
}

</mosaic_0001>

<bundles_post_ra>
// kernel: esnet_forward.72
= control target key start
LH: loop header
LB: loop body
LE: loop exit
PB: predicated region body
PF: predicated region fallthrough
CT: control target
= control target key end

     0   :  { %vm123_vm0 = vcmask 1041408   ;;  %vm98_vm1 = vcmask 293888   ;;  %s444_s1 = inlined_call_operand.vmem [shape: bf16[36,128], index: 1, kind: input, shape index: {}]   ;;  %s445_s0 = inlined_call_operand.vmem [shape: bf16[128,36], index: 0, kind: input, shape index: {}]   ;;  %s446_s2 = inlined_call_operand.vmem [shape: f32[1,128], index: 2, kind: input, shape index: {}]   ;;  %s447_s3 = inlined_call_operand.vmem [shape: f32[128,128], index: 3, kind: output, shape index: {}]  }
   0x1   :  { %v321_v0 = vld [vmem:[%s444_s1 + $0x10] ss:$0 sps:$4 sm:$0x33]   ;;  %v322_v1 = vld [vmem:[%s444_s1 + $0x8] sm:$0xff]   ;;  %v323_v3 = vld [vmem:[%s444_s1] sm:$0xff]  }
   0x2   :  { %319 = vmatprep.subr.msk.bf16.mxu0 %vm123_vm0, %v321_v0  ;;  %320 = vmatprep.subr.msk.bf16.mxu1 %vm123_vm0, %v321_v0  ;;  %v125_v2 = vsel %vm123_vm0, %v321_v0, 0  ;;  %v324_v4 = vld [vmem:[%s445_s0] sm:$0xff]   ;;  %v326_v6 = vld [vmem:[%s445_s0 + $0x8] sm:$0xff]   ;;  %v328_v8 = vld [vmem:[%s445_s0 + $0x10] sm:$0xff]  }
   0x3   :  { %292 = vmatpush3.bf16.msra.mxu0 %v125_v2  ;;  %316 = vmatpush3.bf16.msra.mxu1 %v125_v2  ;;  %v325_v5 = vld [vmem:[%s445_s0 + $0x20] sm:$0xff]   ;;  %v327_v7 = vld [vmem:[%s445_s0 + $0x28] sm:$0xff]   ;;  %v329_v9 = vld [vmem:[%s445_s0 + $0x30] sm:$0xff]  }
   0x4   :  { %293 = vmatprep.subr.bf16.mxu0 %v322_v1  ;;  %314 = vmatprep.subr.bf16.mxu1 %v322_v1  ;;  %v330_v10 = vld [vmem:[%s445_s0 + $0x18] sm:$0xff]   ;;  %v260_v12 = vld [vmem:[%s446_s2] ss:$0 sm:$0xff] }
   0x5   :  { %297 = vmatprep.mubr.msk.bf16.mxu0 %vm98_vm1, %v324_v4  ;;  %305 = vmatprep.mubr.msk.bf16.mxu1 %vm98_vm1, %v325_v5  ;;  %v331_v11 = vld [vmem:[%s445_s0 + $0x38] sm:$0xff]  }
   0x7   :  { %294 = vmatpush3.bf16.msra.mxu0 %v322_v1  ;;  %317 = vmatpush3.bf16.msra.mxu1 %v322_v1 }
   0x8   :  { %295 = vmatprep.subr.bf16.mxu0 %v323_v3  ;;  %315 = vmatprep.subr.bf16.mxu1 %v323_v3 }
   0xb   :  { %296 = vmatpush3.bf16.msra.mxu0 %v323_v3  ;;  %318 = vmatpush3.bf16.msra.mxu1 %v323_v3 }
   0xe   :  { %298 = vmatmul.mubr.msk.bf16.vlgmr.msra.gmra.mxu0 %vm98_vm1, %v326_v6  ;;  %306 = vmatmul.mubr.msk.bf16.vlgmr.msra.gmra.mxu1 %vm98_vm1, %v327_v7 }
   0xf   :  { %301 = vmatprep.mubr.msk.bf16.mxu0 %vm98_vm1, %v328_v8  ;;  %309 = vmatprep.mubr.msk.bf16.mxu1 %vm98_vm1, %v329_v9 }
  0x16   :  { %302 = vmatmul.mubr.msk.bf16.gmra.mxu0 %vm98_vm1, %v330_v10  ;;  %310 = vmatmul.mubr.msk.bf16.gmra.mxu1 %vm98_vm1, %v331_v11 }
  0xce   :  { %v299_v13 = vpop.f32.mrf.mxu0  ;;  %v307_v14 = vpop.f32.mrf.mxu1 }
  0xcf   :  { %v170_v15 = vadd.f32 %v299_v13, %v260_v12  ;;  %v202_v16 = vadd.f32 %v307_v14, %v260_v12 }
  0xd0   :  { %v161_v17 = vpop.f32.mrf.mxu0  ;;  %v193_v18 = vpop.f32.mrf.mxu1 }
  0xd1   :  { %v226_v19 = vmax.f32 %v170_v15, 0.0  ;;  %v234_v20 = vmax.f32 %v202_v16, 0.0  ;;  %v162_v21 = vadd.f32 %v260_v12, %v161_v17  ;;  %v194_v22 = vadd.f32 %v260_v12, %v193_v18 }
  0xd2   :  { %v300_v23 = vpop.f32.mrf.mxu0  ;;  %v308_v24 = vpop.f32.mrf.mxu1 }
  0xd3   :  { %242 = vst [vmem:[%s447_s3 + $0x10] sm:$0xff] %v226_v19  ;;  %250 = vst [vmem:[%s447_s3 + $0x50] sm:$0xff] %v234_v20  ;;  %v224_v25 = vmax.f32 %v162_v21, 0.0  ;;  %v232_v26 = vmax.f32 %v194_v22, 0.0  ;;  %v173_v27 = vadd.f32 %v300_v23, %v260_v12  ;;  %v205_v28 = vadd.f32 %v308_v24, %v260_v12 }
  0xd4   :  { %v164_v29 = vpop.f32.mrf.mxu0  ;;  %v196_v30 = vpop.f32.mrf.mxu1 }
  0xd5   :  { %240 = vst [vmem:[%s447_s3] sm:$0xff] %v224_v25  ;;  %248 = vst [vmem:[%s447_s3 + $0x40] sm:$0xff] %v232_v26  ;;  %v227_v31 = vmax.f32 %v173_v27, 0.0  ;;  %v235_v32 = vmax.f32 %v205_v28, 0.0  ;;  %v165_v33 = vadd.f32 %v260_v12, %v164_v29  ;;  %v197_v34 = vadd.f32 %v260_v12, %v196_v30 }
  0xd6   :  { %v303_v35 = vpop.f32.mrf.mxu0  ;;  %v311_v36 = vpop.f32.mrf.mxu1 }
  0xd7   :  { %243 = vst [vmem:[%s447_s3 + $0x18] sm:$0xff] %v227_v31  ;;  %251 = vst [vmem:[%s447_s3 + $0x58] sm:$0xff] %v235_v32  ;;  %v225_v37 = vmax.f32 %v165_v33, 0.0  ;;  %v233_v38 = vmax.f32 %v197_v34, 0.0  ;;  %v186_v39 = vadd.f32 %v303_v35, %v260_v12  ;;  %v218_v40 = vadd.f32 %v311_v36, %v260_v12 }
  0xd8   :  { %v177_v41 = vpop.f32.mrf.mxu0  ;;  %v209_v42 = vpop.f32.mrf.mxu1 }
  0xd9   :  { %241 = vst [vmem:[%s447_s3 + $0x8] sm:$0xff] %v225_v37  ;;  %249 = vst [vmem:[%s447_s3 + $0x48] sm:$0xff] %v233_v38  ;;  %v230_v43 = vmax.f32 %v186_v39, 0.0  ;;  %v238_v44 = vmax.f32 %v218_v40, 0.0  ;;  %v178_v45 = vadd.f32 %v260_v12, %v177_v41  ;;  %v210_v46 = vadd.f32 %v260_v12, %v209_v42 }
  0xda   :  { %v304_v47 = vpop.f32.mrf.mxu0  ;;  %v312_v48 = vpop.f32.mrf.mxu1 }
  0xdb   :  { %246 = vst [vmem:[%s447_s3 + $0x30] sm:$0xff] %v230_v43  ;;  %254 = vst [vmem:[%s447_s3 + $0x70] sm:$0xff] %v238_v44  ;;  %v228_v49 = vmax.f32 %v178_v45, 0.0  ;;  %v236_v50 = vmax.f32 %v210_v46, 0.0  ;;  %v189_v51 = vadd.f32 %v304_v47, %v260_v12  ;;  %v221_v52 = vadd.f32 %v312_v48, %v260_v12 }
  0xdc   :  { %v180_v53 = vpop.f32.mrf.mxu0  ;;  %v212_v54 = vpop.f32.mrf.mxu1 }
  0xdd   :  { %244 = vst [vmem:[%s447_s3 + $0x20] sm:$0xff] %v228_v49  ;;  %252 = vst [vmem:[%s447_s3 + $0x60] sm:$0xff] %v236_v50  ;;  %v231_v55 = vmax.f32 %v189_v51, 0.0  ;;  %v239_v56 = vmax.f32 %v221_v52, 0.0  ;;  %v181_v57 = vadd.f32 %v260_v12, %v180_v53  ;;  %v213_v58 = vadd.f32 %v260_v12, %v212_v54 }
  0xdf   :  { %247 = vst [vmem:[%s447_s3 + $0x38] sm:$0xff] %v231_v55  ;;  %255 = vst [vmem:[%s447_s3 + $0x78] sm:$0xff] %v239_v56  ;;  %v229_v59 = vmax.f32 %v181_v57, 0.0  ;;  %v237_v60 = vmax.f32 %v213_v58, 0.0 }
  0xe1   :  { %245 = vst [vmem:[%s447_s3 + $0x28] sm:$0xff] %v229_v59  ;;  %253 = vst [vmem:[%s447_s3 + $0x68] sm:$0xff] %v237_v60 }

// kernel: esnet_forward.73
= control target key start
LH: loop header
LB: loop body
LE: loop exit
PB: predicated region body
PF: predicated region fallthrough
CT: control target
= control target key end

     0   :  { %vm102_vm0 = vcmask 392192   ;;  %s442_s1 = inlined_call_operand.vmem [shape: bf16[48,128], index: 1, kind: input, shape index: {}]   ;;  %s443_s0 = inlined_call_operand.vmem [shape: bf16[128,48], index: 0, kind: input, shape index: {}]   ;;  %s444_s2 = inlined_call_operand.vmem [shape: f32[1,128], index: 2, kind: input, shape index: {}]   ;;  %s445_s3 = inlined_call_operand.vmem [shape: f32[128,128], index: 3, kind: output, shape index: {}]  }
   0x1   :  { %v319_v0 = vld [vmem:[%s442_s1 + $0x10] sm:$0xff]   ;;  %v320_v1 = vld [vmem:[%s442_s1 + $0x8] sm:$0xff]   ;;  %v321_v2 = vld [vmem:[%s442_s1] sm:$0xff]  }
   0x2   :  { %291 = vmatprep.subr.bf16.mxu0 %v319_v0  ;;  %313 = vmatprep.subr.bf16.mxu1 %v319_v0  ;;  %v322_v3 = vld [vmem:[%s443_s0] sm:$0xff]   ;;  %v324_v5 = vld [vmem:[%s443_s0 + $0x8] sm:$0xff]   ;;  %v326_v7 = vld [vmem:[%s443_s0 + $0x10] sm:$0xff]  }
   0x3   :  { %292 = vmatpush3.bf16.msra.mxu0 %v319_v0  ;;  %316 = vmatpush3.bf16.msra.mxu1 %v319_v0  ;;  %v323_v4 = vld [vmem:[%s443_s0 + $0x20] sm:$0xff]   ;;  %v325_v6 = vld [vmem:[%s443_s0 + $0x28] sm:$0xff]   ;;  %v327_v8 = vld [vmem:[%s443_s0 + $0x30] sm:$0xff]  }
   0x4   :  { %293 = vmatprep.subr.bf16.mxu0 %v320_v1  ;;  %314 = vmatprep.subr.bf16.mxu1 %v320_v1  ;;  %v328_v9 = vld [vmem:[%s443_s0 + $0x18] sm:$0xff]   ;;  %v260_v11 = vld [vmem:[%s444_s2] ss:$0 sm:$0xff] }
   0x5   :  { %297 = vmatprep.mubr.msk.bf16.mxu0 %vm102_vm0, %v322_v3  ;;  %305 = vmatprep.mubr.msk.bf16.mxu1 %vm102_vm0, %v323_v4  ;;  %v329_v10 = vld [vmem:[%s443_s0 + $0x38] sm:$0xff]  }
   0x7   :  { %294 = vmatpush3.bf16.msra.mxu0 %v320_v1  ;;  %317 = vmatpush3.bf16.msra.mxu1 %v320_v1 }
   0x8   :  { %295 = vmatprep.subr.bf16.mxu0 %v321_v2  ;;  %315 = vmatprep.subr.bf16.mxu1 %v321_v2 }
   0xb   :  { %296 = vmatpush3.bf16.msra.mxu0 %v321_v2  ;;  %318 = vmatpush3.bf16.msra.mxu1 %v321_v2 }
   0xe   :  { %298 = vmatmul.mubr.msk.bf16.vlgmr.msra.gmra.mxu0 %vm102_vm0, %v324_v5  ;;  %306 = vmatmul.mubr.msk.bf16.vlgmr.msra.gmra.mxu1 %vm102_vm0, %v325_v6 }
   0xf   :  { %301 = vmatprep.mubr.msk.bf16.mxu0 %vm102_vm0, %v326_v7  ;;  %309 = vmatprep.mubr.msk.bf16.mxu1 %vm102_vm0, %v327_v8 }
  0x16   :  { %302 = vmatmul.mubr.msk.bf16.gmra.mxu0 %vm102_vm0, %v328_v9  ;;  %310 = vmatmul.mubr.msk.bf16.gmra.mxu1 %vm102_vm0, %v329_v10 }
  0xce   :  { %v299_v12 = vpop.f32.mrf.mxu0  ;;  %v307_v13 = vpop.f32.mrf.mxu1 }
  0xcf   :  { %v170_v14 = vadd.f32 %v299_v12, %v260_v11  ;;  %v202_v15 = vadd.f32 %v307_v13, %v260_v11 }
  0xd0   :  { %v161_v16 = vpop.f32.mrf.mxu0  ;;  %v193_v17 = vpop.f32.mrf.mxu1 }
  0xd1   :  { %v226_v18 = vmax.f32 %v170_v14, 0.0  ;;  %v234_v19 = vmax.f32 %v202_v15, 0.0  ;;  %v162_v20 = vadd.f32 %v260_v11, %v161_v16  ;;  %v194_v21 = vadd.f32 %v260_v11, %v193_v17 }
  0xd2   :  { %v300_v22 = vpop.f32.mrf.mxu0  ;;  %v308_v23 = vpop.f32.mrf.mxu1 }
  0xd3   :  { %242 = vst [vmem:[%s445_s3 + $0x10] sm:$0xff] %v226_v18  ;;  %250 = vst [vmem:[%s445_s3 + $0x50] sm:$0xff] %v234_v19  ;;  %v224_v24 = vmax.f32 %v162_v20, 0.0  ;;  %v232_v25 = vmax.f32 %v194_v21, 0.0  ;;  %v173_v26 = vadd.f32 %v300_v22, %v260_v11  ;;  %v205_v27 = vadd.f32 %v308_v23, %v260_v11 }
  0xd4   :  { %v164_v28 = vpop.f32.mrf.mxu0  ;;  %v196_v29 = vpop.f32.mrf.mxu1 }
  0xd5   :  { %240 = vst [vmem:[%s445_s3] sm:$0xff] %v224_v24  ;;  %248 = vst [vmem:[%s445_s3 + $0x40] sm:$0xff] %v232_v25  ;;  %v227_v30 = vmax.f32 %v173_v26, 0.0  ;;  %v235_v31 = vmax.f32 %v205_v27, 0.0  ;;  %v165_v32 = vadd.f32 %v260_v11, %v164_v28  ;;  %v197_v33 = vadd.f32 %v260_v11, %v196_v29 }
  0xd6   :  { %v303_v34 = vpop.f32.mrf.mxu0  ;;  %v311_v35 = vpop.f32.mrf.mxu1 }
  0xd7   :  { %243 = vst [vmem:[%s445_s3 + $0x18] sm:$0xff] %v227_v30  ;;  %251 = vst [vmem:[%s445_s3 + $0x58] sm:$0xff] %v235_v31  ;;  %v225_v36 = vmax.f32 %v165_v32, 0.0  ;;  %v233_v37 = vmax.f32 %v197_v33, 0.0  ;;  %v186_v38 = vadd.f32 %v303_v34, %v260_v11  ;;  %v218_v39 = vadd.f32 %v311_v35, %v260_v11 }
  0xd8   :  { %v177_v40 = vpop.f32.mrf.mxu0  ;;  %v209_v41 = vpop.f32.mrf.mxu1 }
  0xd9   :  { %241 = vst [vmem:[%s445_s3 + $0x8] sm:$0xff] %v225_v36  ;;  %249 = vst [vmem:[%s445_s3 + $0x48] sm:$0xff] %v233_v37  ;;  %v230_v42 = vmax.f32 %v186_v38, 0.0  ;;  %v238_v43 = vmax.f32 %v218_v39, 0.0  ;;  %v178_v44 = vadd.f32 %v260_v11, %v177_v40  ;;  %v210_v45 = vadd.f32 %v260_v11, %v209_v41 }
  0xda   :  { %v304_v46 = vpop.f32.mrf.mxu0  ;;  %v312_v47 = vpop.f32.mrf.mxu1 }
  0xdb   :  { %246 = vst [vmem:[%s445_s3 + $0x30] sm:$0xff] %v230_v42  ;;  %254 = vst [vmem:[%s445_s3 + $0x70] sm:$0xff] %v238_v43  ;;  %v228_v48 = vmax.f32 %v178_v44, 0.0  ;;  %v236_v49 = vmax.f32 %v210_v45, 0.0  ;;  %v189_v50 = vadd.f32 %v304_v46, %v260_v11  ;;  %v221_v51 = vadd.f32 %v312_v47, %v260_v11 }
  0xdc   :  { %v180_v52 = vpop.f32.mrf.mxu0  ;;  %v212_v53 = vpop.f32.mrf.mxu1 }
  0xdd   :  { %244 = vst [vmem:[%s445_s3 + $0x20] sm:$0xff] %v228_v48  ;;  %252 = vst [vmem:[%s445_s3 + $0x60] sm:$0xff] %v236_v49  ;;  %v231_v54 = vmax.f32 %v189_v50, 0.0  ;;  %v239_v55 = vmax.f32 %v221_v51, 0.0  ;;  %v181_v56 = vadd.f32 %v260_v11, %v180_v52  ;;  %v213_v57 = vadd.f32 %v260_v11, %v212_v53 }
  0xdf   :  { %247 = vst [vmem:[%s445_s3 + $0x38] sm:$0xff] %v231_v54  ;;  %255 = vst [vmem:[%s445_s3 + $0x78] sm:$0xff] %v239_v55  ;;  %v229_v58 = vmax.f32 %v181_v56, 0.0  ;;  %v237_v59 = vmax.f32 %v213_v57, 0.0 }
  0xe1   :  { %245 = vst [vmem:[%s445_s3 + $0x28] sm:$0xff] %v229_v58  ;;  %253 = vst [vmem:[%s445_s3 + $0x68] sm:$0xff] %v237_v59 }

// kernel: esnet_forward.76
= control target key start
LH: loop header
LB: loop body
LE: loop exit
PB: predicated region body
PF: predicated region fallthrough
CT: control target
= control target key end

     0   :  { %vm105_vm0 = vcmask 392192   ;;  %s548_s1 = inlined_call_operand.vmem [shape: bf16[48,128], index: 1, kind: input, shape index: {}]   ;;  %s549_s0 = inlined_call_operand.vmem [shape: bf16[128,48], index: 0, kind: input, shape index: {}]   ;;  %s550_s2 = inlined_call_operand.vmem [shape: f32[1,128], index: 2, kind: input, shape index: {}]   ;;  %s551_s3 = inlined_call_operand.vmem [shape: f32[128,128], index: 3, kind: input, shape index: {}]   ;;  %s552_s4 = inlined_call_operand.vmem [shape: f32[128,128], index: 4, kind: output, shape index: {}]  }
   0x1   :  { %v354_v0 = vld [vmem:[%s548_s1 + $0x10] sm:$0xff]   ;;  %v355_v1 = vld [vmem:[%s548_s1 + $0x8] sm:$0xff]   ;;  %v356_v2 = vld [vmem:[%s548_s1] sm:$0xff]  }
   0x2   :  { %326 = vmatprep.subr.bf16.mxu0 %v354_v0  ;;  %348 = vmatprep.subr.bf16.mxu1 %v354_v0  ;;  %v357_v3 = vld [vmem:[%s549_s0] sm:$0xff]   ;;  %v359_v5 = vld [vmem:[%s549_s0 + $0x8] sm:$0xff]   ;;  %v361_v7 = vld [vmem:[%s549_s0 + $0x10] sm:$0xff]  }
   0x3   :  { %327 = vmatpush3.bf16.msra.mxu0 %v354_v0  ;;  %351 = vmatpush3.bf16.msra.mxu1 %v354_v0  ;;  %v358_v4 = vld [vmem:[%s549_s0 + $0x20] sm:$0xff]   ;;  %v360_v6 = vld [vmem:[%s549_s0 + $0x28] sm:$0xff]   ;;  %v362_v8 = vld [vmem:[%s549_s0 + $0x30] sm:$0xff]  }
   0x4   :  { %328 = vmatprep.subr.bf16.mxu0 %v355_v1  ;;  %349 = vmatprep.subr.bf16.mxu1 %v355_v1  ;;  %v363_v9 = vld [vmem:[%s549_s0 + $0x18] sm:$0xff]   ;;  %v434_v11 = vld [vmem:[%s550_s2] ss:$0 sm:$0xff]  ;;  %v229_v13 = vld [vmem:[%s551_s3 + $0x10] sm:$0xff] }
   0x5   :  { %332 = vmatprep.mubr.msk.bf16.mxu0 %vm105_vm0, %v357_v3  ;;  %340 = vmatprep.mubr.msk.bf16.mxu1 %vm105_vm0, %v358_v4  ;;  %v364_v10 = vld [vmem:[%s549_s0 + $0x38] sm:$0xff]   ;;  %v237_v15 = vld [vmem:[%s551_s3 + $0x50] sm:$0xff]  ;;  %v227_v19 = vld [vmem:[%s551_s3] sm:$0xff] }
   0x6   :  { %v235_v21 = vld [vmem:[%s551_s3 + $0x40] sm:$0xff]  ;;  %v230_v32 = vld [vmem:[%s551_s3 + $0x18] sm:$0xff]  ;;  %v228_v37 = vld [vmem:[%s551_s3 + $0x8] sm:$0xff] }
   0x7   :  { %329 = vmatpush3.bf16.msra.mxu0 %v355_v1  ;;  %352 = vmatpush3.bf16.msra.mxu1 %v355_v1  ;;  %v238_v33 = vld [vmem:[%s551_s3 + $0x58] sm:$0xff]  ;;  %v236_v39 = vld [vmem:[%s551_s3 + $0x48] sm:$0xff]  ;;  %v233_v47 = vld [vmem:[%s551_s3 + $0x30] sm:$0xff] }
   0x8   :  { %330 = vmatprep.subr.bf16.mxu0 %v356_v2  ;;  %350 = vmatprep.subr.bf16.mxu1 %v356_v2  ;;  %v241_v49 = vld [vmem:[%s551_s3 + $0x70] sm:$0xff]  ;;  %v231_v62 = vld [vmem:[%s551_s3 + $0x20] sm:$0xff]  ;;  %v234_v3 = vld [vmem:[%s551_s3 + $0x38] sm:$0xff] }
   0x9   :  { %v239_v63 = vld [vmem:[%s551_s3 + $0x60] sm:$0xff] }
   0xb   :  { %331 = vmatpush3.bf16.msra.mxu0 %v356_v2  ;;  %353 = vmatpush3.bf16.msra.mxu1 %v356_v2 }
   0xe   :  { %333 = vmatmul.mubr.msk.bf16.vlgmr.msra.gmra.mxu0 %vm105_vm0, %v359_v5  ;;  %341 = vmatmul.mubr.msk.bf16.vlgmr.msra.gmra.mxu1 %vm105_vm0, %v360_v6  ;;  %v242_v5 = vld [vmem:[%s551_s3 + $0x78] sm:$0xff] }
   0xf   :  { %336 = vmatprep.mubr.msk.bf16.mxu0 %vm105_vm0, %v361_v7  ;;  %344 = vmatprep.mubr.msk.bf16.mxu1 %vm105_vm0, %v362_v8 }
  0x16   :  { %337 = vmatmul.mubr.msk.bf16.gmra.mxu0 %vm105_vm0, %v363_v9  ;;  %345 = vmatmul.mubr.msk.bf16.gmra.mxu1 %vm105_vm0, %v364_v10 }
  0xce   :  { %v334_v12 = vpop.f32.mrf.mxu0  ;;  %v342_v14 = vpop.f32.mrf.mxu1 }
  0xcf   :  { %v173_v16 = vadd.f32 %v334_v12, %v434_v11  ;;  %v205_v17 = vadd.f32 %v342_v14, %v434_v11  ;;  %v232_v14 = vld [vmem:[%s551_s3 + $0x28] sm:$0xff] }
  0xd0   :  { %v164_v18 = vpop.f32.mrf.mxu0  ;;  %v196_v20 = vpop.f32.mrf.mxu1 }
  0xd1   :  { %v245_v22 = vadd.f32 %v229_v13, %v173_v16  ;;  %v253_v23 = vadd.f32 %v237_v15, %v205_v17  ;;  %v165_v24 = vadd.f32 %v434_v11, %v164_v18  ;;  %v197_v25 = vadd.f32 %v434_v11, %v196_v20  ;;  %v240_v16 = vld [vmem:[%s551_s3 + $0x68] sm:$0xff] }
  0xd2   :  { %v335_v26 = vpop.f32.mrf.mxu0  ;;  %v343_v27 = vpop.f32.mrf.mxu1 }
  0xd3   :  { %v261_v28 = vmax.f32 %v245_v22, 0.0  ;;  %v269_v29 = vmax.f32 %v253_v23, 0.0  ;;  %v243_v30 = vadd.f32 %v227_v19, %v165_v24  ;;  %v251_v31 = vadd.f32 %v235_v21, %v197_v25 }
  0xd4   :  { %v176_v34 = vadd.f32 %v335_v26, %v434_v11  ;;  %v208_v35 = vadd.f32 %v343_v27, %v434_v11  ;;  %v167_v36 = vpop.f32.mrf.mxu0  ;;  %v199_v38 = vpop.f32.mrf.mxu1 }
  0xd5   :  { %277 = vst [vmem:[%s552_s4 + $0x10] sm:$0xff] %v261_v28  ;;  %285 = vst [vmem:[%s552_s4 + $0x50] sm:$0xff] %v269_v29  ;;  %v259_v40 = vmax.f32 %v243_v30, 0.0  ;;  %v267_v41 = vmax.f32 %v251_v31, 0.0  ;;  %v168_v42 = vadd.f32 %v434_v11, %v167_v36  ;;  %v200_v43 = vadd.f32 %v434_v11, %v199_v38 }
  0xd6   :  { %v246_v44 = vadd.f32 %v230_v32, %v176_v34  ;;  %v254_v45 = vadd.f32 %v238_v33, %v208_v35  ;;  %v338_v46 = vpop.f32.mrf.mxu0  ;;  %v346_v48 = vpop.f32.mrf.mxu1 }
  0xd7   :  { %275 = vst [vmem:[%s552_s4] sm:$0xff] %v259_v40  ;;  %283 = vst [vmem:[%s552_s4 + $0x40] sm:$0xff] %v267_v41  ;;  %v244_v50 = vadd.f32 %v228_v37, %v168_v42  ;;  %v252_v51 = vadd.f32 %v236_v39, %v200_v43  ;;  %v189_v52 = vadd.f32 %v338_v46, %v434_v11 }
  0xd8   :  { %v221_v53 = vadd.f32 %v346_v48, %v434_v11  ;;  %v262_v54 = vmax.f32 %v246_v44, 0.0  ;;  %v270_v55 = vmax.f32 %v254_v45, 0.0  ;;  %v180_v56 = vpop.f32.mrf.mxu0  ;;  %v212_v57 = vpop.f32.mrf.mxu1 }
  0xd9   :  { %v260_v58 = vmax.f32 %v244_v50, 0.0  ;;  %v268_v59 = vmax.f32 %v252_v51, 0.0  ;;  %v249_v60 = vadd.f32 %v233_v47, %v189_v52  ;;  %v181_v0 = vadd.f32 %v434_v11, %v180_v56 }
  0xda   :  { %v257_v61 = vadd.f32 %v241_v49, %v221_v53  ;;  %278 = vst [vmem:[%s552_s4 + $0x18] sm:$0xff] %v262_v54  ;;  %286 = vst [vmem:[%s552_s4 + $0x58] sm:$0xff] %v270_v55  ;;  %v213_v1 = vadd.f32 %v434_v11, %v212_v57  ;;  %v339_v2 = vpop.f32.mrf.mxu0  ;;  %v347_v4 = vpop.f32.mrf.mxu1 }
  0xdb   :  { %276 = vst [vmem:[%s552_s4 + $0x8] sm:$0xff] %v260_v58  ;;  %284 = vst [vmem:[%s552_s4 + $0x48] sm:$0xff] %v268_v59  ;;  %v265_v6 = vmax.f32 %v249_v60, 0.0  ;;  %v192_v8 = vadd.f32 %v339_v2, %v434_v11  ;;  %v224_v9 = vadd.f32 %v347_v4, %v434_v11  ;;  %v247_v10 = vadd.f32 %v231_v62, %v181_v0 }
  0xdc   :  { %v273_v7 = vmax.f32 %v257_v61, 0.0  ;;  %v255_v12 = vadd.f32 %v239_v63, %v213_v1  ;;  %v183_v13 = vpop.f32.mrf.mxu0  ;;  %v215_v15 = vpop.f32.mrf.mxu1 }
  0xdd   :  { %281 = vst [vmem:[%s552_s4 + $0x30] sm:$0xff] %v265_v6  ;;  %v250_v17 = vadd.f32 %v234_v3, %v192_v8  ;;  %v258_v18 = vadd.f32 %v242_v5, %v224_v9  ;;  %v184_v19 = vadd.f32 %v434_v11, %v183_v13  ;;  %v216_v20 = vadd.f32 %v434_v11, %v215_v15 }
  0xde   :  { %289 = vst [vmem:[%s552_s4 + $0x70] sm:$0xff] %v273_v7  ;;  %v263_v21 = vmax.f32 %v247_v10, 0.0  ;;  %v271_v22 = vmax.f32 %v255_v12, 0.0 }
  0xdf   :  { %v266_v23 = vmax.f32 %v250_v17, 0.0  ;;  %v274_v24 = vmax.f32 %v258_v18, 0.0  ;;  %v248_v25 = vadd.f32 %v232_v14, %v184_v19  ;;  %v256_v26 = vadd.f32 %v240_v16, %v216_v20 }
  0xe0   :  { %279 = vst [vmem:[%s552_s4 + $0x20] sm:$0xff] %v263_v21  ;;  %287 = vst [vmem:[%s552_s4 + $0x60] sm:$0xff] %v271_v22 }
  0xe1   :  { %282 = vst [vmem:[%s552_s4 + $0x38] sm:$0xff] %v266_v23  ;;  %290 = vst [vmem:[%s552_s4 + $0x78] sm:$0xff] %v274_v24  ;;  %v264_v11 = vmax.f32 %v248_v25, 0.0  ;;  %v272_v27 = vmax.f32 %v256_v26, 0.0 }
  0xe3   :  { %280 = vst [vmem:[%s552_s4 + $0x28] sm:$0xff] %v264_v11  ;;  %288 = vst [vmem:[%s552_s4 + $0x68] sm:$0xff] %v272_v27 }

// kernel: esnet_forward.85
= control target key start
LH: loop header
LB: loop body
LE: loop exit
PB: predicated region body
PF: predicated region fallthrough
CT: control target
= control target key end

     0   :  { %v234_v0 = vmov 0   ;;  %vm116_vm0 = vcmask 130048   ;;  %s309_s1 = inlined_call_operand.vmem [shape: bf16[144,128], index: 1, kind: input, shape index: {}]   ;;  %s310_s0 = inlined_call_operand.vmem [shape: bf16[32,144], index: 0, kind: input, shape index: {}]   ;;  %s311_s2 = inlined_call_operand.vmem [shape: f32[1,128], index: 2, kind: input, shape index: {}]   ;;  %s312_s3 = inlined_call_operand.vmem [shape: f32[32,128], index: 3, kind: output, shape index: {}]  }
   0x1   :  { %123 = vmatprep.subr.bf16.mxu0 %v234_v0  ;;  %200 = vmatprep.subr.bf16.mxu1 %v234_v0  ;;  %v219_v1 = vld [vmem:[%s309_s1 + $0x38] sm:$0xff]   ;;  %v220_v2 = vld [vmem:[%s309_s1 + $0x30] sm:$0xff]   ;;  %v221_v3 = vld [vmem:[%s309_s1 + $0x28] sm:$0xff]  }
   0x2   :  { %124 = vmatpush1.bf16.msra.mxu0 %v219_v1  ;;  %209 = vmatpush1.bf16.msra.mxu1 %v219_v1  ;;  %v222_v4 = vld [vmem:[%s309_s1 + $0x20] sm:$0xff]   ;;  %v233_v6 = vld [vmem:[%s310_s0 + $0x14] ss:$8 sps:$4 sm:$0xff]   ;;  %v225_v9 = vld [vmem:[%s309_s1 + $0x8] sm:$0xff]  }
   0x3   :  { %125 = vmatprep.subr.bf16.mxu0 %v234_v0  ;;  %201 = vmatprep.subr.bf16.mxu1 %v234_v0  ;;  %v230_v5 = vld [vmem:[%s310_s0 + $0x4] ss:$8 sps:$4 sm:$0xff]   ;;  %v223_v7 = vld [vmem:[%s309_s1 + $0x18] sm:$0xff]   ;;  %v224_v8 = vld [vmem:[%s309_s1 + $0x10] sm:$0xff]  }
   0x4   :  { %198 = vmatprep.mubr.msk.bf16.mxu0 %vm116_vm0, %v230_v5  ;;  %199 = vmatprep.mubr.msk.bf16.mxu1 %vm116_vm0, %v233_v6  ;;  %v226_v10 = vld [vmem:[%s309_s1] sm:$0xff]   ;;  %v231_v13 = vld [vmem:[%s310_s0 + $0x10] ss:$8 sps:$4 sm:$0xff]  }
   0x5   :  { %v227_v11 = vld [vmem:[%s309_s1 + $0x40] sm:$0xff]  }
   0x6   :  { %126 = vmatpush1.bf16.msra.mxu0 %v220_v2  ;;  %210 = vmatpush1.bf16.msra.mxu1 %v220_v2  ;;  %v228_v12 = vld [vmem:[%s310_s0] ss:$8 sps:$4 sm:$0xff]  }
   0x7   :  { %127 = vmatprep.subr.bf16.mxu0 %v234_v0  ;;  %202 = vmatprep.subr.bf16.mxu1 %v234_v0  ;;  %v184_v14 = vld [vmem:[%s311_s2] ss:$0 sm:$0xff] }
   0xa   :  { %128 = vmatpush1.bf16.msra.mxu0 %v221_v3  ;;  %211 = vmatpush1.bf16.msra.mxu1 %v221_v3 }
   0xb   :  { %129 = vmatprep.subr.bf16.mxu0 %v234_v0  ;;  %203 = vmatprep.subr.bf16.mxu1 %v234_v0 }
   0xe   :  { %130 = vmatpush1.bf16.msra.mxu0 %v222_v4  ;;  %212 = vmatpush1.bf16.msra.mxu1 %v222_v4 }
   0xf   :  { %131 = vmatprep.subr.bf16.mxu0 %v234_v0  ;;  %204 = vmatprep.subr.bf16.mxu1 %v234_v0 }
  0x12   :  { %132 = vmatpush1.bf16.msra.mxu0 %v223_v7  ;;  %213 = vmatpush1.bf16.msra.mxu1 %v223_v7 }
  0x13   :  { %133 = vmatprep.subr.bf16.mxu0 %v234_v0  ;;  %205 = vmatprep.subr.bf16.mxu1 %v234_v0 }
  0x16   :  { %134 = vmatpush1.bf16.msra.mxu0 %v224_v8  ;;  %214 = vmatpush1.bf16.msra.mxu1 %v224_v8 }
  0x17   :  { %135 = vmatprep.subr.bf16.mxu0 %v234_v0  ;;  %206 = vmatprep.subr.bf16.mxu1 %v234_v0 }
  0x1a   :  { %136 = vmatpush1.bf16.msra.mxu0 %v225_v9  ;;  %215 = vmatpush1.bf16.msra.mxu1 %v225_v9 }
  0x1b   :  { %137 = vmatprep.subr.bf16.mxu0 %v234_v0  ;;  %207 = vmatprep.subr.bf16.mxu1 %v234_v0 }
  0x1e   :  { %138 = vmatpush1.bf16.msra.mxu0 %v226_v10  ;;  %216 = vmatpush1.bf16.msra.mxu1 %v226_v10 }
  0x1f   :  { %153 = vmatprep.subr.bf16.mxu0 %v234_v0  ;;  %208 = vmatprep.subr.bf16.mxu1 %v234_v0 }
  0x22   :  { %154 = vmatpush2.bf16.msra.mxu0 %v227_v11  ;;  %217 = vmatpush2.bf16.msra.mxu1 %v227_v11 }
  0x25   :  { %156 = vmatmul.mubr.bf16.vlgmr.msra.gmra.mxu0 %v228_v12  ;;  %164 = vmatmul.mubr.bf16.vlgmr.msra.gmra.mxu1 %v231_v13 }
  0xe5   :  { %v157_v15 = vpop.f32.mrf.mxu0  ;;  %v165_v16 = vpop.f32.mrf.mxu1 }
  0xe6   :  { %v158_v17 = vadd.f32 %v184_v14, %v157_v15  ;;  %v166_v18 = vadd.f32 %v184_v14, %v165_v16 }
  0xe7   :  { %v159_v19 = vpop.f32.mrf.mxu0  ;;  %v167_v20 = vpop.f32.mrf.mxu1 }
  0xe8   :  { %v172_v21 = vmax.f32 %v158_v17, 0.0  ;;  %v174_v22 = vmax.f32 %v166_v18, 0.0 }
  0xe9   :  { %v160_v23 = vpop.f32.mrf.mxu0  ;;  %v168_v24 = vpop.f32.mrf.mxu1 }
  0xea   :  { %176 = vst [vmem:[%s312_s3] sm:$0xff] %v172_v21  ;;  %178 = vst [vmem:[%s312_s3 + $0x10] sm:$0xff] %v174_v22  ;;  %v161_v25 = vadd.f32 %v184_v14, %v160_v23  ;;  %v169_v26 = vadd.f32 %v184_v14, %v168_v24 }
  0xeb   :  { %v162_v27 = vpop.f32.mrf.mxu0  ;;  %v170_v28 = vpop.f32.mrf.mxu1 }
  0xec   :  { %v173_v29 = vmax.f32 %v161_v25, 0.0  ;;  %v175_v30 = vmax.f32 %v169_v26, 0.0 }
  0xee   :  { %177 = vst [vmem:[%s312_s3 + $0x8] sm:$0xff] %v173_v29  ;;  %179 = vst [vmem:[%s312_s3 + $0x18] sm:$0xff] %v175_v30 }

// kernel: esnet_forward.86
= control target key start
LH: loop header
LB: loop body
LE: loop exit
PB: predicated region body
PF: predicated region fallthrough
CT: control target
= control target key end

     0   :  { %vm220_vm0 = vcmask 523264   ;;  %s553_s1 = inlined_call_operand.vmem [shape: bf16[320,128], index: 1, kind: input, shape index: {}]   ;;  %s554_s0 = inlined_call_operand.vmem [shape: bf16[32,320], index: 0, kind: input, shape index: {}]   ;;  %s555_s2 = inlined_call_operand.vmem [shape: f32[1,128], index: 2, kind: input, shape index: {}]   ;;  %s556_s3 = inlined_call_operand.vmem [shape: f32[32,128], index: 3, kind: output, shape index: {}]  }
   0x1   :  { %v412_v0 = vld [vmem:[%s553_s1 + $0x78] sm:$0xff]   ;;  %v414_v2 = vld [vmem:[%s553_s1 + $0x70] sm:$0xff]   ;;  %v416_v4 = vld [vmem:[%s553_s1 + $0x68] sm:$0xff]  }
   0x2   :  { %v413_v1 = vld [vmem:[%s553_s1 + $0x38] sm:$0xff]   ;;  %366 = vmatprep.subr.bf16.mxu0 %v412_v0  ;;  %v415_v3 = vld [vmem:[%s553_s1 + $0x30] sm:$0xff]   ;;  %v417_v5 = vld [vmem:[%s553_s1 + $0x28] sm:$0xff]  }
   0x3   :  { %367 = vmatpush3.bf16.msra.mxu0 %v413_v1  ;;  %v418_v6 = vld [vmem:[%s553_s1 + $0x60] sm:$0xff]   ;;  %v423_v8 = vld [vmem:[%s553_s1 + $0x98] sm:$0xff]   ;;  %v426_v10 = vld [vmem:[%s553_s1 + $0x90] sm:$0xff]  }
   0x4   :  { %368 = vmatprep.subr.bf16.mxu0 %v414_v2  ;;  %v419_v7 = vld [vmem:[%s553_s1 + $0x20] sm:$0xff]   ;;  %v420_v9 = vld [vmem:[%s553_s1 + $0x58] sm:$0xff]   ;;  %400 = vmatprep.subr.bf16.mxu1 %v423_v8  ;;  %v422_v12 = vld [vmem:[%s553_s1 + $0x50] sm:$0xff]  }
   0x5   :  { %401 = vmatpush3.bf16.msra.mxu1 %v423_v8  ;;  %v421_v11 = vld [vmem:[%s553_s1 + $0x18] sm:$0xff]   ;;  %v429_v13 = vld [vmem:[%s553_s1 + $0x88] sm:$0xff]   ;;  %v424_v14 = vld [vmem:[%s553_s1 + $0x10] sm:$0xff]  }
   0x6   :  { %402 = vmatprep.subr.bf16.mxu1 %v426_v10  ;;  %v425_v15 = vld [vmem:[%s553_s1 + $0x48] sm:$0xff]   ;;  %v433_v16 = vld [vmem:[%s554_s0 + $0x4] ss:$12 sps:$4 sm:$0xff]   ;;  %v337_v30 = vld [vmem:[%s555_s2] ss:$0 sm:$0xff] }
   0x7   :  { %369 = vmatpush3.bf16.msra.mxu0 %v415_v3  ;;  %v434_v17 = vld [vmem:[%s553_s1 + $0x80] sm:$0xff]   ;;  %259 = vmatprep.mubr.bf16.mxu0 %v433_v16  ;;  %v435_v18 = vld [vmem:[%s554_s0 + $0x8] ss:$12 sps:$4 sm:$0xff]  }
   0x8   :  { %370 = vmatprep.subr.bf16.mxu0 %v416_v4  ;;  %v427_v19 = vld [vmem:[%s553_s1 + $0x8] sm:$0xff]   ;;  %v428_v20 = vld [vmem:[%s553_s1 + $0x40] sm:$0xff]   ;;  %408 = vmatprep.mubr.msk.bf16.mxu1 %vm220_vm0, %v435_v18 }
   0x9   :  { %403 = vmatpush3.bf16.msra.mxu1 %v426_v10  ;;  %v436_v21 = vld [vmem:[%s554_s0 + $0x20] ss:$12 sps:$4 sm:$0xff]   ;;  %v437_v24 = vld [vmem:[%s554_s0 + $0x1c] ss:$12 sps:$4 sm:$0xff]   ;;  %v439_v25 = vld [vmem:[%s554_s0 + $0x18] ss:$12 sps:$4 sm:$0xff]  }
   0xa   :  { %404 = vmatprep.subr.bf16.mxu1 %v429_v13  ;;  %v430_v22 = vld [vmem:[%s553_s1] sm:$0xff]  }
   0xb   :  { %371 = vmatpush3.bf16.msra.mxu0 %v417_v5  ;;  %v431_v23 = vld [vmem:[%s554_s0] ss:$12 sps:$4 sm:$0xff]  }
   0xc   :  { %372 = vmatprep.subr.bf16.mxu0 %v418_v6 }
   0xd   :  { %405 = vmatpush3.bf16.msra.mxu1 %v429_v13 }
   0xe   :  { %406 = vmatprep.subr.bf16.mxu1 %v434_v17 }
   0xf   :  { %373 = vmatpush3.bf16.msra.mxu0 %v419_v7 }
  0x10   :  { %374 = vmatprep.subr.bf16.mxu0 %v420_v9 }
  0x11   :  { %407 = vmatpush3.bf16.msra.mxu1 %v434_v17 }
  0x13   :  { %375 = vmatpush3.bf16.msra.mxu0 %v421_v11 }
  0x14   :  { %376 = vmatprep.subr.bf16.mxu0 %v422_v12  ;;  %409 = vmatmul.mubr.msk.bf16.vlgmr.msra.gmra.mxu1 %vm220_vm0, %v436_v21 }
  0x17   :  { %377 = vmatpush3.bf16.msra.mxu0 %v424_v14 }
  0x18   :  { %378 = vmatprep.subr.bf16.mxu0 %v425_v15 }
  0x1b   :  { %379 = vmatpush3.bf16.msra.mxu0 %v427_v19 }
  0x1c   :  { %380 = vmatprep.subr.bf16.mxu0 %v428_v20 }
  0x1f   :  { %381 = vmatpush3.bf16.msra.mxu0 %v430_v22 }
  0x22   :  { %260 = vmatmul.mubr.bf16.vlgmr.msra.gmra.mxu0 %v431_v23 }
  0x23   :  { %267 = vmatprep.mubr.bf16.mxu0 %v437_v24 }
  0x2a   :  { %268 = vmatmul.mubr.bf16.gmra.mxu0 %v439_v25 }
  0xd4   :  { %v410_v26 = vpop.f32.mrf.mxu1 }
  0xd6   :  { %v310_v28 = vpop.f32.mrf.mxu1 }
  0xd8   :  { %v411_v33 = vpop.f32.mrf.mxu1 }
  0xda   :  { %v313_v39 = vpop.f32.mrf.mxu1 }
  0xe2   :  { %v382_v27 = vpop.f32.mrf.mxu0 }
  0xe4   :  { %v383_v29 = vpop.f32.mrf.mxu0 }
  0xe5   :  { %v384_v31 = vadd.f32 %v383_v29, %v382_v27 }
  0xe6   :  { %v385_v32 = vpop.f32.mrf.mxu0 }
  0xe7   :  { %v262_v34 = vadd.f32 %v384_v31, %v337_v30 }
  0xe8   :  { %v386_v35 = vpop.f32.mrf.mxu0 }
  0xe9   :  { %v387_v36 = vadd.f32 %v386_v35, %v385_v32  ;;  %v311_v37 = vadd.f32 %v310_v28, %v262_v34 }
  0xea   :  { %v388_v38 = vpop.f32.mrf.mxu0 }
  0xeb   :  { %v325_v40 = vmax.f32 %v311_v37, 0.0  ;;  %v265_v41 = vadd.f32 %v387_v36, %v337_v30 }
  0xec   :  { %v389_v42 = vpop.f32.mrf.mxu0 }
  0xed   :  { %329 = vst [vmem:[%s556_s3] sm:$0xff] %v325_v40  ;;  %v390_v43 = vadd.f32 %v389_v42, %v388_v38  ;;  %v314_v44 = vadd.f32 %v313_v39, %v265_v41 }
  0xee   :  { %v391_v45 = vpop.f32.mrf.mxu0 }
  0xef   :  { %v270_v46 = vadd.f32 %v390_v43, %v337_v30  ;;  %v326_v47 = vmax.f32 %v314_v44, 0.0 }
  0xf0   :  { %v392_v48 = vpop.f32.mrf.mxu0 }
  0xf1   :  { %v319_v49 = vadd.f32 %v410_v26, %v270_v46  ;;  %330 = vst [vmem:[%s556_s3 + $0x8] sm:$0xff] %v326_v47  ;;  %v393_v50 = vadd.f32 %v392_v48, %v391_v45 }
  0xf3   :  { %v327_v51 = vmax.f32 %v319_v49, 0.0  ;;  %v273_v52 = vadd.f32 %v393_v50, %v337_v30 }
  0xf5   :  { %331 = vst [vmem:[%s556_s3 + $0x10] sm:$0xff] %v327_v51  ;;  %v322_v53 = vadd.f32 %v411_v33, %v273_v52 }
  0xf7   :  { %v328_v54 = vmax.f32 %v322_v53, 0.0 }
  0xf9   :  { %332 = vst [vmem:[%s556_s3 + $0x18] sm:$0xff] %v328_v54 }

// kernel: esnet_forward.89
= control target key start
LH: loop header
LB: loop body
LE: loop exit
PB: predicated region body
PF: predicated region fallthrough
CT: control target
= control target key end

     0   :  { %vm223_vm0 = vcmask 523264   ;;  %s581_s1 = inlined_call_operand.vmem [shape: bf16[320,128], index: 1, kind: input, shape index: {}]   ;;  %s582_s0 = inlined_call_operand.vmem [shape: bf16[32,320], index: 0, kind: input, shape index: {}]   ;;  %s583_s2 = inlined_call_operand.vmem [shape: f32[1,128], index: 2, kind: input, shape index: {}]   ;;  %s584_s3 = inlined_call_operand.vmem [shape: f32[32,128], index: 3, kind: input, shape index: {}]   ;;  %s585_s4 = inlined_call_operand.vmem [shape: f32[32,128], index: 4, kind: output, shape index: {}]  }
   0x1   :  { %v423_v0 = vld [vmem:[%s581_s1 + $0x78] sm:$0xff]   ;;  %v425_v2 = vld [vmem:[%s581_s1 + $0x70] sm:$0xff]   ;;  %v427_v4 = vld [vmem:[%s581_s1 + $0x68] sm:$0xff]  }
   0x2   :  { %v424_v1 = vld [vmem:[%s581_s1 + $0x38] sm:$0xff]   ;;  %377 = vmatprep.subr.bf16.mxu0 %v423_v0  ;;  %v426_v3 = vld [vmem:[%s581_s1 + $0x30] sm:$0xff]   ;;  %v428_v5 = vld [vmem:[%s581_s1 + $0x28] sm:$0xff]  }
   0x3   :  { %378 = vmatpush3.bf16.msra.mxu0 %v424_v1  ;;  %v429_v6 = vld [vmem:[%s581_s1 + $0x60] sm:$0xff]   ;;  %v434_v8 = vld [vmem:[%s581_s1 + $0x98] sm:$0xff]   ;;  %v437_v10 = vld [vmem:[%s581_s1 + $0x90] sm:$0xff]  }
   0x4   :  { %379 = vmatprep.subr.bf16.mxu0 %v425_v2  ;;  %v430_v7 = vld [vmem:[%s581_s1 + $0x20] sm:$0xff]   ;;  %v431_v9 = vld [vmem:[%s581_s1 + $0x58] sm:$0xff]   ;;  %411 = vmatprep.subr.bf16.mxu1 %v434_v8  ;;  %v433_v12 = vld [vmem:[%s581_s1 + $0x50] sm:$0xff]  }
   0x5   :  { %412 = vmatpush3.bf16.msra.mxu1 %v434_v8  ;;  %v432_v11 = vld [vmem:[%s581_s1 + $0x18] sm:$0xff]   ;;  %v440_v13 = vld [vmem:[%s581_s1 + $0x88] sm:$0xff]   ;;  %v435_v14 = vld [vmem:[%s581_s1 + $0x10] sm:$0xff]  }
   0x6   :  { %413 = vmatprep.subr.bf16.mxu1 %v437_v10  ;;  %v436_v15 = vld [vmem:[%s581_s1 + $0x48] sm:$0xff]   ;;  %v444_v16 = vld [vmem:[%s582_s0 + $0x4] ss:$12 sps:$4 sm:$0xff]   ;;  %v348_v30 = vld [vmem:[%s583_s2] ss:$0 sm:$0xff] }
   0x7   :  { %380 = vmatpush3.bf16.msra.mxu0 %v426_v3  ;;  %v445_v17 = vld [vmem:[%s581_s1 + $0x80] sm:$0xff]   ;;  %262 = vmatprep.mubr.bf16.mxu0 %v444_v16  ;;  %v446_v18 = vld [vmem:[%s582_s0 + $0x8] ss:$12 sps:$4 sm:$0xff]   ;;  %v331_v58 = vld [vmem:[%s584_s3 + $0x18] sm:$0xff] }
   0x8   :  { %381 = vmatprep.subr.bf16.mxu0 %v427_v4  ;;  %v438_v19 = vld [vmem:[%s581_s1 + $0x8] sm:$0xff]   ;;  %v439_v20 = vld [vmem:[%s581_s1 + $0x40] sm:$0xff]   ;;  %419 = vmatprep.mubr.msk.bf16.mxu1 %vm223_vm0, %v446_v18  ;;  %v330_v51 = vld [vmem:[%s584_s3 + $0x10] sm:$0xff] }
   0x9   :  { %414 = vmatpush3.bf16.msra.mxu1 %v437_v10  ;;  %v447_v21 = vld [vmem:[%s582_s0 + $0x20] ss:$12 sps:$4 sm:$0xff]   ;;  %v448_v24 = vld [vmem:[%s582_s0 + $0x1c] ss:$12 sps:$4 sm:$0xff]   ;;  %v450_v25 = vld [vmem:[%s582_s0 + $0x18] ss:$12 sps:$4 sm:$0xff]  }
   0xa   :  { %415 = vmatprep.subr.bf16.mxu1 %v440_v13  ;;  %v441_v22 = vld [vmem:[%s581_s1] sm:$0xff]   ;;  %v329_v44 = vld [vmem:[%s584_s3 + $0x8] sm:$0xff] }
   0xb   :  { %382 = vmatpush3.bf16.msra.mxu0 %v428_v5  ;;  %v442_v23 = vld [vmem:[%s582_s0] ss:$12 sps:$4 sm:$0xff]  }
   0xc   :  { %383 = vmatprep.subr.bf16.mxu0 %v429_v6  ;;  %v328_v36 = vld [vmem:[%s584_s3] sm:$0xff] }
   0xd   :  { %416 = vmatpush3.bf16.msra.mxu1 %v440_v13 }
   0xe   :  { %417 = vmatprep.subr.bf16.mxu1 %v445_v17 }
   0xf   :  { %384 = vmatpush3.bf16.msra.mxu0 %v430_v7 }
  0x10   :  { %385 = vmatprep.subr.bf16.mxu0 %v431_v9 }
  0x11   :  { %418 = vmatpush3.bf16.msra.mxu1 %v445_v17 }
  0x13   :  { %386 = vmatpush3.bf16.msra.mxu0 %v432_v11 }
  0x14   :  { %387 = vmatprep.subr.bf16.mxu0 %v433_v12  ;;  %420 = vmatmul.mubr.msk.bf16.vlgmr.msra.gmra.mxu1 %vm223_vm0, %v447_v21 }
  0x17   :  { %388 = vmatpush3.bf16.msra.mxu0 %v435_v14 }
  0x18   :  { %389 = vmatprep.subr.bf16.mxu0 %v436_v15 }
  0x1b   :  { %390 = vmatpush3.bf16.msra.mxu0 %v438_v19 }
  0x1c   :  { %391 = vmatprep.subr.bf16.mxu0 %v439_v20 }
  0x1f   :  { %392 = vmatpush3.bf16.msra.mxu0 %v441_v22 }
  0x22   :  { %263 = vmatmul.mubr.bf16.vlgmr.msra.gmra.mxu0 %v442_v23 }
  0x23   :  { %270 = vmatprep.mubr.bf16.mxu0 %v448_v24 }
  0x2a   :  { %271 = vmatmul.mubr.bf16.gmra.mxu0 %v450_v25 }
  0xd4   :  { %v421_v26 = vpop.f32.mrf.mxu1 }
  0xd6   :  { %v313_v28 = vpop.f32.mrf.mxu1 }
  0xd8   :  { %v422_v33 = vpop.f32.mrf.mxu1 }
  0xda   :  { %v316_v40 = vpop.f32.mrf.mxu1 }
  0xe2   :  { %v393_v27 = vpop.f32.mrf.mxu0 }
  0xe4   :  { %v394_v29 = vpop.f32.mrf.mxu0 }
  0xe5   :  { %v395_v31 = vadd.f32 %v394_v29, %v393_v27 }
  0xe6   :  { %v396_v32 = vpop.f32.mrf.mxu0 }
  0xe7   :  { %v265_v34 = vadd.f32 %v395_v31, %v348_v30 }
  0xe8   :  { %v397_v35 = vpop.f32.mrf.mxu0 }
  0xe9   :  { %v398_v37 = vadd.f32 %v397_v35, %v396_v32  ;;  %v314_v38 = vadd.f32 %v313_v28, %v265_v34 }
  0xea   :  { %v399_v39 = vpop.f32.mrf.mxu0 }
  0xeb   :  { %v332_v41 = vadd.f32 %v328_v36, %v314_v38  ;;  %v268_v42 = vadd.f32 %v398_v37, %v348_v30 }
  0xec   :  { %v400_v43 = vpop.f32.mrf.mxu0 }
  0xed   :  { %v336_v45 = vmax.f32 %v332_v41, 0.0  ;;  %v401_v46 = vadd.f32 %v400_v43, %v399_v39  ;;  %v317_v47 = vadd.f32 %v316_v40, %v268_v42 }
  0xee   :  { %v402_v48 = vpop.f32.mrf.mxu0 }
  0xef   :  { %340 = vst [vmem:[%s585_s4] sm:$0xff] %v336_v45  ;;  %v273_v49 = vadd.f32 %v401_v46, %v348_v30  ;;  %v333_v50 = vadd.f32 %v329_v44, %v317_v47 }
  0xf0   :  { %v403_v52 = vpop.f32.mrf.mxu0 }
  0xf1   :  { %v322_v53 = vadd.f32 %v421_v26, %v273_v49  ;;  %v337_v54 = vmax.f32 %v333_v50, 0.0  ;;  %v404_v55 = vadd.f32 %v403_v52, %v402_v48 }
  0xf3   :  { %v334_v56 = vadd.f32 %v330_v51, %v322_v53  ;;  %341 = vst [vmem:[%s585_s4 + $0x8] sm:$0xff] %v337_v54  ;;  %v276_v57 = vadd.f32 %v404_v55, %v348_v30 }
  0xf5   :  { %v338_v59 = vmax.f32 %v334_v56, 0.0  ;;  %v325_v60 = vadd.f32 %v422_v33, %v276_v57 }
  0xf7   :  { %342 = vst [vmem:[%s585_s4 + $0x10] sm:$0xff] %v338_v59  ;;  %v335_v61 = vadd.f32 %v331_v58, %v325_v60 }
  0xf9   :  { %v339_v62 = vmax.f32 %v335_v61, 0.0 }
  0xfb   :  { %343 = vst [vmem:[%s585_s4 + $0x18] sm:$0xff] %v339_v62 }

// kernel: esnet_forward.95
= control target key start
LH: loop header
LB: loop body
LE: loop exit
PB: predicated region body
PF: predicated region fallthrough
CT: control target
= control target key end

     0   :  { %v433_v1 = vmov 0.0   ;;  %vm434_vm0 = vmmov 0   ;;  %s545_s1 = inlined_call_operand.vmem [shape: bf16[384,128], index: 1, kind: input, shape index: {}]   ;;  %s546_s0 = inlined_call_operand.vmem [shape: bf16[16,384], index: 0, kind: input, shape index: {}]   ;;  %s547_s2 = inlined_call_operand.vmem [shape: f32[1,128], index: 2, kind: input, shape index: {}]   ;;  %s548_s3 = inlined_call_operand.vmem [shape: f32[16,128], index: 3, kind: output, shape index: {}]  }
   0x1   :  { %v405_v0 = vld [vmem:[%s545_s1 + $0x78] sm:$0xff]   ;;  %383 = vmatprep.subr.bf16.mxu1 %v433_v1  ;;  %399 = vmatprep.mubr.msk.bf16.mxu1 %vm434_vm0, %v433_v1  ;;  %v408_v4 = vld [vmem:[%s545_s1 + $0x70] sm:$0xff]   ;;  %v411_v7 = vld [vmem:[%s545_s1 + $0x68] sm:$0xff]  }
   0x2   :  { %v406_v2 = vld [vmem:[%s545_s1 + $0x38] sm:$0xff]   ;;  %352 = vmatprep.subr.bf16.mxu0 %v405_v0  ;;  %v409_v5 = vld [vmem:[%s545_s1 + $0x30] sm:$0xff]   ;;  %v412_v8 = vld [vmem:[%s545_s1 + $0x28] sm:$0xff]  }
   0x3   :  { %v407_v3 = vld [vmem:[%s545_s1 + $0xb8] sm:$0xff]   ;;  %353 = vmatpush3.bf16.msra.mxu0 %v406_v2  ;;  %v410_v6 = vld [vmem:[%s545_s1 + $0xb0] sm:$0xff]   ;;  %v413_v9 = vld [vmem:[%s545_s1 + $0xa8] sm:$0xff]  }
   0x4   :  { %384 = vmatpush3.bf16.msra.mxu1 %v407_v3  ;;  %354 = vmatprep.subr.bf16.mxu0 %v408_v4  ;;  %v414_v10 = vld [vmem:[%s545_s1 + $0x60] sm:$0xff]   ;;  %v417_v13 = vld [vmem:[%s545_s1 + $0x58] sm:$0xff]   ;;  %v420_v16 = vld [vmem:[%s545_s1 + $0x50] sm:$0xff]  }
   0x5   :  { %385 = vmatprep.subr.bf16.mxu1 %v433_v1  ;;  %v415_v11 = vld [vmem:[%s545_s1 + $0x20] sm:$0xff]   ;;  %v418_v14 = vld [vmem:[%s545_s1 + $0x18] sm:$0xff]   ;;  %v421_v17 = vld [vmem:[%s545_s1 + $0x10] sm:$0xff]  }
   0x6   :  { %v416_v12 = vld [vmem:[%s545_s1 + $0xa0] sm:$0xff]   ;;  %v419_v15 = vld [vmem:[%s545_s1 + $0x98] sm:$0xff]   ;;  %v422_v18 = vld [vmem:[%s545_s1 + $0x90] sm:$0xff]  }
   0x7   :  { %355 = vmatpush3.bf16.msra.mxu0 %v409_v5  ;;  %v423_v19 = vld [vmem:[%s545_s1 + $0x48] sm:$0xff]   ;;  %v426_v22 = vld [vmem:[%s545_s1 + $0x40] sm:$0xff]  }
   0x8   :  { %386 = vmatpush3.bf16.msra.mxu1 %v410_v6  ;;  %356 = vmatprep.subr.bf16.mxu0 %v411_v7  ;;  %v424_v20 = vld [vmem:[%s545_s1 + $0x8] sm:$0xff]   ;;  %v431_v23 = vld [vmem:[%s546_s0 + $0x4] ss:$12 sps:$4 sm:$0xff]   ;;  %v324_v30 = vld [vmem:[%s547_s2] ss:$0 sm:$0xff] }
   0x9   :  { %387 = vmatprep.subr.bf16.mxu1 %v433_v1  ;;  %v425_v21 = vld [vmem:[%s545_s1 + $0x88] sm:$0xff]   ;;  %v427_v24 = vld [vmem:[%s545_s1] sm:$0xff]   ;;  %266 = vmatprep.mubr.bf16.mxu0 %v431_v23 }
   0xa   :  { %v428_v25 = vld [vmem:[%s545_s1 + $0x80] sm:$0xff]   ;;  %v432_v27 = vld [vmem:[%s546_s0 + $0x8] ss:$12 sps:$4 sm:$0xff]  }
   0xb   :  { %357 = vmatpush3.bf16.msra.mxu0 %v412_v8  ;;  %v429_v26 = vld [vmem:[%s546_s0] ss:$12 sps:$4 sm:$0xff]  }
   0xc   :  { %388 = vmatpush3.bf16.msra.mxu1 %v413_v9  ;;  %358 = vmatprep.subr.bf16.mxu0 %v414_v10 }
   0xd   :  { %389 = vmatprep.subr.bf16.mxu1 %v433_v1 }
   0xf   :  { %359 = vmatpush3.bf16.msra.mxu0 %v415_v11 }
  0x10   :  { %390 = vmatpush3.bf16.msra.mxu1 %v416_v12  ;;  %360 = vmatprep.subr.bf16.mxu0 %v417_v13 }
  0x11   :  { %391 = vmatprep.subr.bf16.mxu1 %v433_v1 }
  0x13   :  { %361 = vmatpush3.bf16.msra.mxu0 %v418_v14 }
  0x14   :  { %392 = vmatpush3.bf16.msra.mxu1 %v419_v15  ;;  %362 = vmatprep.subr.bf16.mxu0 %v420_v16 }
  0x15   :  { %393 = vmatprep.subr.bf16.mxu1 %v433_v1 }
  0x17   :  { %363 = vmatpush3.bf16.msra.mxu0 %v421_v17 }
  0x18   :  { %394 = vmatpush3.bf16.msra.mxu1 %v422_v18  ;;  %364 = vmatprep.subr.bf16.mxu0 %v423_v19 }
  0x19   :  { %395 = vmatprep.subr.bf16.mxu1 %v433_v1 }
  0x1b   :  { %365 = vmatpush3.bf16.msra.mxu0 %v424_v20 }
  0x1c   :  { %396 = vmatpush3.bf16.msra.mxu1 %v425_v21  ;;  %366 = vmatprep.subr.bf16.mxu0 %v426_v22 }
  0x1d   :  { %397 = vmatprep.subr.bf16.mxu1 %v433_v1 }
  0x1f   :  { %367 = vmatpush3.bf16.msra.mxu0 %v427_v24 }
  0x20   :  { %398 = vmatpush3.bf16.msra.mxu1 %v428_v25 }
  0x22   :  { %267 = vmatmul.mubr.bf16.vlgmr.msra.gmra.mxu0 %v429_v26 }
  0x23   :  { %400 = vmatmul.mubr.bf16.vlgmr.msra.gmra.mxu1 %v432_v27 }
  0xe2   :  { %v368_v28 = vpop.f32.mrf.mxu0 }
  0xe3   :  { %v309_v29 = vpop.f32.mrf.mxu1 }
  0xe4   :  { %v369_v31 = vpop.f32.mrf.mxu0 }
  0xe5   :  { %v370_v32 = vadd.f32 %v369_v31, %v368_v28  ;;  %v401_v33 = vpop.f32.mrf.mxu1 }
  0xe6   :  { %v371_v34 = vpop.f32.mrf.mxu0 }
  0xe7   :  { %v269_v35 = vadd.f32 %v370_v32, %v324_v30  ;;  %v312_v36 = vpop.f32.mrf.mxu1 }
  0xe8   :  { %v372_v37 = vpop.f32.mrf.mxu0 }
  0xe9   :  { %v310_v38 = vadd.f32 %v309_v29, %v269_v35  ;;  %v373_v39 = vadd.f32 %v372_v37, %v371_v34  ;;  %v402_v40 = vpop.f32.mrf.mxu1 }
  0xeb   :  { %v316_v41 = vmax.f32 %v310_v38, 0.0  ;;  %v272_v42 = vadd.f32 %v373_v39, %v324_v30 }
  0xed   :  { %318 = vst [vmem:[%s548_s3] sm:$0xff] %v316_v41  ;;  %v313_v43 = vadd.f32 %v312_v36, %v272_v42 }
  0xef   :  { %v317_v44 = vmax.f32 %v313_v43, 0.0 }
  0xf1   :  { %319 = vst [vmem:[%s548_s3 + $0x8] sm:$0xff] %v317_v44 }

// kernel: esnet_forward.94
= control target key start
LH: loop header
LB: loop body
LE: loop exit
PB: predicated region body
PF: predicated region fallthrough
CT: control target
= control target key end

     0   :  { %v625_v33 = vmov 0.0   ;;  %vm626_vm0 = vmmov 0   ;;  %vm341_vm1 = vcmask 523264   ;;  %s779_s1 = inlined_call_operand.vmem [shape: bf16[576,128], index: 1, kind: input, shape index: {}]   ;;  %s780_s0 = inlined_call_operand.vmem [shape: bf16[16,576], index: 0, kind: input, shape index: {}]   ;;  %s781_s2 = inlined_call_operand.vmem [shape: f32[1,128], index: 2, kind: input, shape index: {}]   ;;  %s782_s3 = inlined_call_operand.vmem [shape: f32[16,128], index: 3, kind: output, shape index: {}]  }
   0x1   :  { %v582_v0 = vld [vmem:[%s779_s1 + $0x78] sm:$0xff]   ;;  %v586_v4 = vld [vmem:[%s779_s1 + $0x70] sm:$0xff]   ;;  %v590_v8 = vld [vmem:[%s779_s1 + $0x68] sm:$0xff]  }
   0x2   :  { %v583_v1 = vld [vmem:[%s779_s1 + $0x38] sm:$0xff]   ;;  %519 = vmatprep.subr.bf16.mxu0 %v582_v0  ;;  %v587_v5 = vld [vmem:[%s779_s1 + $0x30] sm:$0xff]   ;;  %v591_v9 = vld [vmem:[%s779_s1 + $0x28] sm:$0xff]  }
   0x3   :  { %v584_v2 = vld [vmem:[%s779_s1 + $0xf8] sm:$0xff]   ;;  %520 = vmatpush3.bf16.msra.mxu0 %v583_v1  ;;  %v588_v6 = vld [vmem:[%s779_s1 + $0xf0] sm:$0xff]   ;;  %v592_v10 = vld [vmem:[%s779_s1 + $0xe8] sm:$0xff]  }
   0x4   :  { %v585_v3 = vld [vmem:[%s779_s1 + $0xb8] sm:$0xff]   ;;  %541 = vmatprep.subr.bf16.mxu1 %v584_v2  ;;  %521 = vmatprep.subr.bf16.mxu0 %v586_v4  ;;  %v589_v7 = vld [vmem:[%s779_s1 + $0xb0] sm:$0xff]   ;;  %v593_v11 = vld [vmem:[%s779_s1 + $0xa8] sm:$0xff]  }
   0x5   :  { %542 = vmatpush3.bf16.msra.mxu1 %v585_v3  ;;  %v594_v12 = vld [vmem:[%s779_s1 + $0x60] sm:$0xff]   ;;  %v598_v16 = vld [vmem:[%s779_s1 + $0x58] sm:$0xff]   ;;  %v602_v20 = vld [vmem:[%s779_s1 + $0x50] sm:$0xff]  }
   0x6   :  { %543 = vmatprep.subr.bf16.mxu1 %v588_v6  ;;  %v595_v13 = vld [vmem:[%s779_s1 + $0x20] sm:$0xff]   ;;  %v599_v17 = vld [vmem:[%s779_s1 + $0x18] sm:$0xff]   ;;  %v603_v21 = vld [vmem:[%s779_s1 + $0x10] sm:$0xff]  }
   0x7   :  { %522 = vmatpush3.bf16.msra.mxu0 %v587_v5  ;;  %v596_v14 = vld [vmem:[%s779_s1 + $0xe0] sm:$0xff]   ;;  %v600_v18 = vld [vmem:[%s779_s1 + $0xd8] sm:$0xff]   ;;  %v604_v22 = vld [vmem:[%s779_s1 + $0xd0] sm:$0xff]  }
   0x8   :  { %523 = vmatprep.subr.bf16.mxu0 %v590_v8  ;;  %v597_v15 = vld [vmem:[%s779_s1 + $0xa0] sm:$0xff]   ;;  %v601_v19 = vld [vmem:[%s779_s1 + $0x98] sm:$0xff]   ;;  %v605_v23 = vld [vmem:[%s779_s1 + $0x90] sm:$0xff]  }
   0x9   :  { %544 = vmatpush3.bf16.msra.mxu1 %v589_v7  ;;  %v606_v24 = vld [vmem:[%s779_s1 + $0x48] sm:$0xff]   ;;  %v610_v28 = vld [vmem:[%s779_s1 + $0x40] sm:$0xff]   ;;  %v620_v37 = vld [vmem:[%s779_s1 + $0x118] sm:$0xff]  }
   0xa   :  { %545 = vmatprep.subr.bf16.mxu1 %v592_v10  ;;  %v607_v25 = vld [vmem:[%s779_s1 + $0x8] sm:$0xff]   ;;  %v611_v29 = vld [vmem:[%s779_s1] sm:$0xff]   ;;  %v621_v38 = vld [vmem:[%s779_s1 + $0x110] sm:$0xff]  }
   0xb   :  { %524 = vmatpush3.bf16.msra.mxu0 %v591_v9  ;;  %v608_v26 = vld [vmem:[%s779_s1 + $0xc8] sm:$0xff]   ;;  %v612_v30 = vld [vmem:[%s779_s1 + $0xc0] sm:$0xff]  }
   0xc   :  { %525 = vmatprep.subr.bf16.mxu0 %v594_v12  ;;  %v609_v27 = vld [vmem:[%s779_s1 + $0x88] sm:$0xff]   ;;  %v613_v31 = vld [vmem:[%s780_s0] ss:$20 sps:$4 sm:$0xff]   ;;  %v615_v32 = vld [vmem:[%s780_s0 + $0x4] ss:$20 sps:$4 sm:$0xff]  }
   0xd   :  { %546 = vmatpush3.bf16.msra.mxu1 %v593_v11  ;;  %v616_v34 = vld [vmem:[%s779_s1 + $0x80] sm:$0xff]   ;;  %377 = vmatprep.mubr.bf16.mxu0 %v615_v32  ;;  %v617_v35 = vld [vmem:[%s780_s0 + $0x8] ss:$20 sps:$4 sm:$0xff]  }
   0xe   :  { %547 = vmatprep.subr.bf16.mxu1 %v596_v14  ;;  %v619_v36 = vld [vmem:[%s780_s0 + $0xc] ss:$20 sps:$4 sm:$0xff]   ;;  %v624_v41 = vld [vmem:[%s780_s0 + $0x10] ss:$20 sps:$4 sm:$0xff]  }
   0xf   :  { %526 = vmatpush3.bf16.msra.mxu0 %v595_v13  ;;  %418 = vmatprep.mubr.bf16.mxu1 %v619_v36  ;;  %v622_v39 = vld [vmem:[%s779_s1 + $0x108] sm:$0xff]   ;;  %v623_v40 = vld [vmem:[%s779_s1 + $0x100] sm:$0xff]  }
  0x10   :  { %527 = vmatprep.subr.bf16.mxu0 %v598_v16  ;;  %v476_v48 = vld [vmem:[%s781_s2] ss:$0 sm:$0xff] }
  0x11   :  { %548 = vmatpush3.bf16.msra.mxu1 %v597_v15 }
  0x12   :  { %549 = vmatprep.subr.bf16.mxu1 %v600_v18 }
  0x13   :  { %528 = vmatpush3.bf16.msra.mxu0 %v599_v17 }
  0x14   :  { %529 = vmatprep.subr.bf16.mxu0 %v602_v20 }
  0x15   :  { %550 = vmatpush3.bf16.msra.mxu1 %v601_v19 }
  0x16   :  { %551 = vmatprep.subr.bf16.mxu1 %v604_v22 }
  0x17   :  { %530 = vmatpush3.bf16.msra.mxu0 %v603_v21 }
  0x18   :  { %531 = vmatprep.subr.bf16.mxu0 %v606_v24 }
  0x19   :  { %552 = vmatpush3.bf16.msra.mxu1 %v605_v23 }
  0x1a   :  { %553 = vmatprep.subr.bf16.mxu1 %v608_v26 }
  0x1b   :  { %532 = vmatpush3.bf16.msra.mxu0 %v607_v25 }
  0x1c   :  { %533 = vmatprep.subr.bf16.mxu0 %v610_v28 }
  0x1d   :  { %554 = vmatpush3.bf16.msra.mxu1 %v609_v27 }
  0x1e   :  { %555 = vmatprep.subr.bf16.mxu1 %v612_v30 }
  0x1f   :  { %534 = vmatpush3.bf16.msra.mxu0 %v611_v29 }
  0x20   :  { %568 = vmatprep.subr.bf16.mxu0 %v625_v33 }
  0x21   :  { %556 = vmatpush3.bf16.msra.mxu1 %v616_v34 }
  0x22   :  { %378 = vmatmul.mubr.bf16.vlgmr.msra.gmra.mxu0 %v613_v31 }
  0x23   :  { %576 = vmatprep.mubr.msk.bf16.mxu0 %vm626_vm0, %v625_v33  ;;  %569 = vmatpush3.bf16.msra.mxu0 %v620_v37 }
  0x24   :  { %419 = vmatmul.mubr.bf16.vlgmr.msra.gmra.mxu1 %v617_v35  ;;  %570 = vmatprep.subr.bf16.mxu0 %v625_v33 }
  0x27   :  { %571 = vmatpush3.bf16.msra.mxu0 %v621_v38 }
  0x28   :  { %572 = vmatprep.subr.bf16.mxu0 %v625_v33 }
  0x2b   :  { %573 = vmatpush3.bf16.msra.mxu0 %v622_v39 }
  0x2c   :  { %574 = vmatprep.subr.bf16.mxu0 %v625_v33 }
  0x2f   :  { %575 = vmatpush3.bf16.msra.mxu0 %v623_v40 }
  0x32   :  { %577 = vmatmul.mubr.msk.bf16.vlgmr.msra.gmra.mxu0 %vm341_vm1, %v624_v41 }
  0xe2   :  { %v535_v42 = vpop.f32.mrf.mxu0 }
  0xe4   :  { %v536_v43 = vpop.f32.mrf.mxu0  ;;  %v557_v44 = vpop.f32.mrf.mxu1 }
  0xe5   :  { %v537_v47 = vadd.f32 %v536_v43, %v535_v42 }
  0xe6   :  { %v538_v45 = vpop.f32.mrf.mxu0  ;;  %v558_v46 = vpop.f32.mrf.mxu1 }
  0xe7   :  { %v380_v51 = vadd.f32 %v537_v47, %v476_v48  ;;  %v559_v52 = vadd.f32 %v558_v46, %v557_v44 }
  0xe8   :  { %v539_v49 = vpop.f32.mrf.mxu0  ;;  %v560_v50 = vpop.f32.mrf.mxu1 }
  0xe9   :  { %v540_v53 = vadd.f32 %v539_v49, %v538_v45  ;;  %v421_v57 = vadd.f32 %v559_v52, %v380_v51 }
  0xea   :  { %v561_v54 = vpop.f32.mrf.mxu1 }
  0xeb   :  { %v383_v55 = vadd.f32 %v540_v53, %v476_v48  ;;  %v562_v56 = vadd.f32 %v561_v54, %v560_v50 }
  0xed   :  { %v424_v62 = vadd.f32 %v562_v56, %v383_v55 }
  0xf2   :  { %v461_v58 = vpop.f32.mrf.mxu0 }
  0xf3   :  { %v462_v59 = vadd.f32 %v461_v58, %v421_v57 }
  0xf4   :  { %v578_v60 = vpop.f32.mrf.mxu0 }
  0xf5   :  { %v468_v61 = vmax.f32 %v462_v59, 0.0 }
  0xf6   :  { %v464_v63 = vpop.f32.mrf.mxu0 }
  0xf7   :  { %470 = vst [vmem:[%s782_s3] sm:$0xff] %v468_v61  ;;  %v465_v0 = vadd.f32 %v464_v63, %v424_v62 }
  0xf8   :  { %v579_v1 = vpop.f32.mrf.mxu0 }
  0xf9   :  { %v469_v2 = vmax.f32 %v465_v0, 0.0 }
  0xfb   :  { %471 = vst [vmem:[%s782_s3 + $0x8] sm:$0xff] %v469_v2 }

// kernel: esnet_forward.100
= control target key start
LH: loop header
LB: loop body
LE: loop exit
PB: predicated region body
PF: predicated region fallthrough
CT: control target
= control target key end

     0   :  { %vm1161_vm0 = vmmov 0   ;;  %s1445_s1 = inlined_call_operand.vmem [shape: bf16[1152,128], index: 1, kind: input, shape index: {}]   ;;  %s1446_s0 = inlined_call_operand.vmem [shape: bf16[16,1152], index: 0, kind: input, shape index: {}]   ;;  %s1447_s2 = inlined_call_operand.vmem [shape: f32[1,128], index: 2, kind: input, shape index: {}]   ;;  %s1448_s3 = inlined_call_operand.vmem [shape: f32[16,128], index: 3, kind: input, shape index: {}]   ;;  %s1449_s4 = inlined_call_operand.vmem [shape: f32[16,128], index: 4, kind: output, shape index: {}]  }
   0x1   :  { %v1075_v0 = vld [vmem:[%s1445_s1 + $0x78] sm:$0xff]   ;;  %v1079_v4 = vld [vmem:[%s1445_s1 + $0x70] sm:$0xff]   ;;  %v1083_v8 = vld [vmem:[%s1445_s1 + $0x68] sm:$0xff]  }
   0x2   :  { %v1076_v1 = vld [vmem:[%s1445_s1 + $0x38] sm:$0xff]   ;;  %956 = vmatprep.subr.bf16.mxu0 %v1075_v0  ;;  %v1080_v5 = vld [vmem:[%s1445_s1 + $0x30] sm:$0xff]   ;;  %v1084_v9 = vld [vmem:[%s1445_s1 + $0x28] sm:$0xff]  }
   0x3   :  { %v1077_v2 = vld [vmem:[%s1445_s1 + $0xf8] sm:$0xff]   ;;  %957 = vmatpush3.bf16.msra.mxu0 %v1076_v1  ;;  %v1081_v6 = vld [vmem:[%s1445_s1 + $0xf0] sm:$0xff]   ;;  %v1085_v10 = vld [vmem:[%s1445_s1 + $0xe8] sm:$0xff]  }
   0x4   :  { %v1078_v3 = vld [vmem:[%s1445_s1 + $0xb8] sm:$0xff]   ;;  %978 = vmatprep.subr.bf16.mxu1 %v1077_v2  ;;  %958 = vmatprep.subr.bf16.mxu0 %v1079_v4  ;;  %v1082_v7 = vld [vmem:[%s1445_s1 + $0xb0] sm:$0xff]   ;;  %v1086_v11 = vld [vmem:[%s1445_s1 + $0xa8] sm:$0xff]  }
   0x5   :  { %979 = vmatpush3.bf16.msra.mxu1 %v1078_v3  ;;  %v1087_v12 = vld [vmem:[%s1445_s1 + $0x60] sm:$0xff]   ;;  %v1091_v16 = vld [vmem:[%s1445_s1 + $0x58] sm:$0xff]   ;;  %v1095_v20 = vld [vmem:[%s1445_s1 + $0x50] sm:$0xff]  }
   0x6   :  { %980 = vmatprep.subr.bf16.mxu1 %v1081_v6  ;;  %v1088_v13 = vld [vmem:[%s1445_s1 + $0x20] sm:$0xff]   ;;  %v1092_v17 = vld [vmem:[%s1445_s1 + $0x18] sm:$0xff]   ;;  %v1096_v21 = vld [vmem:[%s1445_s1 + $0x10] sm:$0xff]   ;;  %v1160_v6 = vmov 0.0  }
   0x7   :  { %959 = vmatpush3.bf16.msra.mxu0 %v1080_v5  ;;  %v1089_v14 = vld [vmem:[%s1445_s1 + $0xe0] sm:$0xff]   ;;  %v1093_v18 = vld [vmem:[%s1445_s1 + $0xd8] sm:$0xff]   ;;  %v1097_v22 = vld [vmem:[%s1445_s1 + $0xd0] sm:$0xff]  }
   0x8   :  { %960 = vmatprep.subr.bf16.mxu0 %v1083_v8  ;;  %v1090_v15 = vld [vmem:[%s1445_s1 + $0xa0] sm:$0xff]   ;;  %v1094_v19 = vld [vmem:[%s1445_s1 + $0x98] sm:$0xff]   ;;  %v1098_v23 = vld [vmem:[%s1445_s1 + $0x90] sm:$0xff]  }
   0x9   :  { %981 = vmatpush3.bf16.msra.mxu1 %v1082_v7  ;;  %v1099_v24 = vld [vmem:[%s1445_s1 + $0x48] sm:$0xff]   ;;  %v1103_v28 = vld [vmem:[%s1445_s1 + $0x40] sm:$0xff]   ;;  %v1110_v34 = vld [vmem:[%s1445_s1 + $0x178] sm:$0xff]  }
   0xa   :  { %982 = vmatprep.subr.bf16.mxu1 %v1085_v10  ;;  %v1100_v25 = vld [vmem:[%s1445_s1 + $0x8] sm:$0xff]   ;;  %v1104_v29 = vld [vmem:[%s1445_s1] sm:$0xff]   ;;  %v1114_v37 = vld [vmem:[%s1445_s1 + $0x138] sm:$0xff]  }
   0xb   :  { %961 = vmatpush3.bf16.msra.mxu0 %v1084_v9  ;;  %v1101_v26 = vld [vmem:[%s1445_s1 + $0xc8] sm:$0xff]   ;;  %v1105_v30 = vld [vmem:[%s1445_s1 + $0xc0] sm:$0xff]   ;;  %v1115_v38 = vld [vmem:[%s1445_s1 + $0x1f8] sm:$0xff]  }
   0xc   :  { %962 = vmatprep.subr.bf16.mxu0 %v1087_v12  ;;  %v1102_v27 = vld [vmem:[%s1445_s1 + $0x88] sm:$0xff]   ;;  %v1106_v31 = vld [vmem:[%s1446_s0] ss:$36 sps:$4 sm:$0xff]   ;;  %v1116_v39 = vld [vmem:[%s1445_s1 + $0x1b8] sm:$0xff]  }
   0xd   :  { %983 = vmatpush3.bf16.msra.mxu1 %v1086_v11  ;;  %v1108_v32 = vld [vmem:[%s1446_s0 + $0x4] ss:$36 sps:$4 sm:$0xff]   ;;  %v1113_v36 = vld [vmem:[%s1446_s0 + $0xc] ss:$36 sps:$4 sm:$0xff]   ;;  %v1129_v52 = vld [vmem:[%s1445_s1 + $0x158] sm:$0xff]  }
   0xe   :  { %984 = vmatprep.subr.bf16.mxu1 %v1089_v14  ;;  %v1109_v33 = vld [vmem:[%s1445_s1 + $0x80] sm:$0xff]   ;;  %689 = vmatprep.mubr.bf16.mxu0 %v1108_v32  ;;  %v1111_v35 = vld [vmem:[%s1446_s0 + $0x8] ss:$36 sps:$4 sm:$0xff]   ;;  %v1117_v40 = vld [vmem:[%s1445_s1 + $0x170] sm:$0xff]  }
   0xf   :  { %963 = vmatpush3.bf16.msra.mxu0 %v1088_v13  ;;  %730 = vmatprep.mubr.bf16.mxu1 %v1113_v36  ;;  %v1118_v41 = vld [vmem:[%s1445_s1 + $0x130] sm:$0xff]   ;;  %v1121_v44 = vld [vmem:[%s1445_s1 + $0x168] sm:$0xff]   ;;  %v1125_v48 = vld [vmem:[%s1445_s1 + $0x160] sm:$0xff]  }
  0x10   :  { %964 = vmatprep.subr.bf16.mxu0 %v1091_v16  ;;  %v1119_v42 = vld [vmem:[%s1445_s1 + $0x1f0] sm:$0xff]   ;;  %v1122_v45 = vld [vmem:[%s1445_s1 + $0x128] sm:$0xff]   ;;  %v1126_v49 = vld [vmem:[%s1445_s1 + $0x120] sm:$0xff]  }
  0x11   :  { %985 = vmatpush3.bf16.msra.mxu1 %v1090_v15  ;;  %v1120_v43 = vld [vmem:[%s1445_s1 + $0x1b0] sm:$0xff]   ;;  %v1123_v46 = vld [vmem:[%s1445_s1 + $0x1e8] sm:$0xff]   ;;  %v1127_v50 = vld [vmem:[%s1445_s1 + $0x1e0] sm:$0xff]  }
  0x12   :  { %986 = vmatprep.subr.bf16.mxu1 %v1093_v18  ;;  %v1124_v47 = vld [vmem:[%s1445_s1 + $0x1a8] sm:$0xff]   ;;  %v1128_v51 = vld [vmem:[%s1445_s1 + $0x1a0] sm:$0xff]   ;;  %v1130_v53 = vld [vmem:[%s1445_s1 + $0x118] sm:$0xff]  }
  0x13   :  { %965 = vmatpush3.bf16.msra.mxu0 %v1092_v17  ;;  %v1131_v54 = vld [vmem:[%s1445_s1 + $0x1d8] sm:$0xff]   ;;  %v1133_v56 = vld [vmem:[%s1445_s1 + $0x150] sm:$0xff]   ;;  %v1137_v60 = vld [vmem:[%s1445_s1 + $0x148] sm:$0xff]  }
  0x14   :  { %966 = vmatprep.subr.bf16.mxu0 %v1095_v20  ;;  %v1132_v55 = vld [vmem:[%s1445_s1 + $0x198] sm:$0xff]   ;;  %v1134_v57 = vld [vmem:[%s1445_s1 + $0x110] sm:$0xff]   ;;  %v1138_v61 = vld [vmem:[%s1445_s1 + $0x108] sm:$0xff]  }
  0x15   :  { %987 = vmatpush3.bf16.msra.mxu1 %v1094_v19  ;;  %v1135_v58 = vld [vmem:[%s1445_s1 + $0x1d0] sm:$0xff]   ;;  %v1139_v62 = vld [vmem:[%s1445_s1 + $0x1c8] sm:$0xff]   ;;  %v1141_v0 = vld [vmem:[%s1445_s1 + $0x140] sm:$0xff]  }
  0x16   :  { %988 = vmatprep.subr.bf16.mxu1 %v1097_v22  ;;  %v1136_v59 = vld [vmem:[%s1445_s1 + $0x190] sm:$0xff]   ;;  %v1140_v63 = vld [vmem:[%s1445_s1 + $0x188] sm:$0xff]   ;;  %v1142_v1 = vld [vmem:[%s1445_s1 + $0x100] sm:$0xff]  }
  0x17   :  { %967 = vmatpush3.bf16.msra.mxu0 %v1096_v21  ;;  %v1143_v2 = vld [vmem:[%s1445_s1 + $0x1c0] sm:$0xff]   ;;  %v1144_v3 = vld [vmem:[%s1446_s0 + $0x10] ss:$36 sps:$4 sm:$0xff]   ;;  %v1148_v7 = vld [vmem:[%s1446_s0 + $0x18] ss:$36 sps:$4 sm:$0xff]  }
  0x18   :  { %968 = vmatprep.subr.bf16.mxu0 %v1099_v24  ;;  %v1146_v4 = vld [vmem:[%s1446_s0 + $0x14] ss:$36 sps:$4 sm:$0xff]   ;;  %v1147_v5 = vld [vmem:[%s1445_s1 + $0x180] sm:$0xff]   ;;  %v1153_v11 = vld [vmem:[%s1445_s1 + $0x228] sm:$0xff]  }
  0x19   :  { %989 = vmatpush3.bf16.msra.mxu1 %v1098_v23  ;;  %v1150_v8 = vld [vmem:[%s1446_s0 + $0x1c] ss:$36 sps:$4 sm:$0xff]   ;;  %v1152_v10 = vld [vmem:[%s1445_s1 + $0x230] sm:$0xff]   ;;  %v1157_v15 = vld [vmem:[%s1445_s1 + $0x208] sm:$0xff]  }
  0x1a   :  { %990 = vmatprep.subr.bf16.mxu1 %v1101_v26  ;;  %v1151_v9 = vld [vmem:[%s1445_s1 + $0x238] sm:$0xff]   ;;  %v1154_v12 = vld [vmem:[%s1445_s1 + $0x220] sm:$0xff]   ;;  %v1156_v14 = vld [vmem:[%s1445_s1 + $0x210] sm:$0xff]  }
  0x1b   :  { %969 = vmatpush3.bf16.msra.mxu0 %v1100_v25  ;;  %v1155_v13 = vld [vmem:[%s1445_s1 + $0x218] sm:$0xff]   ;;  %v1158_v16 = vld [vmem:[%s1445_s1 + $0x200] sm:$0xff]  }
  0x1c   :  { %970 = vmatprep.subr.bf16.mxu0 %v1103_v28  ;;  %v1159_v17 = vld [vmem:[%s1446_s0 + $0x20] ss:$36 sps:$4 sm:$0xff]  }
  0x1d   :  { %991 = vmatpush3.bf16.msra.mxu1 %v1102_v27 }
  0x1e   :  { %992 = vmatprep.subr.bf16.mxu1 %v1105_v30  ;;  %v874_v30 = vld [vmem:[%s1447_s2] ss:$0 sm:$0xff] }
  0x1f   :  { %971 = vmatpush3.bf16.msra.mxu0 %v1104_v29 }
  0x20   :  { %1000 = vmatprep.subr.bf16.mxu0 %v1110_v34 }
  0x21   :  { %993 = vmatpush3.bf16.msra.mxu1 %v1109_v33 }
  0x22   :  { %690 = vmatmul.mubr.bf16.vlgmr.msra.gmra.mxu0 %v1106_v31  ;;  %1022 = vmatprep.subr.bf16.mxu1 %v1115_v38 }
  0x23   :  { %1001 = vmatpush3.bf16.msra.mxu0 %v1114_v37  ;;  %771 = vmatprep.mubr.bf16.mxu0 %v1146_v4 }
  0x24   :  { %731 = vmatmul.mubr.bf16.vlgmr.msra.gmra.mxu1 %v1111_v35  ;;  %1002 = vmatprep.subr.bf16.mxu0 %v1117_v40 }
  0x25   :  { %1023 = vmatpush3.bf16.msra.mxu1 %v1116_v39  ;;  %812 = vmatprep.mubr.bf16.mxu1 %v1150_v8 }
  0x26   :  { %1024 = vmatprep.subr.bf16.mxu1 %v1119_v42 }
  0x27   :  { %1003 = vmatpush3.bf16.msra.mxu0 %v1118_v41 }
  0x28   :  { %1004 = vmatprep.subr.bf16.mxu0 %v1121_v44 }
  0x29   :  { %1025 = vmatpush3.bf16.msra.mxu1 %v1120_v43 }
  0x2a   :  { %1026 = vmatprep.subr.bf16.mxu1 %v1123_v46 }
  0x2b   :  { %1005 = vmatpush3.bf16.msra.mxu0 %v1122_v45 }
  0x2c   :  { %1006 = vmatprep.subr.bf16.mxu0 %v1125_v48 }
  0x2d   :  { %1027 = vmatpush3.bf16.msra.mxu1 %v1124_v47 }
  0x2e   :  { %1028 = vmatprep.subr.bf16.mxu1 %v1127_v50 }
  0x2f   :  { %1007 = vmatpush3.bf16.msra.mxu0 %v1126_v49 }
  0x30   :  { %1008 = vmatprep.subr.bf16.mxu0 %v1129_v52 }
  0x31   :  { %1029 = vmatpush3.bf16.msra.mxu1 %v1128_v51  ;;  %v862_v51 = vld [vmem:[%s1448_s3] sm:$0xff] }
  0x32   :  { %1030 = vmatprep.subr.bf16.mxu1 %v1131_v54 }
  0x33   :  { %1009 = vmatpush3.bf16.msra.mxu0 %v1130_v53 }
  0x34   :  { %1010 = vmatprep.subr.bf16.mxu0 %v1133_v56 }
  0x35   :  { %1031 = vmatpush3.bf16.msra.mxu1 %v1132_v55 }
  0x36   :  { %1032 = vmatprep.subr.bf16.mxu1 %v1135_v58 }
  0x37   :  { %1011 = vmatpush3.bf16.msra.mxu0 %v1134_v57  ;;  %v863_v57 = vld [vmem:[%s1448_s3 + $0x8] sm:$0xff] }
  0x38   :  { %1012 = vmatprep.subr.bf16.mxu0 %v1137_v60 }
  0x39   :  { %1033 = vmatpush3.bf16.msra.mxu1 %v1136_v59 }
  0x3a   :  { %1034 = vmatprep.subr.bf16.mxu1 %v1139_v62 }
  0x3b   :  { %1013 = vmatpush3.bf16.msra.mxu0 %v1138_v61 }
  0x3c   :  { %1014 = vmatprep.subr.bf16.mxu0 %v1141_v0 }
  0x3d   :  { %1035 = vmatpush3.bf16.msra.mxu1 %v1140_v63 }
  0x3e   :  { %1036 = vmatprep.subr.bf16.mxu1 %v1143_v2 }
  0x3f   :  { %1015 = vmatpush3.bf16.msra.mxu0 %v1142_v1 }
  0x40   :  { %1053 = vmatprep.subr.bf16.mxu0 %v1160_v6 }
  0x41   :  { %1037 = vmatpush3.bf16.msra.mxu1 %v1147_v5 }
  0x42   :  { %772 = vmatmul.mubr.bf16.vlgmr.msra.gmra.mxu0 %v1144_v3 }
  0x43   :  { %1069 = vmatprep.mubr.msk.bf16.mxu0 %vm1161_vm0, %v1160_v6  ;;  %1054 = vmatpush3.bf16.msra.mxu0 %v1151_v9 }
  0x44   :  { %813 = vmatmul.mubr.bf16.vlgmr.msra.gmra.mxu1 %v1148_v7  ;;  %1055 = vmatprep.subr.bf16.mxu0 %v1160_v6 }
  0x47   :  { %1056 = vmatpush3.bf16.msra.mxu0 %v1152_v10 }
  0x48   :  { %1057 = vmatprep.subr.bf16.mxu0 %v1160_v6 }
  0x4b   :  { %1058 = vmatpush3.bf16.msra.mxu0 %v1153_v11 }
  0x4c   :  { %1059 = vmatprep.subr.bf16.mxu0 %v1160_v6 }
  0x4f   :  { %1060 = vmatpush3.bf16.msra.mxu0 %v1154_v12 }
  0x50   :  { %1061 = vmatprep.subr.bf16.mxu0 %v1160_v6 }
  0x53   :  { %1062 = vmatpush3.bf16.msra.mxu0 %v1155_v13 }
  0x54   :  { %1063 = vmatprep.subr.bf16.mxu0 %v1160_v6 }
  0x57   :  { %1064 = vmatpush3.bf16.msra.mxu0 %v1156_v14 }
  0x58   :  { %1065 = vmatprep.subr.bf16.mxu0 %v1160_v6 }
  0x5b   :  { %1066 = vmatpush3.bf16.msra.mxu0 %v1157_v15 }
  0x5c   :  { %1067 = vmatprep.subr.bf16.mxu0 %v1160_v6 }
  0x5f   :  { %1068 = vmatpush3.bf16.msra.mxu0 %v1158_v16 }
  0x62   :  { %1070 = vmatmul.mubr.bf16.vlgmr.msra.gmra.mxu0 %v1159_v17 }
  0xe2   :  { %v972_v18 = vpop.f32.mrf.mxu0 }
  0xe4   :  { %v973_v19 = vpop.f32.mrf.mxu0  ;;  %v994_v20 = vpop.f32.mrf.mxu1 }
  0xe5   :  { %v974_v29 = vadd.f32 %v973_v19, %v972_v18 }
  0xe6   :  { %v975_v21 = vpop.f32.mrf.mxu0  ;;  %v995_v22 = vpop.f32.mrf.mxu1 }
  0xe7   :  { %v692_v33 = vadd.f32 %v974_v29, %v874_v30  ;;  %v996_v34 = vadd.f32 %v995_v22, %v994_v20 }
  0xe8   :  { %v976_v23 = vpop.f32.mrf.mxu0  ;;  %v997_v24 = vpop.f32.mrf.mxu1 }
  0xe9   :  { %v977_v35 = vadd.f32 %v976_v23, %v975_v21  ;;  %v733_v39 = vadd.f32 %v996_v34, %v692_v33 }
  0xea   :  { %v998_v26 = vpop.f32.mrf.mxu1 }
  0xeb   :  { %v695_v40 = vadd.f32 %v977_v35, %v874_v30  ;;  %v999_v41 = vadd.f32 %v998_v26, %v997_v24 }
  0xed   :  { %v736_v46 = vadd.f32 %v999_v41, %v695_v40 }
 0x102   :  { %v1016_v25 = vpop.f32.mrf.mxu0 }
 0x104   :  { %v1017_v27 = vpop.f32.mrf.mxu0  ;;  %v1038_v28 = vpop.f32.mrf.mxu1 }
 0x105   :  { %v1018_v36 = vadd.f32 %v1017_v27, %v1016_v25 }
 0x106   :  { %v1019_v31 = vpop.f32.mrf.mxu0  ;;  %v1039_v32 = vpop.f32.mrf.mxu1 }
 0x107   :  { %v774_v42 = vadd.f32 %v1018_v36, %v733_v39  ;;  %v1040_v43 = vadd.f32 %v1039_v32, %v1038_v28 }
 0x108   :  { %v1020_v37 = vpop.f32.mrf.mxu0  ;;  %v1041_v38 = vpop.f32.mrf.mxu1 }
 0x109   :  { %v1021_v44 = vadd.f32 %v1020_v37, %v1019_v31  ;;  %v815_v49 = vadd.f32 %v1040_v43, %v774_v42 }
 0x10a   :  { %v1042_v45 = vpop.f32.mrf.mxu1 }
 0x10b   :  { %v777_v47 = vadd.f32 %v1021_v44, %v736_v46  ;;  %v1043_v48 = vadd.f32 %v1042_v45, %v1041_v38 }
 0x10d   :  { %v818_v55 = vadd.f32 %v1043_v48, %v777_v47 }
 0x122   :  { %v855_v50 = vpop.f32.mrf.mxu0 }
 0x123   :  { %v856_v52 = vadd.f32 %v855_v50, %v815_v49 }
 0x124   :  { %v1071_v53 = vpop.f32.mrf.mxu0 }
 0x125   :  { %v864_v54 = vadd.f32 %v862_v51, %v856_v52 }
 0x126   :  { %v858_v56 = vpop.f32.mrf.mxu0 }
 0x127   :  { %v866_v58 = vmax.f32 %v864_v54, 0.0  ;;  %v859_v59 = vadd.f32 %v858_v56, %v818_v55 }
 0x128   :  { %v1072_v60 = vpop.f32.mrf.mxu0 }
 0x129   :  { %868 = vst [vmem:[%s1449_s4] sm:$0xff] %v866_v58  ;;  %v865_v61 = vadd.f32 %v863_v57, %v859_v59 }
 0x12b   :  { %v867_v62 = vmax.f32 %v865_v61, 0.0 }
 0x12d   :  { %869 = vst [vmem:[%s1449_s4 + $0x8] sm:$0xff] %v867_v62 }

// kernel: esnet_forward.125
= control target key start
LH: loop header
LB: loop body
LE: loop exit
PB: predicated region body
PF: predicated region fallthrough
CT: control target
= control target key end

     0   :  { %s1603_s1 = inlined_call_operand.vmem [shape: bf16[1152,128], index: 1, kind: input, shape index: {}]   ;;  %s1604_s0 = inlined_call_operand.vmem [shape: bf16[32,1152], index: 0, kind: input, shape index: {}]   ;;  %s1605_s2 = inlined_call_operand.vmem [shape: f32[1,128], index: 2, kind: input, shape index: {}]   ;;  %s1606_s3 = inlined_call_operand.vmem [shape: f32[32,128], index: 3, kind: output, shape index: {}]  }
   0x1   :  { %v1200_v0 = vld [vmem:[%s1603_s1 + $0x78] sm:$0xff]   ;;  %v1204_v4 = vld [vmem:[%s1603_s1 + $0x70] sm:$0xff]   ;;  %v1208_v8 = vld [vmem:[%s1603_s1 + $0x68] sm:$0xff]  }
   0x2   :  { %v1201_v1 = vld [vmem:[%s1603_s1 + $0x38] sm:$0xff]   ;;  %1058 = vmatprep.subr.bf16.mxu0 %v1200_v0  ;;  %v1205_v5 = vld [vmem:[%s1603_s1 + $0x30] sm:$0xff]   ;;  %v1209_v9 = vld [vmem:[%s1603_s1 + $0x28] sm:$0xff]  }
   0x3   :  { %v1202_v2 = vld [vmem:[%s1603_s1 + $0xf8] sm:$0xff]   ;;  %1059 = vmatpush3.bf16.msra.mxu0 %v1201_v1  ;;  %v1206_v6 = vld [vmem:[%s1603_s1 + $0xf0] sm:$0xff]   ;;  %v1210_v10 = vld [vmem:[%s1603_s1 + $0xe8] sm:$0xff]  }
   0x4   :  { %v1203_v3 = vld [vmem:[%s1603_s1 + $0xb8] sm:$0xff]   ;;  %1086 = vmatprep.subr.bf16.mxu1 %v1202_v2  ;;  %1060 = vmatprep.subr.bf16.mxu0 %v1204_v4  ;;  %v1207_v7 = vld [vmem:[%s1603_s1 + $0xb0] sm:$0xff]   ;;  %v1211_v11 = vld [vmem:[%s1603_s1 + $0xa8] sm:$0xff]  }
   0x5   :  { %1087 = vmatpush3.bf16.msra.mxu1 %v1203_v3  ;;  %v1212_v12 = vld [vmem:[%s1603_s1 + $0x60] sm:$0xff]   ;;  %v1216_v16 = vld [vmem:[%s1603_s1 + $0x58] sm:$0xff]   ;;  %v1220_v20 = vld [vmem:[%s1603_s1 + $0x50] sm:$0xff]  }
   0x6   :  { %1088 = vmatprep.subr.bf16.mxu1 %v1206_v6  ;;  %v1213_v13 = vld [vmem:[%s1603_s1 + $0x20] sm:$0xff]   ;;  %v1217_v17 = vld [vmem:[%s1603_s1 + $0x18] sm:$0xff]   ;;  %v1221_v21 = vld [vmem:[%s1603_s1 + $0x10] sm:$0xff]  }
   0x7   :  { %1061 = vmatpush3.bf16.msra.mxu0 %v1205_v5  ;;  %v1214_v14 = vld [vmem:[%s1603_s1 + $0xe0] sm:$0xff]   ;;  %v1218_v18 = vld [vmem:[%s1603_s1 + $0xd8] sm:$0xff]   ;;  %v1222_v22 = vld [vmem:[%s1603_s1 + $0xd0] sm:$0xff]  }
   0x8   :  { %1062 = vmatprep.subr.bf16.mxu0 %v1208_v8  ;;  %v1215_v15 = vld [vmem:[%s1603_s1 + $0xa0] sm:$0xff]   ;;  %v1219_v19 = vld [vmem:[%s1603_s1 + $0x98] sm:$0xff]   ;;  %v1223_v23 = vld [vmem:[%s1603_s1 + $0x90] sm:$0xff]  }
   0x9   :  { %1089 = vmatpush3.bf16.msra.mxu1 %v1207_v7  ;;  %v1224_v24 = vld [vmem:[%s1603_s1 + $0x48] sm:$0xff]   ;;  %v1228_v28 = vld [vmem:[%s1603_s1 + $0x40] sm:$0xff]   ;;  %v1235_v34 = vld [vmem:[%s1603_s1 + $0x178] sm:$0xff]  }
   0xa   :  { %1090 = vmatprep.subr.bf16.mxu1 %v1210_v10  ;;  %v1225_v25 = vld [vmem:[%s1603_s1 + $0x8] sm:$0xff]   ;;  %v1229_v29 = vld [vmem:[%s1603_s1] sm:$0xff]   ;;  %v1239_v37 = vld [vmem:[%s1603_s1 + $0x138] sm:$0xff]  }
   0xb   :  { %1063 = vmatpush3.bf16.msra.mxu0 %v1209_v9  ;;  %v1226_v26 = vld [vmem:[%s1603_s1 + $0xc8] sm:$0xff]   ;;  %v1230_v30 = vld [vmem:[%s1603_s1 + $0xc0] sm:$0xff]   ;;  %v1240_v38 = vld [vmem:[%s1603_s1 + $0x1f8] sm:$0xff]  }
   0xc   :  { %1064 = vmatprep.subr.bf16.mxu0 %v1212_v12  ;;  %v1227_v27 = vld [vmem:[%s1603_s1 + $0x88] sm:$0xff]   ;;  %v1231_v31 = vld [vmem:[%s1604_s0] ss:$36 sps:$4 sm:$0xff]   ;;  %v1241_v39 = vld [vmem:[%s1603_s1 + $0x1b8] sm:$0xff]  }
   0xd   :  { %1091 = vmatpush3.bf16.msra.mxu1 %v1211_v11  ;;  %v1233_v32 = vld [vmem:[%s1604_s0 + $0x4] ss:$36 sps:$4 sm:$0xff]   ;;  %v1238_v36 = vld [vmem:[%s1604_s0 + $0xc] ss:$36 sps:$4 sm:$0xff]   ;;  %v1254_v52 = vld [vmem:[%s1603_s1 + $0x158] sm:$0xff]  }
   0xe   :  { %1092 = vmatprep.subr.bf16.mxu1 %v1214_v14  ;;  %v1234_v33 = vld [vmem:[%s1603_s1 + $0x80] sm:$0xff]   ;;  %742 = vmatprep.mubr.bf16.mxu0 %v1233_v32  ;;  %v1236_v35 = vld [vmem:[%s1604_s0 + $0x8] ss:$36 sps:$4 sm:$0xff]   ;;  %v1242_v40 = vld [vmem:[%s1603_s1 + $0x170] sm:$0xff]  }
   0xf   :  { %1065 = vmatpush3.bf16.msra.mxu0 %v1213_v13  ;;  %791 = vmatprep.mubr.bf16.mxu1 %v1238_v36  ;;  %v1243_v41 = vld [vmem:[%s1603_s1 + $0x130] sm:$0xff]   ;;  %v1246_v44 = vld [vmem:[%s1603_s1 + $0x168] sm:$0xff]   ;;  %v1250_v48 = vld [vmem:[%s1603_s1 + $0x160] sm:$0xff]  }
  0x10   :  { %1066 = vmatprep.subr.bf16.mxu0 %v1216_v16  ;;  %v1244_v42 = vld [vmem:[%s1603_s1 + $0x1f0] sm:$0xff]   ;;  %v1247_v45 = vld [vmem:[%s1603_s1 + $0x128] sm:$0xff]   ;;  %v1251_v49 = vld [vmem:[%s1603_s1 + $0x120] sm:$0xff]  }
  0x11   :  { %1093 = vmatpush3.bf16.msra.mxu1 %v1215_v15  ;;  %v1245_v43 = vld [vmem:[%s1603_s1 + $0x1b0] sm:$0xff]   ;;  %v1248_v46 = vld [vmem:[%s1603_s1 + $0x1e8] sm:$0xff]   ;;  %v1252_v50 = vld [vmem:[%s1603_s1 + $0x1e0] sm:$0xff]  }
  0x12   :  { %1094 = vmatprep.subr.bf16.mxu1 %v1218_v18  ;;  %v1249_v47 = vld [vmem:[%s1603_s1 + $0x1a8] sm:$0xff]   ;;  %v1253_v51 = vld [vmem:[%s1603_s1 + $0x1a0] sm:$0xff]   ;;  %v1255_v53 = vld [vmem:[%s1603_s1 + $0x118] sm:$0xff]  }
  0x13   :  { %1067 = vmatpush3.bf16.msra.mxu0 %v1217_v17  ;;  %v1256_v54 = vld [vmem:[%s1604_s0 + $0x4c] ss:$36 sps:$4 sm:$0xff]   ;;  %v1258_v55 = vld [vmem:[%s1603_s1 + $0x1d8] sm:$0xff]   ;;  %v1272_v4 = vld [vmem:[%s1603_s1 + $0x140] sm:$0xff]  }
  0x14   :  { %1068 = vmatprep.subr.bf16.mxu0 %v1220_v20  ;;  %v1259_v56 = vld [vmem:[%s1604_s0 + $0x48] ss:$36 sps:$4 sm:$0xff]   ;;  %v1260_v57 = vld [vmem:[%s1603_s1 + $0x198] sm:$0xff]   ;;  %v1263_v59 = vld [vmem:[%s1603_s1 + $0x150] sm:$0xff]  }
  0x15   :  { %1095 = vmatpush3.bf16.msra.mxu1 %v1219_v19  ;;  %v1261_v58 = vld [vmem:[%s1604_s0 + $0x54] ss:$36 sps:$4 sm:$0xff]   ;;  %v1268_v0 = vld [vmem:[%s1603_s1 + $0x148] sm:$0xff]   ;;  %v1273_v5 = vld [vmem:[%s1603_s1 + $0x100] sm:$0xff]  }
  0x16   :  { %1096 = vmatprep.subr.bf16.mxu1 %v1222_v22  ;;  %v1264_v60 = vld [vmem:[%s1604_s0 + $0x50] ss:$36 sps:$4 sm:$0xff]   ;;  %v1269_v1 = vld [vmem:[%s1603_s1 + $0x108] sm:$0xff]   ;;  %v1274_v6 = vld [vmem:[%s1603_s1 + $0x1c0] sm:$0xff]  }
  0x17   :  { %1069 = vmatpush3.bf16.msra.mxu0 %v1221_v21  ;;  %v1265_v61 = vld [vmem:[%s1603_s1 + $0x110] sm:$0xff]   ;;  %v1270_v2 = vld [vmem:[%s1603_s1 + $0x1c8] sm:$0xff]   ;;  %v1278_v9 = vld [vmem:[%s1603_s1 + $0x180] sm:$0xff]  }
  0x18   :  { %1070 = vmatprep.subr.bf16.mxu0 %v1224_v24  ;;  %v1266_v62 = vld [vmem:[%s1603_s1 + $0x1d0] sm:$0xff]   ;;  %v1271_v3 = vld [vmem:[%s1603_s1 + $0x188] sm:$0xff]   ;;  %v1279_v10 = vld [vmem:[%s1603_s1 + $0x238] sm:$0xff]  }
  0x19   :  { %1097 = vmatpush3.bf16.msra.mxu1 %v1223_v23  ;;  %v1267_v63 = vld [vmem:[%s1603_s1 + $0x190] sm:$0xff]   ;;  %v1280_v11 = vld [vmem:[%s1604_s0 + $0x18] ss:$36 sps:$4 sm:$0xff]   ;;  %v1287_v16 = vld [vmem:[%s1603_s1 + $0x228] sm:$0xff]  }
  0x1a   :  { %1098 = vmatprep.subr.bf16.mxu1 %v1226_v26  ;;  %v1275_v7 = vld [vmem:[%s1604_s0 + $0x10] ss:$36 sps:$4 sm:$0xff]   ;;  %v1282_v12 = vld [vmem:[%s1604_s0 + $0x1c] ss:$36 sps:$4 sm:$0xff]   ;;  %v1288_v17 = vld [vmem:[%s1604_s0 + $0x64] ss:$36 sps:$4 sm:$0xff]  }
  0x1b   :  { %1071 = vmatpush3.bf16.msra.mxu0 %v1225_v25  ;;  %v1277_v8 = vld [vmem:[%s1604_s0 + $0x14] ss:$36 sps:$4 sm:$0xff]   ;;  %v1284_v14 = vld [vmem:[%s1604_s0 + $0x5c] ss:$36 sps:$4 sm:$0xff]   ;;  %v1294_v23 = vld [vmem:[%s1603_s1 + $0x208] sm:$0xff]  }
  0x1c   :  { %1072 = vmatprep.subr.bf16.mxu0 %v1228_v28  ;;  %v1283_v13 = vld [vmem:[%s1603_s1 + $0x230] sm:$0xff]   ;;  %v1286_v15 = vld [vmem:[%s1604_s0 + $0x58] ss:$36 sps:$4 sm:$0xff]   ;;  %v1290_v18 = vld [vmem:[%s1604_s0 + $0x60] ss:$36 sps:$4 sm:$0xff]  }
  0x1d   :  { %1099 = vmatpush3.bf16.msra.mxu1 %v1227_v27  ;;  %v1291_v19 = vld [vmem:[%s1603_s1 + $0x220] sm:$0xff]   ;;  %v1292_v20 = vld [vmem:[%s1603_s1 + $0x218] sm:$0xff]   ;;  %v1293_v22 = vld [vmem:[%s1603_s1 + $0x210] sm:$0xff]  }
  0x1e   :  { %1100 = vmatprep.subr.bf16.mxu1 %v1230_v30  ;;  %v1296_v21 = vld [vmem:[%s1604_s0 + $0x20] ss:$36 sps:$4 sm:$0xff]   ;;  %v1297_v25 = vld [vmem:[%s1604_s0 + $0x68] ss:$36 sps:$4 sm:$0xff]  }
  0x1f   :  { %1073 = vmatpush3.bf16.msra.mxu0 %v1229_v29  ;;  %v1295_v24 = vld [vmem:[%s1603_s1 + $0x200] sm:$0xff]  }
  0x20   :  { %1114 = vmatprep.subr.bf16.mxu0 %v1235_v34 }
  0x21   :  { %1101 = vmatpush3.bf16.msra.mxu1 %v1234_v33 }
  0x22   :  { %743 = vmatmul.mubr.bf16.vlgmr.msra.gmra.mxu0 %v1231_v31  ;;  %1142 = vmatprep.subr.bf16.mxu1 %v1240_v38 }
  0x23   :  { %1115 = vmatpush3.bf16.msra.mxu0 %v1239_v37  ;;  %750 = vmatprep.mubr.bf16.mxu0 %v1256_v54 }
  0x24   :  { %792 = vmatmul.mubr.bf16.vlgmr.msra.gmra.mxu1 %v1236_v35  ;;  %1116 = vmatprep.subr.bf16.mxu0 %v1242_v40 }
  0x25   :  { %1143 = vmatpush3.bf16.msra.mxu1 %v1241_v39  ;;  %799 = vmatprep.mubr.bf16.mxu1 %v1261_v58 }
  0x26   :  { %1144 = vmatprep.subr.bf16.mxu1 %v1244_v42 }
  0x27   :  { %1117 = vmatpush3.bf16.msra.mxu0 %v1243_v41 }
  0x28   :  { %1118 = vmatprep.subr.bf16.mxu0 %v1246_v44 }
  0x29   :  { %1145 = vmatpush3.bf16.msra.mxu1 %v1245_v43 }
  0x2a   :  { %1146 = vmatprep.subr.bf16.mxu1 %v1248_v46  ;;  %751 = vmatmul.mubr.bf16.gmra.mxu0 %v1259_v56 }
  0x2b   :  { %1119 = vmatpush3.bf16.msra.mxu0 %v1247_v45  ;;  %840 = vmatprep.mubr.bf16.mxu0 %v1277_v8 }
  0x2c   :  { %1120 = vmatprep.subr.bf16.mxu0 %v1250_v48  ;;  %800 = vmatmul.mubr.bf16.gmra.mxu1 %v1264_v60 }
  0x2d   :  { %1147 = vmatpush3.bf16.msra.mxu1 %v1249_v47  ;;  %889 = vmatprep.mubr.bf16.mxu1 %v1282_v12 }
  0x2e   :  { %1148 = vmatprep.subr.bf16.mxu1 %v1252_v50 }
  0x2f   :  { %1121 = vmatpush3.bf16.msra.mxu0 %v1251_v49 }
  0x30   :  { %1122 = vmatprep.subr.bf16.mxu0 %v1254_v52 }
  0x31   :  { %1149 = vmatpush3.bf16.msra.mxu1 %v1253_v51 }
  0x32   :  { %1150 = vmatprep.subr.bf16.mxu1 %v1258_v55  ;;  %v967_v55 = vld [vmem:[%s1605_s2] ss:$0 sm:$0xff] }
  0x33   :  { %1123 = vmatpush3.bf16.msra.mxu0 %v1255_v53 }
  0x34   :  { %1124 = vmatprep.subr.bf16.mxu0 %v1263_v59 }
  0x35   :  { %1151 = vmatpush3.bf16.msra.mxu1 %v1260_v57 }
  0x36   :  { %1152 = vmatprep.subr.bf16.mxu1 %v1266_v62 }
  0x37   :  { %1125 = vmatpush3.bf16.msra.mxu0 %v1265_v61 }
  0x38   :  { %1126 = vmatprep.subr.bf16.mxu0 %v1268_v0 }
  0x39   :  { %1153 = vmatpush3.bf16.msra.mxu1 %v1267_v63 }
  0x3a   :  { %1154 = vmatprep.subr.bf16.mxu1 %v1270_v2 }
  0x3b   :  { %1127 = vmatpush3.bf16.msra.mxu0 %v1269_v1 }
  0x3c   :  { %1128 = vmatprep.subr.bf16.mxu0 %v1272_v4 }
  0x3d   :  { %1155 = vmatpush3.bf16.msra.mxu1 %v1271_v3 }
  0x3e   :  { %1156 = vmatprep.subr.bf16.mxu1 %v1274_v6 }
  0x3f   :  { %1129 = vmatpush3.bf16.msra.mxu0 %v1273_v5 }
  0x40   :  { %1180 = vmatprep.subr.bf16.mxu0 %v1279_v10 }
  0x41   :  { %1157 = vmatpush3.bf16.msra.mxu1 %v1278_v9 }
  0x42   :  { %841 = vmatmul.mubr.bf16.vlgmr.msra.gmra.mxu0 %v1275_v7 }
  0x43   :  { %1181 = vmatpush3.bf16.msra.mxu0 %v1279_v10  ;;  %848 = vmatprep.mubr.bf16.mxu0 %v1284_v14 }
  0x44   :  { %890 = vmatmul.mubr.bf16.vlgmr.msra.gmra.mxu1 %v1280_v11  ;;  %1182 = vmatprep.subr.bf16.mxu0 %v1283_v13 }
  0x45   :  { %897 = vmatprep.mubr.bf16.mxu1 %v1288_v17 }
  0x47   :  { %1183 = vmatpush3.bf16.msra.mxu0 %v1283_v13 }
  0x48   :  { %1184 = vmatprep.subr.bf16.mxu0 %v1287_v16 }
  0x4a   :  { %849 = vmatmul.mubr.bf16.gmra.mxu0 %v1286_v15 }
  0x4b   :  { %1185 = vmatpush3.bf16.msra.mxu0 %v1287_v16  ;;  %1196 = vmatprep.mubr.bf16.mxu0 %v1296_v21 }
  0x4c   :  { %898 = vmatmul.mubr.bf16.gmra.mxu1 %v1290_v18  ;;  %1186 = vmatprep.subr.bf16.mxu0 %v1291_v19 }
  0x4f   :  { %1187 = vmatpush3.bf16.msra.mxu0 %v1291_v19 }
  0x50   :  { %1188 = vmatprep.subr.bf16.mxu0 %v1292_v20 }
  0x53   :  { %1189 = vmatpush3.bf16.msra.mxu0 %v1292_v20 }
  0x54   :  { %1190 = vmatprep.subr.bf16.mxu0 %v1293_v22 }
  0x57   :  { %1191 = vmatpush3.bf16.msra.mxu0 %v1293_v22 }
  0x58   :  { %1192 = vmatprep.subr.bf16.mxu0 %v1294_v23 }
  0x5b   :  { %1193 = vmatpush3.bf16.msra.mxu0 %v1294_v23 }
  0x5c   :  { %1194 = vmatprep.subr.bf16.mxu0 %v1295_v24 }
  0x5f   :  { %1195 = vmatpush3.bf16.msra.mxu0 %v1295_v24 }
  0x62   :  { %1197 = vmatmul.mubr.bf16.vlgmr.msra.gmra.mxu0 %v1297_v25 }
  0xe2   :  { %v1074_v26 = vpop.f32.mrf.mxu0 }
  0xe4   :  { %v1102_v27 = vpop.f32.mrf.mxu1  ;;  %v1075_v28 = vpop.f32.mrf.mxu0 }
  0xe5   :  { %v1076_v54 = vadd.f32 %v1075_v28, %v1074_v26 }
  0xe6   :  { %v1103_v29 = vpop.f32.mrf.mxu1  ;;  %v1077_v30 = vpop.f32.mrf.mxu0 }
  0xe7   :  { %v745_v61 = vadd.f32 %v1076_v54, %v967_v55  ;;  %v1104_v62 = vadd.f32 %v1103_v29, %v1102_v27 }
  0xe8   :  { %v1105_v31 = vpop.f32.mrf.mxu1  ;;  %v1078_v32 = vpop.f32.mrf.mxu0 }
  0xe9   :  { %v1079_v63 = vadd.f32 %v1078_v32, %v1077_v30  ;;  %v794_v7 = vadd.f32 %v1104_v62, %v745_v61 }
  0xea   :  { %v1080_v33 = vpop.f32.mrf.mxu0  ;;  %v1106_v34 = vpop.f32.mrf.mxu1 }
  0xeb   :  { %v748_v8 = vadd.f32 %v1079_v63, %v967_v55  ;;  %v1107_v9 = vadd.f32 %v1106_v34, %v1105_v31 }
  0xec   :  { %v1108_v35 = vpop.f32.mrf.mxu1  ;;  %v1081_v36 = vpop.f32.mrf.mxu0 }
  0xed   :  { %v1082_v53 = vadd.f32 %v1081_v36, %v1080_v33  ;;  %v797_v18 = vadd.f32 %v1107_v9, %v748_v8 }
  0xee   :  { %v1109_v37 = vpop.f32.mrf.mxu1  ;;  %v1083_v38 = vpop.f32.mrf.mxu0 }
  0xef   :  { %v753_v58 = vadd.f32 %v1082_v53, %v967_v55  ;;  %v1110_v59 = vadd.f32 %v1109_v37, %v1108_v35 }
  0xf0   :  { %v1111_v39 = vpop.f32.mrf.mxu1  ;;  %v1084_v40 = vpop.f32.mrf.mxu0 }
  0xf1   :  { %v1085_v60 = vadd.f32 %v1084_v40, %v1083_v38  ;;  %v802_v3 = vadd.f32 %v1110_v59, %v753_v58 }
  0xf2   :  { %v1112_v42 = vpop.f32.mrf.mxu1 }
  0xf3   :  { %v756_v4 = vadd.f32 %v1085_v60, %v967_v55  ;;  %v1113_v5 = vadd.f32 %v1112_v42, %v1111_v39 }
  0xf5   :  { %v805_v14 = vadd.f32 %v1113_v5, %v756_v4 }
 0x102   :  { %v1130_v41 = vpop.f32.mrf.mxu0 }
 0x104   :  { %v1131_v43 = vpop.f32.mrf.mxu0  ;;  %v1158_v44 = vpop.f32.mrf.mxu1 }
 0x105   :  { %v1132_v6 = vadd.f32 %v1131_v43, %v1130_v41 }
 0x106   :  { %v1133_v45 = vpop.f32.mrf.mxu0  ;;  %v1159_v46 = vpop.f32.mrf.mxu1 }
 0x107   :  { %v843_v15 = vadd.f32 %v1132_v6, %v794_v7  ;;  %v1160_v16 = vadd.f32 %v1159_v46, %v1158_v44 }
 0x108   :  { %v1134_v47 = vpop.f32.mrf.mxu0  ;;  %v1161_v48 = vpop.f32.mrf.mxu1 }
 0x109   :  { %v1135_v17 = vadd.f32 %v1134_v47, %v1133_v45  ;;  %v892_v26 = vadd.f32 %v1160_v16, %v843_v15 }
 0x10a   :  { %v1136_v49 = vpop.f32.mrf.mxu0  ;;  %v1162_v50 = vpop.f32.mrf.mxu1 }
 0x10b   :  { %v846_v23 = vadd.f32 %v1135_v17, %v797_v18  ;;  %v1163_v24 = vadd.f32 %v1162_v50, %v1161_v48 }
 0x10c   :  { %v1137_v51 = vpop.f32.mrf.mxu0  ;;  %v1164_v52 = vpop.f32.mrf.mxu1 }
 0x10d   :  { %v1138_v0 = vadd.f32 %v1137_v51, %v1136_v49  ;;  %v895_v34 = vadd.f32 %v1163_v24, %v846_v23 }
 0x10e   :  { %v1139_v56 = vpop.f32.mrf.mxu0  ;;  %v1165_v57 = vpop.f32.mrf.mxu1 }
 0x10f   :  { %v851_v10 = vadd.f32 %v1138_v0, %v802_v3  ;;  %v1166_v11 = vadd.f32 %v1165_v57, %v1164_v52 }
 0x110   :  { %v1140_v1 = vpop.f32.mrf.mxu0  ;;  %v1167_v2 = vpop.f32.mrf.mxu1 }
 0x111   :  { %v1141_v12 = vadd.f32 %v1140_v1, %v1139_v56  ;;  %v900_v21 = vadd.f32 %v1166_v11, %v851_v10 }
 0x112   :  { %v1168_v13 = vpop.f32.mrf.mxu1 }
 0x113   :  { %v854_v19 = vadd.f32 %v1141_v12, %v805_v14  ;;  %v1169_v20 = vadd.f32 %v1168_v13, %v1167_v2 }
 0x115   :  { %v903_v30 = vadd.f32 %v1169_v20, %v854_v19 }
 0x122   :  { %v1198_v22 = vpop.f32.mrf.mxu0 }
 0x123   :  { %v949_v25 = vadd.f32 %v1198_v22, %v900_v21 }
 0x124   :  { %v940_v27 = vpop.f32.mrf.mxu0 }
 0x125   :  { %v957_v28 = vmax.f32 %v949_v25, 0.0  ;;  %v941_v29 = vadd.f32 %v940_v27, %v892_v26 }
 0x126   :  { %v1199_v31 = vpop.f32.mrf.mxu0 }
 0x127   :  { %961 = vst [vmem:[%s1606_s3 + $0x10] sm:$0xff] %v957_v28  ;;  %v955_v32 = vmax.f32 %v941_v29, 0.0  ;;  %v952_v33 = vadd.f32 %v1199_v31, %v903_v30 }
 0x128   :  { %v943_v35 = vpop.f32.mrf.mxu0 }
 0x129   :  { %959 = vst [vmem:[%s1606_s3] sm:$0xff] %v955_v32  ;;  %v958_v36 = vmax.f32 %v952_v33, 0.0  ;;  %v944_v37 = vadd.f32 %v943_v35, %v895_v34 }
 0x12b   :  { %962 = vst [vmem:[%s1606_s3 + $0x18] sm:$0xff] %v958_v36  ;;  %v956_v38 = vmax.f32 %v944_v37, 0.0 }
 0x12d   :  { %960 = vst [vmem:[%s1606_s3 + $0x8] sm:$0xff] %v956_v38 }

// kernel: esnet_forward.143
= control target key start
LH: loop header
LB: loop body
LE: loop exit
PB: predicated region body
PF: predicated region fallthrough
CT: control target
= control target key end

     0   :  { %vm86_vm0 = vcmask 130048   ;;  %s390_s1 = inlined_call_operand.vmem [shape: bf16[16,128], index: 1, kind: input, shape index: {}]   ;;  %s391_s0 = inlined_call_operand.vmem [shape: bf16[128,16], index: 0, kind: input, shape index: {}]   ;;  %s392_s2 = inlined_call_operand.vmem [shape: f32[1,128], index: 2, kind: input, shape index: {}]   ;;  %s393_s3 = inlined_call_operand.vmem [shape: f32[128,128], index: 3, kind: output, shape index: {}]  }
   0x1   :  { %v275_v0 = vld [vmem:[%s390_s1] sm:$0xff]   ;;  %v278_v3 = vld [vmem:[%s391_s0 + $0x8] sm:$0xff]   ;;  %v280_v5 = vld [vmem:[%s391_s0 + $0x10] sm:$0xff]  }
   0x2   :  { %v276_v1 = vld [vmem:[%s391_s0] sm:$0xff]   ;;  %255 = vmatprep.subr.bf16.mxu0 %v275_v0  ;;  %273 = vmatprep.subr.bf16.mxu1 %v275_v0  ;;  %v279_v4 = vld [vmem:[%s391_s0 + $0x28] sm:$0xff]   ;;  %v281_v6 = vld [vmem:[%s391_s0 + $0x30] sm:$0xff]  }
   0x3   :  { %v277_v2 = vld [vmem:[%s391_s0 + $0x20] sm:$0xff]   ;;  %256 = vmatpush3.bf16.msra.mxu0 %v275_v0  ;;  %274 = vmatpush3.bf16.msra.mxu1 %v275_v0  ;;  %v282_v7 = vld [vmem:[%s391_s0 + $0x18] sm:$0xff]  }
   0x4   :  { %257 = vmatprep.mubr.msk.bf16.mxu0 %vm86_vm0, %v276_v1  ;;  %265 = vmatprep.mubr.msk.bf16.mxu1 %vm86_vm0, %v277_v2  ;;  %v283_v8 = vld [vmem:[%s391_s0 + $0x38] sm:$0xff]   ;;  %v228_v9 = vld [vmem:[%s392_s2] ss:$0 sm:$0xff] }
   0x6   :  { %258 = vmatmul.mubr.msk.bf16.vlgmr.msra.gmra.mxu0 %vm86_vm0, %v278_v3  ;;  %266 = vmatmul.mubr.msk.bf16.vlgmr.msra.gmra.mxu1 %vm86_vm0, %v279_v4 }
   0x7   :  { %261 = vmatprep.mubr.msk.bf16.mxu0 %vm86_vm0, %v280_v5  ;;  %269 = vmatprep.mubr.msk.bf16.mxu1 %vm86_vm0, %v281_v6 }
   0xe   :  { %262 = vmatmul.mubr.msk.bf16.gmra.mxu0 %vm86_vm0, %v282_v7  ;;  %270 = vmatmul.mubr.msk.bf16.gmra.mxu1 %vm86_vm0, %v283_v8 }
  0xc6   :  { %v259_v10 = vpop.f32.mrf.mxu0  ;;  %v267_v11 = vpop.f32.mrf.mxu1 }
  0xc7   :  { %v154_v12 = vadd.f32 %v259_v10, %v228_v9  ;;  %v186_v13 = vadd.f32 %v267_v11, %v228_v9 }
  0xc8   :  { %v145_v14 = vpop.f32.mrf.mxu0  ;;  %v177_v15 = vpop.f32.mrf.mxu1 }
  0xc9   :  { %210 = vst [vmem:[%s393_s3 + $0x10] sm:$0xff] %v154_v12  ;;  %218 = vst [vmem:[%s393_s3 + $0x50] sm:$0xff] %v186_v13  ;;  %v146_v16 = vadd.f32 %v228_v9, %v145_v14  ;;  %v178_v17 = vadd.f32 %v228_v9, %v177_v15 }
  0xca   :  { %v260_v18 = vpop.f32.mrf.mxu0  ;;  %v268_v19 = vpop.f32.mrf.mxu1 }
  0xcb   :  { %208 = vst [vmem:[%s393_s3] sm:$0xff] %v146_v16  ;;  %216 = vst [vmem:[%s393_s3 + $0x40] sm:$0xff] %v178_v17  ;;  %v157_v20 = vadd.f32 %v260_v18, %v228_v9  ;;  %v189_v21 = vadd.f32 %v268_v19, %v228_v9 }
  0xcc   :  { %v148_v22 = vpop.f32.mrf.mxu0  ;;  %v180_v23 = vpop.f32.mrf.mxu1 }
  0xcd   :  { %211 = vst [vmem:[%s393_s3 + $0x18] sm:$0xff] %v157_v20  ;;  %219 = vst [vmem:[%s393_s3 + $0x58] sm:$0xff] %v189_v21  ;;  %v149_v24 = vadd.f32 %v228_v9, %v148_v22  ;;  %v181_v25 = vadd.f32 %v228_v9, %v180_v23 }
  0xce   :  { %v263_v26 = vpop.f32.mrf.mxu0  ;;  %v271_v27 = vpop.f32.mrf.mxu1 }
  0xcf   :  { %209 = vst [vmem:[%s393_s3 + $0x8] sm:$0xff] %v149_v24  ;;  %217 = vst [vmem:[%s393_s3 + $0x48] sm:$0xff] %v181_v25  ;;  %v170_v28 = vadd.f32 %v263_v26, %v228_v9  ;;  %v202_v29 = vadd.f32 %v271_v27, %v228_v9 }
  0xd0   :  { %v161_v30 = vpop.f32.mrf.mxu0  ;;  %v193_v31 = vpop.f32.mrf.mxu1 }
  0xd1   :  { %214 = vst [vmem:[%s393_s3 + $0x30] sm:$0xff] %v170_v28  ;;  %222 = vst [vmem:[%s393_s3 + $0x70] sm:$0xff] %v202_v29  ;;  %v162_v32 = vadd.f32 %v228_v9, %v161_v30  ;;  %v194_v33 = vadd.f32 %v228_v9, %v193_v31 }
  0xd2   :  { %v264_v34 = vpop.f32.mrf.mxu0  ;;  %v272_v35 = vpop.f32.mrf.mxu1 }
  0xd3   :  { %212 = vst [vmem:[%s393_s3 + $0x20] sm:$0xff] %v162_v32  ;;  %220 = vst [vmem:[%s393_s3 + $0x60] sm:$0xff] %v194_v33  ;;  %v173_v36 = vadd.f32 %v264_v34, %v228_v9  ;;  %v205_v37 = vadd.f32 %v272_v35, %v228_v9 }
  0xd4   :  { %v164_v38 = vpop.f32.mrf.mxu0  ;;  %v196_v39 = vpop.f32.mrf.mxu1 }
  0xd5   :  { %215 = vst [vmem:[%s393_s3 + $0x38] sm:$0xff] %v173_v36  ;;  %223 = vst [vmem:[%s393_s3 + $0x78] sm:$0xff] %v205_v37  ;;  %v165_v40 = vadd.f32 %v228_v9, %v164_v38  ;;  %v197_v41 = vadd.f32 %v228_v9, %v196_v39 }
  0xd7   :  { %213 = vst [vmem:[%s393_s3 + $0x28] sm:$0xff] %v165_v40  ;;  %221 = vst [vmem:[%s393_s3 + $0x68] sm:$0xff] %v197_v41 }

// kernel: esnet_forward.134
= control target key start
LH: loop header
LB: loop body
LE: loop exit
PB: predicated region body
PF: predicated region fallthrough
CT: control target
= control target key end

     0   :  { %vm558_vm0 = vcmask 523264   ;;  %s1677_s1 = inlined_call_operand.vmem [shape: bf16[576,128], index: 1, kind: input, shape index: {}]   ;;  %s1678_s0 = inlined_call_operand.vmem [shape: bf16[128,576], index: 0, kind: input, shape index: {}]   ;;  %s1679_s2 = inlined_call_operand.vmem [shape: f32[1,128], index: 2, kind: input, shape index: {}]   ;;  %s1680_s3 = inlined_call_operand.vmem [shape: f32[128,128], index: 3, kind: output, shape index: {}]  }
   0x1   :  { %v1167_v0 = vld [vmem:[%s1677_s1 + $0x78] sm:$0xff]   ;;  %v1171_v4 = vld [vmem:[%s1677_s1 + $0x70] sm:$0xff]   ;;  %v1175_v8 = vld [vmem:[%s1677_s1 + $0x68] sm:$0xff]  }
   0x2   :  { %v1168_v1 = vld [vmem:[%s1677_s1 + $0xf8] sm:$0xff]   ;;  %995 = vmatprep.subr.bf16.mxu0 %v1167_v0  ;;  %v1172_v5 = vld [vmem:[%s1677_s1 + $0xf0] sm:$0xff]   ;;  %v1176_v9 = vld [vmem:[%s1677_s1 + $0xe8] sm:$0xff]  }
   0x3   :  { %v1169_v2 = vld [vmem:[%s1677_s1 + $0x38] sm:$0xff]   ;;  %1059 = vmatprep.subr.bf16.mxu1 %v1168_v1  ;;  %v1173_v6 = vld [vmem:[%s1677_s1 + $0x30] sm:$0xff]   ;;  %v1177_v10 = vld [vmem:[%s1677_s1 + $0x28] sm:$0xff]  }
   0x4   :  { %v1170_v3 = vld [vmem:[%s1677_s1 + $0xb8] sm:$0xff]   ;;  %996 = vmatpush3.bf16.msra.mxu0 %v1169_v2  ;;  %v1174_v7 = vld [vmem:[%s1677_s1 + $0xb0] sm:$0xff]   ;;  %v1178_v11 = vld [vmem:[%s1677_s1 + $0xa8] sm:$0xff]  }
   0x5   :  { %1060 = vmatpush3.bf16.msra.mxu1 %v1170_v3  ;;  %997 = vmatprep.subr.bf16.mxu0 %v1171_v4  ;;  %v1179_v12 = vld [vmem:[%s1677_s1 + $0x60] sm:$0xff]   ;;  %v1183_v16 = vld [vmem:[%s1677_s1 + $0x58] sm:$0xff]   ;;  %v1187_v20 = vld [vmem:[%s1677_s1 + $0x50] sm:$0xff]  }
   0x6   :  { %1061 = vmatprep.subr.bf16.mxu1 %v1172_v5  ;;  %v1180_v13 = vld [vmem:[%s1677_s1 + $0xe0] sm:$0xff]   ;;  %v1184_v17 = vld [vmem:[%s1677_s1 + $0xd8] sm:$0xff]   ;;  %v1188_v21 = vld [vmem:[%s1677_s1 + $0xd0] sm:$0xff]  }
   0x7   :  { %v1181_v14 = vld [vmem:[%s1677_s1 + $0x20] sm:$0xff]   ;;  %v1185_v18 = vld [vmem:[%s1677_s1 + $0x18] sm:$0xff]   ;;  %v1189_v22 = vld [vmem:[%s1677_s1 + $0x10] sm:$0xff]  }
   0x8   :  { %998 = vmatpush3.bf16.msra.mxu0 %v1173_v6  ;;  %v1182_v15 = vld [vmem:[%s1677_s1 + $0xa0] sm:$0xff]   ;;  %v1186_v19 = vld [vmem:[%s1677_s1 + $0x98] sm:$0xff]   ;;  %v1190_v23 = vld [vmem:[%s1677_s1 + $0x90] sm:$0xff]  }
   0x9   :  { %1062 = vmatpush3.bf16.msra.mxu1 %v1174_v7  ;;  %999 = vmatprep.subr.bf16.mxu0 %v1175_v8  ;;  %v1191_v24 = vld [vmem:[%s1677_s1 + $0x48] sm:$0xff]   ;;  %v1195_v28 = vld [vmem:[%s1677_s1 + $0x40] sm:$0xff]   ;;  %v1205_v36 = vld [vmem:[%s1677_s1 + $0x118] sm:$0xff]  }
   0xa   :  { %1063 = vmatprep.subr.bf16.mxu1 %v1176_v9  ;;  %v1192_v25 = vld [vmem:[%s1677_s1 + $0xc8] sm:$0xff]   ;;  %v1196_v29 = vld [vmem:[%s1677_s1 + $0xc0] sm:$0xff]   ;;  %v1218_v42 = vld [vmem:[%s1677_s1 + $0x110] sm:$0xff]  }
   0xb   :  { %v1193_v26 = vld [vmem:[%s1677_s1 + $0x8] sm:$0xff]   ;;  %v1197_v30 = vld [vmem:[%s1677_s1] sm:$0xff]   ;;  %v1214_v43 = vld [vmem:[%s1678_s0 + $0x5c] ss:$20 sps:$4 sm:$0xff]  }
   0xc   :  { %1000 = vmatpush3.bf16.msra.mxu0 %v1177_v10  ;;  %v1194_v27 = vld [vmem:[%s1677_s1 + $0x88] sm:$0xff]   ;;  %v1198_v31 = vld [vmem:[%s1677_s1 + $0x80] sm:$0xff]   ;;  %v1219_v47 = vld [vmem:[%s1678_s0 + $0x7c] ss:$20 sps:$4 sm:$0xff]  }
   0xd   :  { %1064 = vmatpush3.bf16.msra.mxu1 %v1178_v11  ;;  %1001 = vmatprep.subr.bf16.mxu0 %v1179_v12  ;;  %v1199_v32 = vld [vmem:[%s1678_s0] ss:$20 sps:$4 sm:$0xff]   ;;  %v1201_v33 = vld [vmem:[%s1678_s0 + $0x4] ss:$20 sps:$4 sm:$0xff]   ;;  %v1202_v34 = vld [vmem:[%s1678_s0 + $0x8] ss:$20 sps:$4 sm:$0xff]  }
   0xe   :  { %1065 = vmatprep.subr.bf16.mxu1 %v1180_v13  ;;  %v1204_v35 = vld [vmem:[%s1678_s0 + $0xc] ss:$20 sps:$4 sm:$0xff]   ;;  %615 = vmatprep.mubr.bf16.mxu0 %v1201_v33  ;;  %v1208_v38 = vld [vmem:[%s1678_s0 + $0x34] ss:$20 sps:$4 sm:$0xff]   ;;  %v1211_v40 = vld [vmem:[%s1678_s0 + $0x30] ss:$20 sps:$4 sm:$0xff]  }
   0xf   :  { %712 = vmatprep.mubr.bf16.mxu1 %v1204_v35  ;;  %v1206_v37 = vld [vmem:[%s1678_s0 + $0x2c] ss:$20 sps:$4 sm:$0xff]   ;;  %v1210_v39 = vld [vmem:[%s1678_s0 + $0x28] ss:$20 sps:$4 sm:$0xff]   ;;  %v1216_v44 = vld [vmem:[%s1678_s0 + $0x50] ss:$20 sps:$4 sm:$0xff]  }
  0x10   :  { %1002 = vmatpush3.bf16.msra.mxu0 %v1181_v14  ;;  %v1212_v41 = vld [vmem:[%s1678_s0 + $0x54] ss:$20 sps:$4 sm:$0xff]   ;;  %v1217_v45 = vld [vmem:[%s1678_s0 + $0x58] ss:$20 sps:$4 sm:$0xff]   ;;  %v1244_v49 = vld [vmem:[%s1677_s1 + $0x100] sm:$0xff]  }
  0x11   :  { %1066 = vmatpush3.bf16.msra.mxu1 %v1182_v15  ;;  %1003 = vmatprep.subr.bf16.mxu0 %v1183_v16  ;;  %v1231_v46 = vld [vmem:[%s1677_s1 + $0x108] sm:$0xff]   ;;  %v1221_v48 = vld [vmem:[%s1678_s0 + $0x84] ss:$20 sps:$4 sm:$0xff]   ;;  %v1224_v51 = vld [vmem:[%s1678_s0 + $0x80] ss:$20 sps:$4 sm:$0xff]  }
  0x12   :  { %1067 = vmatprep.subr.bf16.mxu1 %v1184_v17  ;;  %v1223_v50 = vld [vmem:[%s1678_s0 + $0x78] ss:$20 sps:$4 sm:$0xff]   ;;  %v1229_v54 = vld [vmem:[%s1678_s0 + $0xa0] ss:$20 sps:$4 sm:$0xff]   ;;  %v1230_v55 = vld [vmem:[%s1678_s0 + $0xa8] ss:$20 sps:$4 sm:$0xff]  }
  0x13   :  { %v1225_v52 = vld [vmem:[%s1678_s0 + $0xa4] ss:$20 sps:$4 sm:$0xff]   ;;  %v1227_v53 = vld [vmem:[%s1678_s0 + $0xac] ss:$20 sps:$4 sm:$0xff]   ;;  %v1234_v57 = vld [vmem:[%s1678_s0 + $0xd4] ss:$20 sps:$4 sm:$0xff]  }
  0x14   :  { %1004 = vmatpush3.bf16.msra.mxu0 %v1185_v18  ;;  %v1232_v56 = vld [vmem:[%s1678_s0 + $0xcc] ss:$20 sps:$4 sm:$0xff]   ;;  %v1236_v58 = vld [vmem:[%s1678_s0 + $0xc8] ss:$20 sps:$4 sm:$0xff]   ;;  %v1237_v59 = vld [vmem:[%s1678_s0 + $0xd0] ss:$20 sps:$4 sm:$0xff]  }
  0x15   :  { %1068 = vmatpush3.bf16.msra.mxu1 %v1186_v19  ;;  %1005 = vmatprep.subr.bf16.mxu0 %v1187_v20  ;;  %v1238_v60 = vld [vmem:[%s1678_s0 + $0xf4] ss:$20 sps:$4 sm:$0xff]   ;;  %v1240_v61 = vld [vmem:[%s1678_s0 + $0xfc] ss:$20 sps:$4 sm:$0xff]   ;;  %v1243_v63 = vld [vmem:[%s1678_s0 + $0xf8] ss:$20 sps:$4 sm:$0xff]  }
  0x16   :  { %1069 = vmatprep.subr.bf16.mxu1 %v1188_v21  ;;  %v1242_v62 = vld [vmem:[%s1678_s0 + $0xf0] ss:$20 sps:$4 sm:$0xff]   ;;  %v1249_v2 = vld [vmem:[%s1678_s0 + $0x118] ss:$20 sps:$4 sm:$0xff]   ;;  %v1250_v3 = vld [vmem:[%s1678_s0 + $0x120] ss:$20 sps:$4 sm:$0xff]  }
  0x17   :  { %v1245_v0 = vld [vmem:[%s1678_s0 + $0x11c] ss:$20 sps:$4 sm:$0xff]   ;;  %v1247_v1 = vld [vmem:[%s1678_s0 + $0x124] ss:$20 sps:$4 sm:$0xff]   ;;  %v1255_v8 = vld [vmem:[%s1678_s0 + $0x60] ss:$20 sps:$4 sm:$0xff]  }
  0x18   :  { %1006 = vmatpush3.bf16.msra.mxu0 %v1189_v22  ;;  %v1251_v4 = vld [vmem:[%s1678_s0 + $0x10] ss:$20 sps:$4 sm:$0xff]   ;;  %v1253_v6 = vld [vmem:[%s1678_s0 + $0x38] ss:$20 sps:$4 sm:$0xff]   ;;  %v1256_v9 = vld [vmem:[%s1678_s0 + $0x100] ss:$20 sps:$4 sm:$0xff]  }
  0x19   :  { %1070 = vmatpush3.bf16.msra.mxu1 %v1190_v23  ;;  %1007 = vmatprep.subr.bf16.mxu0 %v1191_v24  ;;  %v1252_v5 = vld [vmem:[%s1678_s0 + $0xb0] ss:$20 sps:$4 sm:$0xff]   ;;  %v1254_v7 = vld [vmem:[%s1678_s0 + $0xd8] ss:$20 sps:$4 sm:$0xff]   ;;  %v1257_v10 = vld [vmem:[%s1678_s0 + $0x88] ss:$20 sps:$4 sm:$0xff]  }
  0x1a   :  { %1071 = vmatprep.subr.bf16.mxu1 %v1192_v25  ;;  %v1258_v11 = vld [vmem:[%s1678_s0 + $0x128] ss:$20 sps:$4 sm:$0xff]  }
  0x1c   :  { %1008 = vmatpush3.bf16.msra.mxu0 %v1193_v26 }
  0x1d   :  { %1072 = vmatpush3.bf16.msra.mxu1 %v1194_v27  ;;  %1009 = vmatprep.subr.bf16.mxu0 %v1195_v28 }
  0x1e   :  { %1073 = vmatprep.subr.bf16.mxu1 %v1196_v29 }
  0x20   :  { %1010 = vmatpush3.bf16.msra.mxu0 %v1197_v30 }
  0x21   :  { %1074 = vmatpush3.bf16.msra.mxu1 %v1198_v31  ;;  %1135 = vmatprep.subr.bf16.mxu0 %v1205_v36 }
  0x22   :  { %1159 = vmatprep.subr.bf16.mxu1 %v1205_v36 }
  0x23   :  { %616 = vmatmul.mubr.bf16.vlgmr.msra.gmra.mxu0 %v1199_v32 }
  0x24   :  { %713 = vmatmul.mubr.bf16.vlgmr.msra.gmra.mxu1 %v1202_v34  ;;  %1136 = vmatpush3.bf16.msra.mxu0 %v1205_v36 }
  0x25   :  { %1163 = vmatpush3.bf16.msra.mxu1 %v1205_v36  ;;  %623 = vmatprep.mubr.bf16.mxu0 %v1206_v37 }
  0x26   :  { %720 = vmatprep.mubr.bf16.mxu1 %v1208_v38  ;;  %1137 = vmatprep.subr.bf16.mxu0 %v1218_v42 }
  0x27   :  { %1160 = vmatprep.subr.bf16.mxu1 %v1218_v42 }
  0x28   :  { %1138 = vmatpush3.bf16.msra.mxu0 %v1218_v42 }
  0x29   :  { %1164 = vmatpush3.bf16.msra.mxu1 %v1218_v42  ;;  %1139 = vmatprep.subr.bf16.mxu0 %v1231_v46 }
  0x2a   :  { %1161 = vmatprep.subr.bf16.mxu1 %v1231_v46 }
  0x2b   :  { %624 = vmatmul.mubr.bf16.gmra.mxu0 %v1210_v39 }
  0x2c   :  { %721 = vmatmul.mubr.bf16.gmra.mxu1 %v1211_v40  ;;  %631 = vmatprep.mubr.bf16.mxu0 %v1212_v41 }
  0x2d   :  { %728 = vmatprep.mubr.bf16.mxu1 %v1214_v43  ;;  %1140 = vmatpush3.bf16.msra.mxu0 %v1231_v46 }
  0x2e   :  { %1165 = vmatpush3.bf16.msra.mxu1 %v1231_v46  ;;  %1141 = vmatprep.subr.bf16.mxu0 %v1244_v49 }
  0x2f   :  { %1162 = vmatprep.subr.bf16.mxu1 %v1244_v49 }
  0x31   :  { %1142 = vmatpush3.bf16.msra.mxu0 %v1244_v49 }
  0x32   :  { %1166 = vmatpush3.bf16.msra.mxu1 %v1244_v49 }
  0x33   :  { %632 = vmatmul.mubr.bf16.gmra.mxu0 %v1216_v44 }
  0x34   :  { %729 = vmatmul.mubr.bf16.gmra.mxu1 %v1217_v45  ;;  %639 = vmatprep.mubr.bf16.mxu0 %v1219_v47 }
  0x35   :  { %736 = vmatprep.mubr.bf16.mxu1 %v1221_v48 }
  0x3b   :  { %640 = vmatmul.mubr.bf16.gmra.mxu0 %v1223_v50 }
  0x3c   :  { %737 = vmatmul.mubr.bf16.gmra.mxu1 %v1224_v51  ;;  %647 = vmatprep.mubr.bf16.mxu0 %v1225_v52 }
  0x3d   :  { %744 = vmatprep.mubr.bf16.mxu1 %v1227_v53 }
  0x43   :  { %648 = vmatmul.mubr.bf16.gmra.mxu0 %v1229_v54 }
  0x44   :  { %745 = vmatmul.mubr.bf16.gmra.mxu1 %v1230_v55  ;;  %655 = vmatprep.mubr.bf16.mxu0 %v1232_v56 }
  0x45   :  { %752 = vmatprep.mubr.bf16.mxu1 %v1234_v57 }
  0x4b   :  { %656 = vmatmul.mubr.bf16.gmra.mxu0 %v1236_v58 }
  0x4c   :  { %753 = vmatmul.mubr.bf16.gmra.mxu1 %v1237_v59  ;;  %663 = vmatprep.mubr.bf16.mxu0 %v1238_v60 }
  0x4d   :  { %760 = vmatprep.mubr.bf16.mxu1 %v1240_v61 }
  0x53   :  { %664 = vmatmul.mubr.bf16.gmra.mxu0 %v1242_v62 }
  0x54   :  { %761 = vmatmul.mubr.bf16.gmra.mxu1 %v1243_v63  ;;  %671 = vmatprep.mubr.bf16.mxu0 %v1245_v0 }
  0x55   :  { %768 = vmatprep.mubr.bf16.mxu1 %v1247_v1 }
  0x5b   :  { %672 = vmatmul.mubr.bf16.gmra.mxu0 %v1249_v2  ;;  %v1566_v2 = vld [vmem:[%s1679_s2] ss:$0 sm:$0xff] }
  0x5c   :  { %769 = vmatmul.mubr.bf16.gmra.mxu1 %v1250_v3  ;;  %1143 = vmatprep.mubr.msk.bf16.mxu0 %vm558_vm0, %v1251_v4 }
  0x5d   :  { %1151 = vmatprep.mubr.msk.bf16.mxu1 %vm558_vm0, %v1252_v5 }
  0x63   :  { %1144 = vmatmul.mubr.msk.bf16.vlgmr.msra.gmra.mxu0 %vm558_vm0, %v1253_v6 }
  0x64   :  { %1152 = vmatmul.mubr.msk.bf16.vlgmr.msra.gmra.mxu1 %vm558_vm0, %v1254_v7  ;;  %1147 = vmatprep.mubr.msk.bf16.mxu0 %vm558_vm0, %v1255_v8 }
  0x65   :  { %1155 = vmatprep.mubr.msk.bf16.mxu1 %vm558_vm0, %v1256_v9 }
  0x6b   :  { %1148 = vmatmul.mubr.msk.bf16.gmra.mxu0 %vm558_vm0, %v1257_v10 }
  0x6c   :  { %1156 = vmatmul.mubr.msk.bf16.gmra.mxu1 %vm558_vm0, %v1258_v11 }
  0xe3   :  { %v1011_v12 = vpop.f32.mrf.mxu0 }
  0xe4   :  { %v1515_v13 = vpop.f32.mrf.mxu1 }
  0xe5   :  { %v1012_v14 = vpop.f32.mrf.mxu0 }
  0xe6   :  { %v1517_v15 = vpop.f32.mrf.mxu1  ;;  %v1013_v0 = vadd.f32 %v1012_v14, %v1011_v12 }
  0xe7   :  { %v1014_v16 = vpop.f32.mrf.mxu0  ;;  %v1077_v14 = vadd.f32 %v1517_v15, %v1515_v13 }
  0xe8   :  { %v1519_v17 = vpop.f32.mrf.mxu1  ;;  %v618_v10 = vadd.f32 %v1013_v0, %v1566_v2 }
  0xe9   :  { %v1015_v18 = vpop.f32.mrf.mxu0 }
  0xea   :  { %v1079_v19 = vpop.f32.mrf.mxu1  ;;  %v1016_v3 = vadd.f32 %v1015_v18, %v1014_v16 }
  0xeb   :  { %v1017_v20 = vpop.f32.mrf.mxu0  ;;  %v1080_v16 = vadd.f32 %v1079_v19, %v1519_v17 }
  0xec   :  { %v1521_v21 = vpop.f32.mrf.mxu1 }
  0xed   :  { %v1018_v22 = vpop.f32.mrf.mxu0 }
  0xee   :  { %v1523_v23 = vpop.f32.mrf.mxu1  ;;  %v1019_v5 = vadd.f32 %v1018_v22, %v1017_v20 }
  0xef   :  { %v1020_v24 = vpop.f32.mrf.mxu0  ;;  %v1083_v13 = vadd.f32 %v1523_v23, %v1521_v21 }
  0xf0   :  { %v1525_v25 = vpop.f32.mrf.mxu1  ;;  %v626_v18 = vadd.f32 %v1019_v5, %v1566_v2 }
  0xf1   :  { %v1021_v26 = vpop.f32.mrf.mxu0 }
  0xf2   :  { %v1527_v27 = vpop.f32.mrf.mxu1  ;;  %v1022_v7 = vadd.f32 %v1021_v26, %v1020_v24  ;;  %v723_v23 = vadd.f32 %v1083_v13, %v626_v18 }
  0xf3   :  { %v1023_v28 = vpop.f32.mrf.mxu0  ;;  %v1086_v17 = vadd.f32 %v1527_v27, %v1525_v25 }
  0xf4   :  { %v1529_v29 = vpop.f32.mrf.mxu1  ;;  %v629_v26 = vadd.f32 %v1022_v7, %v1566_v2 }
  0xf5   :  { %v1024_v30 = vpop.f32.mrf.mxu0 }
  0xf6   :  { %v1531_v31 = vpop.f32.mrf.mxu1  ;;  %v1025_v8 = vadd.f32 %v1024_v30, %v1023_v28  ;;  %v726_v27 = vadd.f32 %v1086_v17, %v629_v26 }
  0xf7   :  { %v1026_v32 = vpop.f32.mrf.mxu0  ;;  %v1089_v19 = vadd.f32 %v1531_v31, %v1529_v29 }
  0xf8   :  { %v1533_v33 = vpop.f32.mrf.mxu1  ;;  %v634_v28 = vadd.f32 %v1025_v8, %v1566_v2 }
  0xf9   :  { %1681 = vst [vmem:[#allocation2_spill] sm:$0xff] %v1533_v33  ;;  %v1027_v34 = vpop.f32.mrf.mxu0 }
  0xfa   :  { %v1535_v35 = vpop.f32.mrf.mxu1  ;;  %v1028_v30 = vadd.f32 %v1027_v34, %v1026_v32  ;;  %v1599_v5 = vadd.f32 %v1089_v19, %v634_v28 }
  0xfb   :  { %1682 = vst [vmem:[#allocation3_spill] sm:$0xff] %v1535_v35  ;;  %v1029_v36 = vpop.f32.mrf.mxu0  ;;  %v621_v35 = vadd.f32 %v1016_v3, %v1566_v2  ;;  %v715_v3 = vadd.f32 %v1077_v14, %v618_v10 }
  0xfc   :  { %v1537_v37 = vpop.f32.mrf.mxu1 }
  0xfd   :  { %v1030_v38 = vpop.f32.mrf.mxu0 }
  0xfe   :  { %v1539_v39 = vpop.f32.mrf.mxu1  ;;  %v1031_v20 = vadd.f32 %v1030_v38, %v1029_v36 }
  0xff   :  { %v1541_v40 = vpop.f32.mrf.mxu0  ;;  %v1095_v29 = vadd.f32 %v1539_v39, %v1537_v37 }
 0x100   :  { %v1543_v41 = vpop.f32.mrf.mxu1  ;;  %v642_v32 = vadd.f32 %v1031_v20, %v1566_v2 }
 0x101   :  { %v1545_v42 = vpop.f32.mrf.mxu0 }
 0x102   :  { %v1547_v43 = vpop.f32.mrf.mxu1  ;;  %v739_v20 = vadd.f32 %v1095_v29, %v642_v32 }
 0x103   :  { %v1035_v44 = vpop.f32.mrf.mxu0 }
 0x104   :  { %v1549_v45 = vpop.f32.mrf.mxu1 }
 0x105   :  { %v1036_v46 = vpop.f32.mrf.mxu0 }
 0x106   :  { %v1551_v47 = vpop.f32.mrf.mxu1  ;;  %v1037_v22 = vadd.f32 %v1036_v46, %v1035_v44  ;;  %v718_v44 = vadd.f32 %v1080_v16, %v621_v35 }
 0x107   :  { %v1038_v48 = vpop.f32.mrf.mxu0  ;;  %v1101_v31 = vadd.f32 %v1551_v47, %v1549_v45 }
 0x108   :  { %v1553_v49 = vpop.f32.mrf.mxu1  ;;  %v650_v34 = vadd.f32 %v1037_v22, %v1566_v2 }
 0x109   :  { %v1039_v50 = vpop.f32.mrf.mxu0 }
 0x10a   :  { %v1555_v51 = vpop.f32.mrf.mxu1  ;;  %v1040_v36 = vadd.f32 %v1039_v50, %v1038_v48  ;;  %v747_v18 = vadd.f32 %v1101_v31, %v650_v34 }
 0x10b   :  { %v1041_v52 = vpop.f32.mrf.mxu0  ;;  %v1104_v37 = vadd.f32 %v1555_v51, %v1553_v49 }
 0x10c   :  { %v1105_v53 = vpop.f32.mrf.mxu1 }
 0x10d   :  { %v1042_v54 = vpop.f32.mrf.mxu0 }
 0x10e   :  { %v1106_v55 = vpop.f32.mrf.mxu1  ;;  %v1043_v11 = vadd.f32 %v1042_v54, %v1041_v52 }
 0x10f   :  { %v1044_v56 = vpop.f32.mrf.mxu0  ;;  %v1107_v46 = vadd.f32 %v1106_v55, %v1105_v53  ;;  %v653_v53 = vadd.f32 %v1040_v36, %v1566_v2 }
 0x110   :  { %v1108_v57 = vpop.f32.mrf.mxu1  ;;  %v658_v15 = vadd.f32 %v1043_v11, %v1566_v2  ;;  %v1034_v11 = vadd.f32 %v1545_v42, %v1541_v40 }
 0x111   :  { %v1045_v58 = vpop.f32.mrf.mxu0  ;;  %v750_v49 = vadd.f32 %v1104_v37, %v653_v53 }
 0x112   :  { %v1109_v59 = vpop.f32.mrf.mxu1  ;;  %v1046_v52 = vadd.f32 %v1045_v58, %v1044_v56  ;;  %v1596_v56 = vadd.f32 %v1028_v30, %v1566_v2  ;;  %v755_v50 = vadd.f32 %v1107_v46, %v658_v15  ;;  %v645_v15 = vadd.f32 %v1034_v11, %v1566_v2 }
 0x113   :  { %v1047_v60 = vpop.f32.mrf.mxu0  ;;  %v1110_v55 = vadd.f32 %v1109_v59, %v1108_v57 }
 0x114   :  { %v1557_v61 = vpop.f32.mrf.mxu1  ;;  %v661_v58 = vadd.f32 %v1046_v52, %v1566_v2 }
 0x115   :  { %v1048_v62 = vpop.f32.mrf.mxu0 }
 0x116   :  { %v1559_v63 = vpop.f32.mrf.mxu1  ;;  %v1049_v7 = vadd.f32 %v1048_v62, %v1047_v60 }
 0x117   :  { %v1561_v1 = vpop.f32.mrf.mxu0 }
 0x118   :  { %v1568_v4 = vpop.f32.mrf.mxu1 }
 0x119   :  { %v1570_v6 = vpop.f32.mrf.mxu0 }
 0x11a   :  { %v1572_v9 = vpop.f32.mrf.mxu1  ;;  %v1052_v51 = vadd.f32 %v1570_v6, %v1561_v1 }
 0x11b   :  { %v1053_v12 = vpop.f32.mrf.mxu0 }
 0x11c   :  { %v1578_v33 = vpop.f32.mrf.mxu1  ;;  %v669_v46 = vadd.f32 %v1052_v51, %v1566_v2 }
 0x11d   :  { %v1054_v24 = vpop.f32.mrf.mxu0 }
 0x11e   :  { %v1118_v54 = vpop.f32.mrf.mxu1  ;;  %v1055_v35 = vadd.f32 %v1054_v24, %v1053_v12  ;;  %v758_v12 = vadd.f32 %v1110_v55, %v661_v58  ;;  %v666_v24 = vadd.f32 %v1049_v7, %v1566_v2 }
 0x11f   :  { %v1056_v0 = vpop.f32.mrf.mxu0  ;;  %v1119_v28 = vadd.f32 %v1118_v54, %v1578_v33 }
 0x120   :  { %v1591_v38 = vpop.f32.mrf.mxu1  ;;  %v674_v22 = vadd.f32 %v1055_v35, %v1566_v2 }
 0x121   :  { %v1057_v21 = vpop.f32.mrf.mxu0 }
 0x122   :  { %v1121_v25 = vpop.f32.mrf.mxu1  ;;  %v1058_v57 = vadd.f32 %v1057_v21, %v1056_v0  ;;  %v1113_v0 = vadd.f32 %v1559_v63, %v1557_v61  ;;  %v771_v36 = vadd.f32 %v1119_v28, %v674_v22  ;;  %v1098_v61 = vadd.f32 %v1547_v43, %v1543_v41  ;;  %v1683_v41 = vld [vmem:[#allocation2_spill] sm:$0xff]  ;;  %v1684_v43 = vld [vmem:[#allocation3_spill] sm:$0xff] }
 0x123   :  { %v1145_v48 = vpop.f32.mrf.mxu0  ;;  %v1122_v21 = vadd.f32 %v1121_v25, %v1591_v38  ;;  %v1092_v29 = vadd.f32 %v1684_v43, %v1683_v41  ;;  %v1116_v38 = vadd.f32 %v1572_v9, %v1568_v4 }
 0x124   :  { %v820_v8 = vadd.f32 %v1145_v48, %v723_v23  ;;  %v1153_v10 = vpop.f32.mrf.mxu1  ;;  %v677_v33 = vadd.f32 %v1058_v57, %v1566_v2  ;;  %v763_v34 = vadd.f32 %v1113_v0, %v666_v24  ;;  %v742_v48 = vadd.f32 %v1098_v61, %v645_v15 }
 0x125   :  { %v852_v14 = vadd.f32 %v1153_v10, %v755_v50  ;;  %v811_v16 = vpop.f32.mrf.mxu0  ;;  %v734_v10 = vadd.f32 %v1092_v29, %v1596_v56 }
 0x126   :  { %v876_v39 = vmax.f32 %v820_v8, 0.0  ;;  %v812_v45 = vadd.f32 %v811_v16, %v715_v3  ;;  %v843_v47 = vpop.f32.mrf.mxu1  ;;  %v774_v55 = vadd.f32 %v1122_v21, %v677_v33 }
 0x127   :  { %v884_v59 = vmax.f32 %v852_v14, 0.0  ;;  %v844_v60 = vadd.f32 %v843_v47, %v747_v18  ;;  %v1146_v62 = vpop.f32.mrf.mxu0  ;;  %v766_v14 = vadd.f32 %v1116_v38, %v669_v46 }
 0x128   :  { %892 = vst [vmem:[%s1680_s3 + $0x10] sm:$0xff] %v876_v39  ;;  %v874_v40 = vmax.f32 %v812_v45, 0.0  ;;  %v823_v42 = vadd.f32 %v1146_v62, %v726_v27  ;;  %v1154_v26 = vpop.f32.mrf.mxu1 }
 0x129   :  { %900 = vst [vmem:[%s1680_s3 + $0x50] sm:$0xff] %v884_v59  ;;  %v882_v30 = vmax.f32 %v844_v60, 0.0  ;;  %v855_v52 = vadd.f32 %v1154_v26, %v758_v12  ;;  %v814_v13 = vpop.f32.mrf.mxu0 }
 0x12a   :  { %890 = vst [vmem:[%s1680_s3] sm:$0xff] %v874_v40  ;;  %v877_v3 = vmax.f32 %v823_v42, 0.0  ;;  %v815_v1 = vadd.f32 %v814_v13, %v718_v44  ;;  %v846_v6 = vpop.f32.mrf.mxu1 }
 0x12b   :  { %898 = vst [vmem:[%s1680_s3 + $0x40] sm:$0xff] %v882_v30  ;;  %v885_v54 = vmax.f32 %v855_v52, 0.0  ;;  %v847_v17 = vadd.f32 %v846_v6, %v750_v49  ;;  %v1149_v19 = vpop.f32.mrf.mxu0 }
 0x12c   :  { %893 = vst [vmem:[%s1680_s3 + $0x18] sm:$0xff] %v877_v3  ;;  %v875_v63 = vmax.f32 %v815_v1, 0.0  ;;  %v836_v44 = vadd.f32 %v1149_v19, %v739_v20  ;;  %v1157_v32 = vpop.f32.mrf.mxu1 }
 0x12d   :  { %901 = vst [vmem:[%s1680_s3 + $0x58] sm:$0xff] %v885_v54  ;;  %v883_v23 = vmax.f32 %v847_v17, 0.0  ;;  %v868_v58 = vadd.f32 %v1157_v32, %v771_v36  ;;  %v827_v27 = vpop.f32.mrf.mxu0 }
 0x12e   :  { %891 = vst [vmem:[%s1680_s3 + $0x8] sm:$0xff] %v875_v63  ;;  %v880_v31 = vmax.f32 %v836_v44, 0.0  ;;  %v828_v35 = vadd.f32 %v827_v27, %v1599_v5  ;;  %v859_v2 = vpop.f32.mrf.mxu1 }
 0x12f   :  { %899 = vst [vmem:[%s1680_s3 + $0x48] sm:$0xff] %v883_v23  ;;  %v888_v25 = vmax.f32 %v868_v58, 0.0  ;;  %v860_v50 = vadd.f32 %v859_v2, %v763_v34  ;;  %v1150_v53 = vpop.f32.mrf.mxu0 }
 0x130   :  { %896 = vst [vmem:[%s1680_s3 + $0x30] sm:$0xff] %v880_v31  ;;  %v878_v7 = vmax.f32 %v828_v35, 0.0  ;;  %v839_v8 = vadd.f32 %v1150_v53, %v742_v48  ;;  %v1158_v5 = vpop.f32.mrf.mxu1 }
 0x131   :  { %904 = vst [vmem:[%s1680_s3 + $0x70] sm:$0xff] %v888_v25  ;;  %v886_v4 = vmax.f32 %v860_v50, 0.0  ;;  %v871_v9 = vadd.f32 %v1158_v5, %v774_v55  ;;  %v830_v11 = vpop.f32.mrf.mxu0 }
 0x132   :  { %894 = vst [vmem:[%s1680_s3 + $0x20] sm:$0xff] %v878_v7  ;;  %v881_v16 = vmax.f32 %v839_v8, 0.0  ;;  %v831_v18 = vadd.f32 %v830_v11, %v734_v10  ;;  %v862_v20 = vpop.f32.mrf.mxu1 }
 0x133   :  { %902 = vst [vmem:[%s1680_s3 + $0x60] sm:$0xff] %v886_v4  ;;  %v889_v56 = vmax.f32 %v871_v9, 0.0  ;;  %v863_v37 = vadd.f32 %v862_v20, %v766_v14 }
 0x134   :  { %897 = vst [vmem:[%s1680_s3 + $0x38] sm:$0xff] %v881_v16  ;;  %v879_v39 = vmax.f32 %v831_v18, 0.0 }
 0x135   :  { %905 = vst [vmem:[%s1680_s3 + $0x78] sm:$0xff] %v889_v56  ;;  %v887_v45 = vmax.f32 %v863_v37, 0.0 }
 0x136   :  { %895 = vst [vmem:[%s1680_s3 + $0x28] sm:$0xff] %v879_v39 }
 0x137   :  { %903 = vst [vmem:[%s1680_s3 + $0x68] sm:$0xff] %v887_v45 }

</bundles_post_ra>
